<compile_context>
chip_gen: v6e
topology: v6e:2x2x1
jax: 0.10.0
libtpu: 0.0.40
codegen_flags: <defaults>
</compile_context>

<pallas_src>
import jax
import jax.numpy as jnp
import numpy as np
from jax.experimental import pallas as pl
from jax.experimental.pallas import tpu as pltpu


def _dam_position_kernel(xq_ref, we_ref, be_ref, xf_ref, v_ref, gamma_ref,
                         out_ref, qe_sc, m_sc, l_sc, acc_sc):
  kv = pl.program_id(2)

  @pl.when(kv == 0)
  def _():
    # Folded query projection for this (batch, query-tile): computed once and
    # cached in bf16 scratch for all KV steps.  Online-softmax state init.
    qe = jnp.dot(xq_ref[0].astype(jnp.bfloat16), we_ref[...],
                 preferred_element_type=jnp.float32) + be_ref[...]
    qe_sc[...] = qe.astype(jnp.bfloat16)
    m_sc[...] = jnp.full(m_sc.shape, -jnp.inf, dtype=m_sc.dtype)
    l_sc[...] = jnp.zeros(l_sc.shape, dtype=l_sc.dtype)
    acc_sc[...] = jnp.zeros(acc_sc.shape, dtype=acc_sc.dtype)

  # Energy tile: (TQ, TKV), contraction over the full channel dim C (bf16
  # operands, f32 accumulation on the MXU).
  e = jax.lax.dot_general(
      qe_sc[...], xf_ref[0],
      dimension_numbers=(((1,), (1,)), ((), ())),
      preferred_element_type=jnp.float32)

  # Online softmax update (all f32).
  m_new = jnp.maximum(m_sc[...], jnp.max(e, axis=-1, keepdims=True))
  alpha = jnp.exp(m_sc[...] - m_new)
  p = jnp.exp(e - m_new)
  l_sc[...] = alpha * l_sc[...] + jnp.sum(p, axis=-1, keepdims=True)
  acc_sc[...] = alpha * acc_sc[...] + jnp.dot(
      p.astype(jnp.bfloat16), v_ref[0], preferred_element_type=jnp.float32)
  m_sc[...] = m_new

  @pl.when(kv == pl.num_programs(2) - 1)
  def _():
    o = acc_sc[...] * pl.reciprocal(l_sc[...], approx=True)
    # Residual with the learnable scalar gamma, in f32.
    # (With C < 128 this output block uses masked stores; lane-dense
    #  repacking of the output slab is only worth it for production C < 128.)
    out_ref[0] = gamma_ref[0, 0] * o + xq_ref[0]


def dam_position(x_nchw, params, *, tq=None, tkv=None):
  """x_nchw: (N, C, H, W) float32, matching the PyTorch module interface."""
  N, C, H, W = x_nchw.shape
  HW = H * W

  if tq is None:
    tq = 256 if HW % 256 == 0 else (128 if HW % 128 == 0 else HW)
  if tkv is None:
    tkv = 512 if HW % 512 == 0 else (
        256 if HW % 256 == 0 else (128 if HW % 128 == 0 else HW))
  # TODO(synk): non-multiple spatial sizes would need padding + masking of the
  # softmax over padded keys; not required for the shapes exercised here.
  assert HW % tq == 0 and HW % tkv == 0

  # NCHW -> (N, HW, C) slab (pixel index = h*W + w, same as torch .view()).
  x2d = jnp.transpose(x_nchw, (0, 2, 3, 1)).reshape(N, HW, C).astype(jnp.float32)

  wq = params["wq"].astype(jnp.float32)   # (C, Cq)
  wk = params["wk"].astype(jnp.float32)   # (C, Cq)
  wv = params["wv"].astype(jnp.float32)   # (C, C)
  bq = params["bq"].astype(jnp.float32)   # (Cq,)
  bv = params["bv"].astype(jnp.float32)   # (C,)
  # bk drops out: it adds a per-query-row constant to the energy, which the
  # softmax is invariant to.

  # Fold the key projection into the energy weight (f32 fold, bf16 stream).
  w_e = (wq @ wk.T).astype(jnp.bfloat16)            # (C, C)
  b_e = (bq @ wk.T).reshape(1, C).astype(jnp.float32)

  # Precompute V once (plain XLA matmul), stream keys/values as bf16.
  v2d = (x2d @ wv + bv).astype(jnp.bfloat16)        # (N, HW, C)
  xf_bf = x2d.astype(jnp.bfloat16)                  # (N, HW, C) key stream

  gamma = jnp.asarray(params["gamma"], jnp.float32).reshape(1, 1)

  grid = (N, HW // tq, HW // tkv)

  out2d = pl.pallas_call(
      _dam_position_kernel,
      out_shape=jax.ShapeDtypeStruct((N, HW, C), jnp.float32),
      grid=grid,
      in_specs=[
          pl.BlockSpec((1, tq, C), lambda n, qi, ki: (n, qi, 0)),   # x query tile (f32)
          pl.BlockSpec((C, C), lambda n, qi, ki: (0, 0)),           # W_e (bf16)
          pl.BlockSpec((1, C), lambda n, qi, ki: (0, 0)),           # b_e (f32)
          pl.BlockSpec((1, tkv, C), lambda n, qi, ki: (n, ki, 0)),  # keys (bf16)
          pl.BlockSpec((1, tkv, C), lambda n, qi, ki: (n, ki, 0)),  # values (bf16)
          pl.BlockSpec(memory_space=pltpu.MemorySpace.SMEM),        # gamma scalar
      ],
      out_specs=pl.BlockSpec((1, tq, C), lambda n, qi, ki: (n, qi, 0)),
      scratch_shapes=[
          pltpu.VMEM((tq, C), jnp.bfloat16),   # cached folded query projection
          pltpu.VMEM((tq, 1), jnp.float32),    # running max
          pltpu.VMEM((tq, 1), jnp.float32),    # running sum
          pltpu.VMEM((tq, C), jnp.float32),    # output accumulator
      ],
      compiler_params=pltpu.CompilerParams(
          dimension_semantics=("parallel", "parallel", "arbitrary")),
  )(x2d, w_e, b_e, xf_bf, v2d, gamma)

  return jnp.transpose(out2d.reshape(N, H, W, C), (0, 3, 1, 2))


# ---------------- pure-JAX reference (for verification) ----------------------
def reference(x_nchw, p):
  N, C, H, W = x_nchw.shape
  xf = jnp.transpose(x_nchw, (0, 2, 3, 1)).reshape(N, H * W, C)
  q = xf @ p["wq"] + p["bq"]
  k = xf @ p["wk"] + p["bk"]
  v = xf @ p["wv"] + p["bv"]
  e = jnp.einsum("nic,njc->nij", q, k)
  a = jax.nn.softmax(e, axis=-1)
  o = jnp.einsum("nij,njc->nic", a, v)
  out = p["gamma"] * o + xf
  return jnp.transpose(out.reshape(N, H, W, C), (0, 3, 1, 2))


if __name__ == "__main__":
  key = jax.random.PRNGKey(0)
  kx, kq, kk, kv, kbq, kbk, kbv = jax.random.split(key, 7)

  # in_dim must be >= 8 for the module (query/key channels = in_dim // 8).
  N, C, H, W = 2, 32, 16, 16
  Cq = C // 8

  x = jax.random.normal(kx, (N, C, H, W), dtype=jnp.float32)
  params = {
      "wq": (jax.random.normal(kq, (C, Cq)) * 0.1).astype(jnp.float32),
      "bq": (jax.random.normal(kbq, (Cq,)) * 0.05).astype(jnp.float32),
      "wk": (jax.random.normal(kk, (C, Cq)) * 0.1).astype(jnp.float32),
      "bk": (jax.random.normal(kbk, (Cq,)) * 0.05).astype(jnp.float32),
      "wv": (jax.random.normal(kv, (C, C)) * 0.1).astype(jnp.float32),
      "bv": (jax.random.normal(kbv, (C,)) * 0.05).astype(jnp.float32),
      # nn.Parameter(torch.zeros(1)) in the module; set nonzero so the
      # attention path is actually exercised by the numerical check.
      "gamma": 0.5,
  }

  # jit the whole wrapper so the NCHW<->NHWC transposes / V projection can be
  # scheduled and fused by XLA around the pallas_call.
  fn = jax.jit(dam_position)
  out = jax.block_until_ready(fn(x, params))
  ref = reference(x, params)
  np.testing.assert_allclose(np.asarray(out), np.asarray(ref),
                             atol=2e-2, rtol=2e-2)
  print("KERNEL_OK")
</pallas_src>

<mosaic_0001>
module attributes {stable_mosaic.version = 11 : i64} {
  func.func @_dam_position_kernel(%arg0: i32, %arg1: i32, %arg2: i32, %arg3: memref<1x256x32xf32, #tpu.memory_space<vmem>>, %arg4: memref<32x32xbf16, #tpu.memory_space<vmem>>, %arg5: memref<1x32xf32, #tpu.memory_space<vmem>>, %arg6: memref<1x256x32xbf16, #tpu.memory_space<vmem>>, %arg7: memref<1x256x32xbf16, #tpu.memory_space<vmem>>, %arg8: memref<1x1xf32, #tpu.memory_space<smem>>, %arg9: memref<1x256x32xf32, #tpu.memory_space<vmem>>, %arg10: memref<256x32xbf16, #tpu.memory_space<vmem>>, %arg11: memref<256x1xf32, #tpu.memory_space<vmem>>, %arg12: memref<256x1xf32, #tpu.memory_space<vmem>>, %arg13: memref<256x32xf32, #tpu.memory_space<vmem>>) attributes {dimension_semantics = [#tpu.dimension_semantics<parallel>, #tpu.dimension_semantics<parallel>, #tpu.dimension_semantics<arbitrary>], iteration_bounds = array<i64: 2, 1, 1>, scalar_prefetch = 0 : i64, scratch_operands = 4 : i64, tpu.core_type = #tpu.core_type<tc>, window_params = [{transform_indices = @transform_0, window_bounds = array<i64: 1, 256, 32>}, {pipeline_mode = #tpu.pipeline_mode<synchronous>, transform_indices = @transform_1, window_bounds = array<i64: 32, 32>}, {pipeline_mode = #tpu.pipeline_mode<synchronous>, transform_indices = @transform_2, window_bounds = array<i64: 1, 32>}, {transform_indices = @transform_3, window_bounds = array<i64: 1, 256, 32>}, {transform_indices = @transform_4, window_bounds = array<i64: 1, 256, 32>}, {transform_indices = @transform_5, window_bounds = array<i64: 1, 1>}, {transform_indices = @transform_6, window_bounds = array<i64: 1, 256, 32>}]} {
    %c0_i32 = arith.constant 0 : i32
    %0 = arith.cmpi eq, %arg2, %c0_i32 : i32
    %1 = arith.extui %0 : i1 to i32
    %c0_i32_0 = arith.constant 0 : i32
    %2 = arith.cmpi ne, %1, %c0_i32_0 : i32
    scf.if %2 {
      %c0_27 = arith.constant 0 : index
      %c0_28 = arith.constant 0 : index
      %c0_29 = arith.constant 0 : index
      %36 = vector.load %arg3[%c0_27, %c0_28, %c0_29] : memref<1x256x32xf32, #tpu.memory_space<vmem>>, vector<1x256x32xf32>
      %37 = vector.shape_cast %36 : vector<1x256x32xf32> to vector<256x32xf32>
      %38 = arith.truncf %37 : vector<256x32xf32> to vector<256x32xbf16>
      %c0_30 = arith.constant 0 : index
      %c0_31 = arith.constant 0 : index
      %39 = vector.load %arg4[%c0_30, %c0_31] : memref<32x32xbf16, #tpu.memory_space<vmem>>, vector<32x32xbf16>
      %cst_32 = arith.constant dense<0.000000e+00> : vector<256x32xf32>
      %40 = tpu.matmul %38, %39, %cst_32 {dimension_numbers = #tpu.dot_dimension_numbers<[1], [0], [0], [1], [0, 0, 1, 1], [], []>} : vector<256x32xbf16>, vector<32x32xbf16>, vector<256x32xf32> -> vector<256x32xf32>
      %c0_33 = arith.constant 0 : index
      %c0_34 = arith.constant 0 : index
      %41 = vector.load %arg5[%c0_33, %c0_34] : memref<1x32xf32, #tpu.memory_space<vmem>>, vector<1x32xf32>
      %42 = vector.broadcast %41 : vector<1x32xf32> to vector<256x32xf32>
      %43 = arith.addf %40, %42 : vector<256x32xf32>
      %44 = arith.truncf %43 : vector<256x32xf32> to vector<256x32xbf16>
      %c0_35 = arith.constant 0 : index
      %c0_36 = arith.constant 0 : index
      %45 = vector.load %arg10[%c0_35, %c0_36] : memref<256x32xbf16, #tpu.memory_space<vmem>>, vector<256x32xbf16>
      tpu.vector_store %arg10[%c0_35, %c0_36], %44 {strides = array<i32>} : memref<256x32xbf16, #tpu.memory_space<vmem>>, vector<256x32xbf16>,
      %cst_37 = arith.constant 0xFF800000 : f32
      %46 = vector.broadcast %cst_37 : f32 to vector<256x1xf32>
      %c0_38 = arith.constant 0 : index
      %c0_39 = arith.constant 0 : index
      %47 = vector.load %arg11[%c0_38, %c0_39] : memref<256x1xf32, #tpu.memory_space<vmem>>, vector<256x1xf32>
      tpu.vector_store %arg11[%c0_38, %c0_39], %46 {strides = array<i32>} : memref<256x1xf32, #tpu.memory_space<vmem>>, vector<256x1xf32>,
      %cst_40 = arith.constant 0.000000e+00 : f32
      %48 = vector.broadcast %cst_40 : f32 to vector<256x1xf32>
      %c0_41 = arith.constant 0 : index
      %c0_42 = arith.constant 0 : index
      %49 = vector.load %arg12[%c0_41, %c0_42] : memref<256x1xf32, #tpu.memory_space<vmem>>, vector<256x1xf32>
      tpu.vector_store %arg12[%c0_41, %c0_42], %48 {strides = array<i32>} : memref<256x1xf32, #tpu.memory_space<vmem>>, vector<256x1xf32>,
      %cst_43 = arith.constant 0.000000e+00 : f32
      %50 = vector.broadcast %cst_43 : f32 to vector<256x32xf32>
      %c0_44 = arith.constant 0 : index
      %c0_45 = arith.constant 0 : index
      %51 = vector.load %arg13[%c0_44, %c0_45] : memref<256x32xf32, #tpu.memory_space<vmem>>, vector<256x32xf32>
      tpu.vector_store %arg13[%c0_44, %c0_45], %50 {strides = array<i32>} : memref<256x32xf32, #tpu.memory_space<vmem>>, vector<256x32xf32>,
    } else {
    }
    %c0 = arith.constant 0 : index
    %c0_1 = arith.constant 0 : index
    %3 = vector.load %arg10[%c0, %c0_1] : memref<256x32xbf16, #tpu.memory_space<vmem>>, vector<256x32xbf16>
    %c0_2 = arith.constant 0 : index
    %c0_3 = arith.constant 0 : index
    %c0_4 = arith.constant 0 : index
    %4 = vector.load %arg6[%c0_2, %c0_3, %c0_4] : memref<1x256x32xbf16, #tpu.memory_space<vmem>>, vector<1x256x32xbf16>
    %5 = vector.shape_cast %4 : vector<1x256x32xbf16> to vector<256x32xbf16>
    %cst = arith.constant dense<0.000000e+00> : vector<256x256xf32>
    %6 = tpu.matmul %3, %5, %cst {dimension_numbers = #tpu.dot_dimension_numbers<[1], [1], [0], [0], [0, 0, 1, 0], [], []>} : vector<256x32xbf16>, vector<256x32xbf16>, vector<256x256xf32> -> vector<256x256xf32>
    %c0_5 = arith.constant 0 : index
    %c0_6 = arith.constant 0 : index
    %7 = vector.load %arg11[%c0_5, %c0_6] : memref<256x1xf32, #tpu.memory_space<vmem>>, vector<256x1xf32>
    %cst_7 = arith.constant dense<0xFF800000> : vector<256xf32>
    %8 = vector.multi_reduction <maximumf>, %6, %cst_7 [1] : vector<256x256xf32> to vector<256xf32>
    %9 = vector.shape_cast %8 : vector<256xf32> to vector<256x1xf32>
    %10 = arith.maximumf %7, %9 : vector<256x1xf32>
    %c0_8 = arith.constant 0 : index
    %c0_9 = arith.constant 0 : index
    %11 = vector.load %arg11[%c0_8, %c0_9] : memref<256x1xf32, #tpu.memory_space<vmem>>, vector<256x1xf32>
    %12 = arith.subf %11, %10 : vector<256x1xf32>
    %13 = math.exp %12 : vector<256x1xf32>
    %14 = vector.broadcast %10 : vector<256x1xf32> to vector<256x256xf32>
    %15 = arith.subf %6, %14 : vector<256x256xf32>
    %16 = math.exp %15 : vector<256x256xf32>
    %c0_10 = arith.constant 0 : index
    %c0_11 = arith.constant 0 : index
    %17 = vector.load %arg12[%c0_10, %c0_11] : memref<256x1xf32, #tpu.memory_space<vmem>>, vector<256x1xf32>
    %18 = arith.mulf %13, %17 : vector<256x1xf32>
    %cst_12 = arith.constant dense<0.000000e+00> : vector<256xf32>
    %19 = vector.multi_reduction <add>, %16, %cst_12 [1] : vector<256x256xf32> to vector<256xf32>
    %20 = vector.shape_cast %19 : vector<256xf32> to vector<256x1xf32>
    %21 = arith.addf %18, %20 : vector<256x1xf32>
    %c0_13 = arith.constant 0 : index
    %c0_14 = arith.constant 0 : index
    %22 = vector.load %arg12[%c0_13, %c0_14] : memref<256x1xf32, #tpu.memory_space<vmem>>, vector<256x1xf32>
    tpu.vector_store %arg12[%c0_13, %c0_14], %21 {strides = array<i32>} : memref<256x1xf32, #tpu.memory_space<vmem>>, vector<256x1xf32>,
    %c0_15 = arith.constant 0 : index
    %c0_16 = arith.constant 0 : index
    %23 = vector.load %arg13[%c0_15, %c0_16] : memref<256x32xf32, #tpu.memory_space<vmem>>, vector<256x32xf32>
    %24 = vector.broadcast %13 : vector<256x1xf32> to vector<256x32xf32>
    %25 = arith.mulf %24, %23 : vector<256x32xf32>
    %26 = arith.truncf %16 : vector<256x256xf32> to vector<256x256xbf16>
    %c0_17 = arith.constant 0 : index
    %c0_18 = arith.constant 0 : index
    %c0_19 = arith.constant 0 : index
    %27 = vector.load %arg7[%c0_17, %c0_18, %c0_19] : memref<1x256x32xbf16, #tpu.memory_space<vmem>>, vector<1x256x32xbf16>
    %28 = vector.shape_cast %27 : vector<1x256x32xbf16> to vector<256x32xbf16>
    %cst_20 = arith.constant dense<0.000000e+00> : vector<256x32xf32>
    %29 = tpu.matmul %26, %28, %cst_20 {dimension_numbers = #tpu.dot_dimension_numbers<[1], [0], [0], [1], [0, 0, 1, 1], [], []>} : vector<256x256xbf16>, vector<256x32xbf16>, vector<256x32xf32> -> vector<256x32xf32>
    %30 = arith.addf %25, %29 : vector<256x32xf32>
    %c0_21 = arith.constant 0 : index
    %c0_22 = arith.constant 0 : index
    %31 = vector.load %arg13[%c0_21, %c0_22] : memref<256x32xf32, #tpu.memory_space<vmem>>, vector<256x32xf32>
    tpu.vector_store %arg13[%c0_21, %c0_22], %30 {strides = array<i32>} : memref<256x32xf32, #tpu.memory_space<vmem>>, vector<256x32xf32>,
    %c0_23 = arith.constant 0 : index
    %c0_24 = arith.constant 0 : index
    %32 = vector.load %arg11[%c0_23, %c0_24] : memref<256x1xf32, #tpu.memory_space<vmem>>, vector<256x1xf32>
    tpu.vector_store %arg11[%c0_23, %c0_24], %10 {strides = array<i32>} : memref<256x1xf32, #tpu.memory_space<vmem>>, vector<256x1xf32>,
    %c0_i32_25 = arith.constant 0 : i32
    %33 = arith.cmpi eq, %arg2, %c0_i32_25 : i32
    %34 = arith.extui %33 : i1 to i32
    %c0_i32_26 = arith.constant 0 : i32
    %35 = arith.cmpi ne, %34, %c0_i32_26 : i32
    scf.if %35 {
      %c0_27 = arith.constant 0 : index
      %c0_28 = arith.constant 0 : index
      %36 = vector.load %arg13[%c0_27, %c0_28] : memref<256x32xf32, #tpu.memory_space<vmem>>, vector<256x32xf32>
      %c0_29 = arith.constant 0 : index
      %c0_30 = arith.constant 0 : index
      %37 = vector.load %arg12[%c0_29, %c0_30] : memref<256x1xf32, #tpu.memory_space<vmem>>, vector<256x1xf32>
      %38 = tpu.reciprocal %37 {approx = true} : vector<256x1xf32> -> vector<256x1xf32>
      %39 = vector.broadcast %38 : vector<256x1xf32> to vector<256x32xf32>
      %40 = arith.mulf %36, %39 : vector<256x32xf32>
      %c0_31 = arith.constant 0 : index
      %c0_32 = arith.constant 0 : index
      %41 = memref.load %arg8[%c0_31, %c0_32] : memref<1x1xf32, #tpu.memory_space<smem>>
      %42 = vector.broadcast %41 : f32 to vector<256x32xf32>
      %43 = arith.mulf %42, %40 : vector<256x32xf32>
      %c0_33 = arith.constant 0 : index
      %c0_34 = arith.constant 0 : index
      %c0_35 = arith.constant 0 : index
      %44 = vector.load %arg3[%c0_33, %c0_34, %c0_35] : memref<1x256x32xf32, #tpu.memory_space<vmem>>, vector<1x256x32xf32>
      %45 = vector.shape_cast %44 : vector<1x256x32xf32> to vector<256x32xf32>
      %46 = arith.addf %43, %45 : vector<256x32xf32>
      %c0_36 = arith.constant 0 : index
      %c0_37 = arith.constant 0 : index
      %c0_38 = arith.constant 0 : index
      %47 = vector.load %arg9[%c0_36, %c0_37, %c0_38] : memref<1x256x32xf32, #tpu.memory_space<vmem>>, vector<1x256x32xf32>
      %48 = vector.shape_cast %47 : vector<1x256x32xf32> to vector<256x32xf32>
      %49 = vector.shape_cast %46 : vector<256x32xf32> to vector<1x256x32xf32>
      tpu.vector_store %arg9[%c0_36, %c0_37, %c0_38], %49 {strides = array<i32>} : memref<1x256x32xf32, #tpu.memory_space<vmem>>, vector<1x256x32xf32>,
    } else {
    }
    return
  }
  func.func @transform_0(%arg0: i32, %arg1: i32, %arg2: i32) -> (i32, i32, i32) {
    %c0_i32 = arith.constant 0 : i32
    %c0_i32_0 = arith.constant 0 : i32
    return %arg0, %arg1, %c0_i32 : i32, i32, i32
  }
  func.func @transform_1(%arg0: i32, %arg1: i32, %arg2: i32) -> (i32, i32) {
    %c0_i32 = arith.constant 0 : i32
    %c0_i32_0 = arith.constant 0 : i32
    %c0_i32_1 = arith.constant 0 : i32
    return %c0_i32, %c0_i32_0 : i32, i32
  }
  func.func @transform_2(%arg0: i32, %arg1: i32, %arg2: i32) -> (i32, i32) {
    %c0_i32 = arith.constant 0 : i32
    %c0_i32_0 = arith.constant 0 : i32
    %c0_i32_1 = arith.constant 0 : i32
    return %c0_i32, %c0_i32_0 : i32, i32
  }
  func.func @transform_3(%arg0: i32, %arg1: i32, %arg2: i32) -> (i32, i32, i32) {
    %c0_i32 = arith.constant 0 : i32
    %c0_i32_0 = arith.constant 0 : i32
    return %arg0, %arg2, %c0_i32 : i32, i32, i32
  }
  func.func @transform_4(%arg0: i32, %arg1: i32, %arg2: i32) -> (i32, i32, i32) {
    %c0_i32 = arith.constant 0 : i32
    %c0_i32_0 = arith.constant 0 : i32
    return %arg0, %arg2, %c0_i32 : i32, i32, i32
  }
  func.func @transform_5(%arg0: i32, %arg1: i32, %arg2: i32) -> (i32, i32) {
    %c0_i32 = arith.constant 0 : i32
    %c0_i32_0 = arith.constant 0 : i32
    %c0_i32_1 = arith.constant 0 : i32
    return %c0_i32, %c0_i32_0 : i32, i32
  }
  func.func @transform_6(%arg0: i32, %arg1: i32, %arg2: i32) -> (i32, i32, i32) {
    %c0_i32 = arith.constant 0 : i32
    %c0_i32_0 = arith.constant 0 : i32
    return %arg0, %arg1, %c0_i32 : i32, i32, i32
  }
}

</mosaic_0001>

<bundles_post_ra>
// kernel: dam_position.1
= control target key start
LH: loop header
LB: loop body
LE: loop exit
PB: predicated region body
PF: predicated region fallthrough
CT: control target
= control target key end

     0   :  { %s6054_s0 = inlined_call_operand.vmem [shape: f32[2,256,32], index: 0, kind: input, shape index: {}]   ;;  %s6055_s1 = inlined_call_operand.vmem [shape: bf16[32,32], index: 1, kind: input, shape index: {}]   ;;  %s6056_s2 = inlined_call_operand.vmem [shape: f32[1,32], index: 2, kind: input, shape index: {}]   ;;  %s6057_s3 = inlined_call_operand.vmem [shape: bf16[2,256,32], index: 3, kind: input, shape index: {}]   ;;  %s6058_s4 = inlined_call_operand.vmem [shape: bf16[2,256,32], index: 4, kind: input, shape index: {}]   ;;  %s6059_s5 = inlined_call_operand.<no memory space> [shape: f32[1,1], index: 5, kind: input, shape index: {}]   ;;  %s6060_s6 = inlined_call_operand.hbm [shape: f32[2,256,32], index: 6, kind: output, shape index: {}]  }
   0x1   :  { %11 = sst [smem:[#allocation6]] %s6059_s5 }
   0x2   :  { %12 = vsyncpa [#allocation8], 0 }
   0x3   :  { %14 = vsyncpa [#allocation8 + $0x1], 0  ;;  %s4328_s23 = smov 0   ;;  %s4330_s24 = smov 0  }
   0x4   :  { %s4332_s25 = smov 0   ;;  %s4334_s26 = smov 0  }
   0x5   :  { %s4336_s27 = smov 0   ;;  %s4338_s28 = smov 0  }
   0x6 LB: > { %s3448_s5 = sadd.s32 4294967295, %s4282_s28   ;;  %s3449_s29 = sadd.s32 4294967294, %s4282_s28   ;;  %s4282_s28 = sphi %s4338_s28, %s20_s28   ;;  %s4278_s27 = sphi %s4336_s27, %s6316_s27   ;;  %s4274_s26 = sphi %s4334_s26, %s6315_s26   ;;  %s4270_s25 = sphi %s4332_s25, %s6314_s25   ;;  %s4266_s24 = sphi %s4330_s24, %s6313_s24   ;;  %s4262_s23 = sphi %s4328_s23, %s6312_s23  }
   0x7   : > { %s39_s30 = sadd.s32 1, %s4278_s27  ;;  %s195_s7 = sadd.s32 1, %s4270_s25 }
   0x8   : > { %p41_p0 = scmp.ge.s32.totalorder %s39_s30, 2  ;;  %p205_p1 = scmp.ne.s32.totalorder %s4270_s25, %s4266_s24 }
   0x9   : > { %p206_p2 = scmp.eq.s32.totalorder %s3448_s5, 1  ;;  %p211_p3 = scmp.ne.s32.totalorder %s4266_s24, %s4262_s23 }
   0xa   : > { %s6318_s30 = smov (%p41_p0, %s39_s30), 0  ;;  %p212_p5 = scmp.eq.s32.totalorder %s3449_s29, 1 }
   0xb   : > { %p4368_p4 = por %p206_p2, %p205_p1  ;;  %s190_s9 = ssub.s32 %s4278_s27, %s6318_s30 }
   0xc   : > { %p3452_p6 = scmp.ge.s32.totalorder %s4282_s28, 1  ;;  %p193_p7 = scmp.eq.s32.totalorder %s190_s9, 0 }
   0xd   : > { %p4375_p8 = por %p212_p5, %p211_p3  ;;  %p278_p9 = scmp.lt.s32.totalorder %s4282_s28, 3 }
   0xe   : > { %s4381_s11 = scalar_select %p193_p7, %s4270_s25, %s195_s7  }
   0xf   : > { %p279_p10 = pnand %p3452_p6, %p278_p9 }
  0x11   : > { %282 = sbr.rel (%p279_p10) target bundleno = 1164 (0x48c), region = 44 }
  0x16   : > { %v3900_v0 = vld [vmem:[%s6055_s1 + $0x8] sm:$0xff]   ;;  %p331_p11 = scmp.lt.s32.totalorder %s4274_s26, 1  ;;  %v3901_v1 = vld [vmem:[%s6055_s1] sm:$0xff]   ;;  %vm437_vm0 = vcmask 261120   ;;  %vm775_vm1 = vcmask 257024   ;;  %vm808_vm2 = vcmask 7168  }
  0x17   : > { %3794 = vmatprep.subr.bf16.mxu0 %v3900_v0  ;;  %s3184_s15 = sld [smem:[#allocation6]]  ;;  %s3615_s19 = sshll.u32 %s4274_s26, 12 }
  0x18   : > { %s4391_s16 = scalar_select %p331_p11, %s4274_s26, 1  ;;  %3795 = vmatpush3.bf16.msra.mxu0 %v3900_v0 }
  0x19   : > { %3796 = vmatprep.subr.bf16.mxu0 %v3901_v1  ;;  %s4287_s7 = smov [#allocation7]  }
  0x1a   : > { %s3580_s17 = sshll.u32 %s4391_s16, 8  ;;  %s3581_s21 = sshll.u32 %s4391_s16, 7 }
  0x1b   : > { %s4397_s20 = scalar_lea.vmem %s6054_s0, %s3580_s17  ;;  %s4418_s29 = scalar_lea.vmem %s6057_s3, %s3581_s21 }
  0x1c   : > { %v366_v2 = vld [vmem:[%s4397_s20] sm:$0xff]  ;;  %v367_v3 = vld [vmem:[%s4397_s20 + $0x8] sm:$0xff]  ;;  %v368_v4 = vld [vmem:[%s4397_s20 + $0x10] sm:$0xff]  ;;  %3797 = vmatpush3.bf16.msra.mxu0 %v3901_v1  ;;  %s4447_s12 = scalar_lea.vmem %s6058_s4, %s3581_s21  ;;  %s327_s16 = sand.u32 1, %s4266_s24  }
  0x1d   : > { %v398_v5 = vpack.c.bf16 %v367_v3, %v366_v2  ;;  %v369_v6 = vld [vmem:[%s4397_s20 + $0x18] sm:$0xff]  ;;  %v370_v7 = vld [vmem:[%s4397_s20 + $0x20] sm:$0xff]  ;;  %v371_v8 = vld [vmem:[%s4397_s20 + $0x28] sm:$0xff]  ;;  %s3453_s17 = sshll.u32 %s327_s16, 8  ;;  %s6009_s26 = scalar_lea.sflag [#allocation8], %s327_s16 }
  0x1e   : > { %v399_v9 = vpack.c.bf16 %v369_v6, %v368_v4  ;;  %v400_v10 = vpack.c.bf16 %v371_v8, %v370_v7  ;;  %v372_v11 = vld [vmem:[%s4397_s20 + $0x30] sm:$0xff]  ;;  %v373_v12 = vld [vmem:[%s4397_s20 + $0x38] sm:$0xff]  ;;  %v374_v13 = vld [vmem:[%s4397_s20 + $0x40] sm:$0xff]  ;;  %s5870_s18 = scalar_lea.vmem [#allocation7], %s3453_s17  ;;  %s4210_s9 = sshll.u32 %s4287_s7, 4  ;;  %s4211_s9 = int_to_ptr.vmem [resolvable:$false] %s4210_s9 }
  0x1f   : > { %3798 = vmatprep.mubr.msk.bf16.mxu0 %vm437_vm0, %v398_v5  ;;  %v375_v14 = vld [vmem:[%s4397_s20 + $0x48] sm:$0xff]  ;;  %v401_v15 = vpack.c.bf16 %v373_v12, %v372_v11  ;;  %v376_v17 = vld [vmem:[%s4397_s20 + $0x50] sm:$0xff]  ;;  %v377_v18 = vld [vmem:[%s4397_s20 + $0x58] sm:$0xff]  ;;  %s3330_s21 = sshll.u32 %s5870_s18, 4  ;;  %s6001_s21 = int_to_ptr.vmem [resolvable:$true] %s3330_s21 }
  0x20   : > { %3799 = vmatmul.mubr.msk.bf16.vlgmr.msra.gmra.mxu0 %vm437_vm0, %v399_v9  ;;  %v402_v16 = vpack.c.bf16 %v375_v14, %v374_v13  ;;  %v3902_v19 = vld [vmem:[%s4418_s29 + $0x78] sm:$0xff]   ;;  %v378_v20 = vld [vmem:[%s4397_s20 + $0x60] sm:$0xff]  ;;  %v3904_v22 = vld [vmem:[%s4418_s29 + $0x70] sm:$0xff]   ;;  %v403_v25 = vpack.c.bf16 %v377_v18, %v376_v17  ;;  %p4213_p1 = scmp.lt.s32.totalorder %s6001_s21, %s4211_s9 }
  0x21   : > { %3802 = vmatprep.mubr.msk.bf16.mxu0 %vm437_vm0, %v400_v10  ;;  %v3903_v21 = vld [vmem:[%s4418_s29 + $0x38] sm:$0xff]   ;;  %3830 = vmatprep.subr.msk.bf16.mxu1 %vm437_vm0, %v3902_v19  ;;  %v379_v23 = vld [vmem:[%s4397_s20 + $0x68] sm:$0xff]  ;;  %v3905_v26 = vld [vmem:[%s4418_s29 + $0x30] sm:$0xff]  }
  0x22   : > { %v1200_v24 = vsel %vm437_vm0, %v3903_v21, 0  ;;  %v404_v27 = vpack.c.bf16 %v379_v23, %v378_v20  ;;  %v380_v28 = vld [vmem:[%s4397_s20 + $0x70] sm:$0xff]  ;;  %v381_v29 = vld [vmem:[%s4397_s20 + $0x78] sm:$0xff]  ;;  %v3906_v30 = vld [vmem:[%s4418_s29 + $0x68] sm:$0xff]   ;;  %v1197_v31 = vsel %vm437_vm0, %v3905_v26, 0 }
  0x23   : > { %3635 = vmatpush3.bf16.xpose.msra.mxu1 %v1200_v24  ;;  %v3907_v32 = vld [vmem:[%s4418_s29 + $0x28] sm:$0xff]   ;;  %v382_v33 = vld [vmem:[%s4397_s20 + $0x80] sm:$0xff]  ;;  %v405_v35 = vpack.c.bf16 %v381_v29, %v380_v28  ;;  %v384_v39 = vld [vmem:[%s4397_s20 + $0x90] sm:$0xff] }
  0x24   : > { %3831 = vmatprep.subr.msk.bf16.mxu1 %vm437_vm0, %v3904_v22  ;;  %v383_v34 = vld [vmem:[%s4397_s20 + $0x88] sm:$0xff]  ;;  %v1194_v36 = vsel %vm437_vm0, %v3907_v32, 0  ;;  %v3908_v38 = vld [vmem:[%s4418_s29 + $0x60] sm:$0xff]   ;;  %v385_v40 = vld [vmem:[%s4397_s20 + $0x98] sm:$0xff] }
  0x25   : > { %v406_v37 = vpack.c.bf16 %v383_v34, %v382_v33  ;;  %v386_v41 = vld [vmem:[%s4397_s20 + $0xa0] sm:$0xff]  ;;  %v387_v42 = vld [vmem:[%s4397_s20 + $0xa8] sm:$0xff]  ;;  %v407_v44 = vpack.c.bf16 %v385_v40, %v384_v39  ;;  %v3910_v47 = vld [vmem:[%s4418_s29 + $0x58] sm:$0xff]  }
  0x26   : > { %v3909_v43 = vld [vmem:[%s4418_s29 + $0x20] sm:$0xff]   ;;  %v408_v45 = vpack.c.bf16 %v387_v42, %v386_v41  ;;  %v388_v48 = vld [vmem:[%s4397_s20 + $0xb0] sm:$0xff]  ;;  %v389_v49 = vld [vmem:[%s4397_s20 + $0xb8] sm:$0xff] }
  0x27   : > { %v1191_v46 = vsel %vm437_vm0, %v3909_v43, 0  ;;  %v390_v50 = vld [vmem:[%s4397_s20 + $0xc0] sm:$0xff]  ;;  %v391_v51 = vld [vmem:[%s4397_s20 + $0xc8] sm:$0xff]  ;;  %v409_v52 = vpack.c.bf16 %v389_v49, %v388_v48  ;;  %v3911_v53 = vld [vmem:[%s4418_s29 + $0x18] sm:$0xff]  }
  0x28   : > { %3803 = vmatmul.mubr.msk.bf16.gmra.mxu0 %vm437_vm0, %v401_v15  ;;  %v410_v54 = vpack.c.bf16 %v391_v51, %v390_v50  ;;  %v1188_v55 = vsel %vm437_vm0, %v3911_v53, 0  ;;  %v3912_v56 = vld [vmem:[%s4418_s29 + $0x50] sm:$0xff]   ;;  %v393_v58 = vld [vmem:[%s4397_s20 + $0xd8] sm:$0xff]  ;;  %v394_v59 = vld [vmem:[%s4397_s20 + $0xe0] sm:$0xff] }
  0x29   : > { %3806 = vmatprep.mubr.msk.bf16.mxu0 %vm437_vm0, %v402_v16  ;;  %v392_v57 = vld [vmem:[%s4397_s20 + $0xd0] sm:$0xff]  ;;  %v395_v60 = vld [vmem:[%s4397_s20 + $0xe8] sm:$0xff]  ;;  %v397_v2 = vld [vmem:[%s4397_s20 + $0xf8] sm:$0xff] }
  0x2a   : > { %v411_v61 = vpack.c.bf16 %v393_v58, %v392_v57  ;;  %v3913_v62 = vld [vmem:[%s4418_s29 + $0x10] sm:$0xff]   ;;  %v412_v63 = vpack.c.bf16 %v395_v60, %v394_v59  ;;  %v3914_v4 = vld [vmem:[%s4418_s29 + $0x48] sm:$0xff]   ;;  %v3916_v7 = vld [vmem:[%s4418_s29 + $0x40] sm:$0xff]  }
  0x2b   : > { %3637 = vmatpush3.bf16.xpose.msra.mxu1 %v1197_v31  ;;  %v1185_v0 = vsel %vm437_vm0, %v3913_v62, 0  ;;  %v396_v1 = vld [vmem:[%s4397_s20 + $0xf0] sm:$0xff]  ;;  %v3915_v5 = vld [vmem:[%s4418_s29 + $0x8] sm:$0xff]   ;;  %v3917_v8 = vld [vmem:[%s4418_s29] sm:$0xff]   ;;  %s5999_s29 = scalar_lea.hbm %s6060_s6, %s3615_s19 }
  0x2c   : > { %3832 = vmatprep.subr.msk.bf16.mxu1 %vm437_vm0, %v3906_v30  ;;  %v413_v3 = vpack.c.bf16 %v397_v2, %v396_v1  ;;  %v1182_v6 = vsel %vm437_vm0, %v3915_v5, 0  ;;  %v1179_v9 = vsel %vm437_vm0, %v3917_v8, 0  ;;  %v4497_v10 = vld [vmem:[%s6056_s2] ss:$0 sm:$0xff] }
  0x30   : > { %3807 = vmatmul.mubr.msk.bf16.gmra.mxu0 %vm437_vm0, %v403_v25 }
  0x31   : > { %3810 = vmatprep.mubr.msk.bf16.mxu0 %vm437_vm0, %v404_v27 }
  0x33   : > { %3639 = vmatpush3.bf16.xpose.msra.mxu1 %v1194_v36 }
  0x34   : > { %3833 = vmatprep.subr.msk.bf16.mxu1 %vm437_vm0, %v3908_v38 }
  0x38   : > { %3811 = vmatmul.mubr.msk.bf16.gmra.mxu0 %vm437_vm0, %v405_v35 }
  0x39   : > { %3814 = vmatprep.mubr.msk.bf16.mxu0 %vm437_vm0, %v406_v37 }
  0x3b   : > { %3641 = vmatpush3.bf16.xpose.msra.mxu1 %v1191_v46 }
  0x3c   : > { %3834 = vmatprep.subr.msk.bf16.mxu1 %vm437_vm0, %v3910_v47 }
  0x40   : > { %3815 = vmatmul.mubr.msk.bf16.gmra.mxu0 %vm437_vm0, %v407_v44 }
  0x41   : > { %3818 = vmatprep.mubr.msk.bf16.mxu0 %vm437_vm0, %v408_v45 }
  0x43   : > { %3643 = vmatpush3.bf16.xpose.msra.mxu1 %v1188_v55 }
  0x44   : > { %3835 = vmatprep.subr.msk.bf16.mxu1 %vm437_vm0, %v3912_v56 }
  0x48   : > { %3819 = vmatmul.mubr.msk.bf16.gmra.mxu0 %vm437_vm0, %v409_v52 }
  0x49   : > { %3822 = vmatprep.mubr.msk.bf16.mxu0 %vm437_vm0, %v410_v54 }
  0x4b   : > { %3645 = vmatpush3.bf16.xpose.msra.mxu1 %v1185_v0 }
  0x4c   : > { %3836 = vmatprep.subr.msk.bf16.mxu1 %vm437_vm0, %v3914_v4 }
  0x50   : > { %3823 = vmatmul.mubr.msk.bf16.gmra.mxu0 %vm437_vm0, %v411_v61 }
  0x51   : > { %3826 = vmatprep.mubr.msk.bf16.mxu0 %vm437_vm0, %v412_v63 }
  0x53   : > { %3647 = vmatpush3.bf16.xpose.msra.mxu1 %v1182_v6 }
  0x54   : > { %3837 = vmatprep.subr.msk.bf16.mxu1 %vm437_vm0, %v3916_v7 }
  0x58   : > { %3827 = vmatmul.mubr.msk.bf16.gmra.mxu0 %vm437_vm0, %v413_v3 }
  0x5b   : > { %3649 = vmatpush3.bf16.xpose.msra.mxu1 %v1179_v9 }
  0xe0   : > { %v3800_v11 = vpop.f32.mrf.mxu0 }
  0xe1   : > { %v529_v12 = vadd.f32 %v3800_v11, %v4497_v10 }
  0xe2   : > { %v520_v13 = vpop.f32.mrf.mxu0 }
  0xe3   : > { %v3585_v14 = vpack.c.bf16 %v529_v12, %v529_v12  ;;  %v521_v15 = vadd.f32 %v4497_v10, %v520_v13 }
  0xe4   : > { %v3801_v16 = vpop.f32.mrf.mxu0 }
  0xe5   : > { %778 = vst.msk [vmem:[#allocation2 + $0x8] sm:$0xf] %vm775_vm1, %v3585_v14  ;;  %v3583_v17 = vpack.c.bf16 %v521_v15, %v521_v15  ;;  %v532_v18 = vadd.f32 %v3801_v16, %v4497_v10 }
  0xe6   : > { %v523_v19 = vpop.f32.mrf.mxu0 }
  0xe7   : > { %776 = vst.msk [vmem:[#allocation2] sm:$0xf] %vm775_vm1, %v3583_v17  ;;  %v3586_v20 = vpack.c.bf16 %v532_v18, %v532_v18  ;;  %v524_v21 = vadd.f32 %v4497_v10, %v523_v19 }
  0xe8   : > { %v3804_v22 = vpop.f32.mrf.mxu0 }
  0xe9   : > { %779 = vst.msk [vmem:[#allocation2 + $0xc] sm:$0xf] %vm775_vm1, %v3586_v20  ;;  %v3584_v23 = vpack.c.bf16 %v524_v21, %v524_v21  ;;  %v545_v24 = vadd.f32 %v3804_v22, %v4497_v10 }
  0xea   : > { %v536_v25 = vpop.f32.mrf.mxu0 }
  0xeb   : > { %777 = vst.msk [vmem:[#allocation2 + $0x4] sm:$0xf] %vm775_vm1, %v3584_v23  ;;  %v3589_v26 = vpack.c.bf16 %v545_v24, %v545_v24  ;;  %v537_v27 = vadd.f32 %v4497_v10, %v536_v25 }
  0xec   : > { %v3805_v28 = vpop.f32.mrf.mxu0 }
  0xed   : > { %782 = vst.msk [vmem:[#allocation2 + $0x18] sm:$0xf] %vm775_vm1, %v3589_v26  ;;  %v3587_v29 = vpack.c.bf16 %v537_v27, %v537_v27  ;;  %v548_v30 = vadd.f32 %v3805_v28, %v4497_v10 }
  0xee   : > { %v539_v31 = vpop.f32.mrf.mxu0 }
  0xef   : > { %780 = vst.msk [vmem:[#allocation2 + $0x10] sm:$0xf] %vm775_vm1, %v3587_v29  ;;  %v3590_v32 = vpack.c.bf16 %v548_v30, %v548_v30  ;;  %v540_v33 = vadd.f32 %v4497_v10, %v539_v31 }
  0xf0   : > { %v3808_v34 = vpop.f32.mrf.mxu0  ;;  %v3919_v41 = vld [vmem:[#allocation2 + $0x8] sm:$0xff]  }
  0xf1   : > { %783 = vst.msk [vmem:[#allocation2 + $0x1c] sm:$0xf] %vm775_vm1, %v3590_v32  ;;  %v3588_v35 = vpack.c.bf16 %v540_v33, %v540_v33  ;;  %v561_v36 = vadd.f32 %v3808_v34, %v4497_v10 }
  0xf2   : > { %v3918_v37 = vld [vmem:[#allocation2] sm:$0xff]   ;;  %v552_v38 = vpop.f32.mrf.mxu0 }
  0xf3   : > { %781 = vst.msk [vmem:[#allocation2 + $0x14] sm:$0xf] %vm775_vm1, %v3588_v35  ;;  %v3593_v39 = vpack.c.bf16 %v561_v36, %v561_v36  ;;  %v553_v40 = vadd.f32 %v4497_v10, %v552_v38  ;;  %3650 = vmatprep.mubr.msk.bf16.mxu1 %vm437_vm0, %v3918_v37 }
  0xf4   : > { %v3809_v42 = vpop.f32.mrf.mxu0  ;;  %3651 = vmatmul.mubr.msk.bf16.vlgmr.msra.gmra.mxu1 %vm437_vm0, %v3918_v37 }
  0xf5   : > { %786 = vst.msk [vmem:[#allocation2 + $0x28] sm:$0xf] %vm775_vm1, %v3593_v39  ;;  %v3591_v43 = vpack.c.bf16 %v553_v40, %v553_v40  ;;  %v564_v44 = vadd.f32 %v3809_v42, %v4497_v10  ;;  %3652 = vmatprep.mubr.msk.bf16.mxu1 %vm437_vm0, %v3919_v41 }
  0xf6   : > { %v555_v45 = vpop.f32.mrf.mxu0 }
  0xf7   : > { %784 = vst.msk [vmem:[#allocation2 + $0x20] sm:$0xf] %vm775_vm1, %v3591_v43  ;;  %v3594_v46 = vpack.c.bf16 %v564_v44, %v564_v44  ;;  %v556_v47 = vadd.f32 %v4497_v10, %v555_v45 }
  0xf8   : > { %v3812_v48 = vpop.f32.mrf.mxu0  ;;  %v3921_v3 = vld [vmem:[#allocation2 + $0x18] sm:$0xff]  }
  0xf9   : > { %787 = vst.msk [vmem:[#allocation2 + $0x2c] sm:$0xf] %vm775_vm1, %v3594_v46  ;;  %v3592_v49 = vpack.c.bf16 %v556_v47, %v556_v47  ;;  %v577_v50 = vadd.f32 %v3812_v48, %v4497_v10 }
  0xfa   : > { %v3920_v51 = vld [vmem:[#allocation2 + $0x10] sm:$0xff]   ;;  %v568_v52 = vpop.f32.mrf.mxu0 }
  0xfb   : > { %785 = vst.msk [vmem:[#allocation2 + $0x24] sm:$0xf] %vm775_vm1, %v3592_v49  ;;  %v3597_v53 = vpack.c.bf16 %v577_v50, %v577_v50  ;;  %v569_v54 = vadd.f32 %v4497_v10, %v568_v52 }
  0xfc   : > { %v3813_v55 = vpop.f32.mrf.mxu0  ;;  %3653 = vmatmul.mubr.msk.bf16.gmra.mxu1 %vm437_vm0, %v3919_v41 }
  0xfd   : > { %790 = vst.msk [vmem:[#allocation2 + $0x38] sm:$0xf] %vm775_vm1, %v3597_v53  ;;  %v3595_v56 = vpack.c.bf16 %v569_v54, %v569_v54  ;;  %v580_v57 = vadd.f32 %v3813_v55, %v4497_v10  ;;  %3654 = vmatprep.mubr.msk.bf16.mxu1 %vm437_vm0, %v3920_v51 }
  0xfe   : > { %v571_v58 = vpop.f32.mrf.mxu0 }
  0xff   : > { %788 = vst.msk [vmem:[#allocation2 + $0x30] sm:$0xf] %vm775_vm1, %v3595_v56  ;;  %v3598_v59 = vpack.c.bf16 %v580_v57, %v580_v57  ;;  %v572_v60 = vadd.f32 %v4497_v10, %v571_v58 }
 0x100   : > { %v3816_v61 = vpop.f32.mrf.mxu0  ;;  %v3923_v30 = vld [vmem:[#allocation2 + $0x28] sm:$0xff]  }
 0x101   : > { %791 = vst.msk [vmem:[#allocation2 + $0x3c] sm:$0xf] %vm775_vm1, %v3598_v59  ;;  %v3596_v62 = vpack.c.bf16 %v572_v60, %v572_v60  ;;  %v593_v63 = vadd.f32 %v3816_v61, %v4497_v10  ;;  %v4284_v61 = vmov -inf  }
 0x102   : > { %v584_v0 = vpop.f32.mrf.mxu0  ;;  %v3922_v14 = vld [vmem:[#allocation2 + $0x20] sm:$0xff]   ;;  %809 = vst.msk [vmem:[#allocation3] sm:$0xff] %vm808_vm2, %v4284_v61  ;;  %810 = vst.msk [vmem:[#allocation3 + $0x8] sm:$0xff] %vm808_vm2, %v4284_v61 }
 0x103   : > { %789 = vst.msk [vmem:[#allocation2 + $0x34] sm:$0xf] %vm775_vm1, %v3596_v62  ;;  %v3601_v1 = vpack.c.bf16 %v593_v63, %v593_v63  ;;  %v585_v2 = vadd.f32 %v4497_v10, %v584_v0 }
 0x104   : > { %v3817_v4 = vpop.f32.mrf.mxu0  ;;  %3655 = vmatmul.mubr.msk.bf16.gmra.mxu1 %vm437_vm0, %v3920_v51  ;;  %811 = vst.msk [vmem:[#allocation3 + $0x10] sm:$0xff] %vm808_vm2, %v4284_v61  ;;  %812 = vst.msk [vmem:[#allocation3 + $0x18] sm:$0xff] %vm808_vm2, %v4284_v61 }
 0x105   : > { %794 = vst.msk [vmem:[#allocation2 + $0x48] sm:$0xf] %vm775_vm1, %v3601_v1  ;;  %v3599_v5 = vpack.c.bf16 %v585_v2, %v585_v2  ;;  %v596_v6 = vadd.f32 %v3817_v4, %v4497_v10  ;;  %3656 = vmatprep.mubr.msk.bf16.mxu1 %vm437_vm0, %v3921_v3 }
 0x106   : > { %v587_v7 = vpop.f32.mrf.mxu0  ;;  %813 = vst.msk [vmem:[#allocation3 + $0x20] sm:$0xff] %vm808_vm2, %v4284_v61  ;;  %814 = vst.msk [vmem:[#allocation3 + $0x28] sm:$0xff] %vm808_vm2, %v4284_v61 }
 0x107   : > { %792 = vst.msk [vmem:[#allocation2 + $0x40] sm:$0xf] %vm775_vm1, %v3599_v5  ;;  %v3602_v8 = vpack.c.bf16 %v596_v6, %v596_v6  ;;  %v588_v9 = vadd.f32 %v4497_v10, %v587_v7 }
 0x108   : > { %v3820_v11 = vpop.f32.mrf.mxu0  ;;  %v3925_v51 = vld [vmem:[#allocation2 + $0x38] sm:$0xff]   ;;  %815 = vst.msk [vmem:[#allocation3 + $0x30] sm:$0xff] %vm808_vm2, %v4284_v61  ;;  %816 = vst.msk [vmem:[#allocation3 + $0x38] sm:$0xff] %vm808_vm2, %v4284_v61 }
 0x109   : > { %795 = vst.msk [vmem:[#allocation2 + $0x4c] sm:$0xf] %vm775_vm1, %v3602_v8  ;;  %v3600_v12 = vpack.c.bf16 %v588_v9, %v588_v9  ;;  %v609_v13 = vadd.f32 %v3820_v11, %v4497_v10  ;;  %v4285_v11 = vmov 0  }
 0x10a   : > { %v600_v15 = vpop.f32.mrf.mxu0  ;;  %v3924_v40 = vld [vmem:[#allocation2 + $0x30] sm:$0xff]   ;;  %817 = vst.msk [vmem:[#allocation3 + $0x40] sm:$0xff] %vm808_vm2, %v4284_v61  ;;  %818 = vst.msk [vmem:[#allocation3 + $0x48] sm:$0xff] %vm808_vm2, %v4284_v61  ;;  %3898 = vset.pattern.permute.xlu0 %v4285_v11  ;;  %3899 = vset.pattern.permute.xlu1 %v4285_v11 }
 0x10b   : > { %793 = vst.msk [vmem:[#allocation2 + $0x44] sm:$0xf] %vm775_vm1, %v3600_v12  ;;  %v3605_v16 = vpack.c.bf16 %v609_v13, %v609_v13  ;;  %v601_v17 = vadd.f32 %v4497_v10, %v600_v15 }
 0x10c   : > { %v3821_v18 = vpop.f32.mrf.mxu0  ;;  %3657 = vmatmul.mubr.msk.bf16.gmra.mxu1 %vm437_vm0, %v3921_v3  ;;  %819 = vst.msk [vmem:[#allocation3 + $0x50] sm:$0xff] %vm808_vm2, %v4284_v61  ;;  %820 = vst.msk [vmem:[#allocation3 + $0x58] sm:$0xff] %vm808_vm2, %v4284_v61 }
 0x10d   : > { %798 = vst.msk [vmem:[#allocation2 + $0x58] sm:$0xf] %vm775_vm1, %v3605_v16  ;;  %v3603_v19 = vpack.c.bf16 %v601_v17, %v601_v17  ;;  %v612_v20 = vadd.f32 %v3821_v18, %v4497_v10  ;;  %3658 = vmatprep.mubr.msk.bf16.mxu1 %vm437_vm0, %v3922_v14 }
 0x10e   : > { %v603_v21 = vpop.f32.mrf.mxu0  ;;  %821 = vst.msk [vmem:[#allocation3 + $0x60] sm:$0xff] %vm808_vm2, %v4284_v61  ;;  %822 = vst.msk [vmem:[#allocation3 + $0x68] sm:$0xff] %vm808_vm2, %v4284_v61 }
 0x10f   : > { %796 = vst.msk [vmem:[#allocation2 + $0x50] sm:$0xf] %vm775_vm1, %v3603_v19  ;;  %v3606_v22 = vpack.c.bf16 %v612_v20, %v612_v20  ;;  %v604_v23 = vadd.f32 %v4497_v10, %v603_v21  ;;  %v4286_v20 = vmov 0.0  }
 0x110   : > { %v3824_v24 = vpop.f32.mrf.mxu0  ;;  %v3927_v53 = vld [vmem:[#allocation2 + $0x48] sm:$0xff]   ;;  %823 = vst.msk [vmem:[#allocation3 + $0x70] sm:$0xff] %vm808_vm2, %v4284_v61  ;;  %824 = vst.msk [vmem:[#allocation3 + $0x78] sm:$0xff] %vm808_vm2, %v4284_v61 }
 0x111   : > { %799 = vst.msk [vmem:[#allocation2 + $0x5c] sm:$0xf] %vm775_vm1, %v3606_v22  ;;  %v3604_v25 = vpack.c.bf16 %v604_v23, %v604_v23  ;;  %v625_v26 = vadd.f32 %v3824_v24, %v4497_v10 }
 0x112   : > { %v616_v27 = vpop.f32.mrf.mxu0  ;;  %v3926_v52 = vld [vmem:[#allocation2 + $0x40] sm:$0xff]   ;;  %825 = vst.msk [vmem:[#allocation3 + $0x80] sm:$0xff] %vm808_vm2, %v4284_v61  ;;  %826 = vst.msk [vmem:[#allocation3 + $0x88] sm:$0xff] %vm808_vm2, %v4284_v61 }
 0x113   : > { %797 = vst.msk [vmem:[#allocation2 + $0x54] sm:$0xf] %vm775_vm1, %v3604_v25  ;;  %v3609_v28 = vpack.c.bf16 %v625_v26, %v625_v26  ;;  %v617_v29 = vadd.f32 %v4497_v10, %v616_v27 }
 0x114   : > { %v3825_v31 = vpop.f32.mrf.mxu0  ;;  %3659 = vmatmul.mubr.msk.bf16.gmra.mxu1 %vm437_vm0, %v3922_v14  ;;  %827 = vst.msk [vmem:[#allocation3 + $0x90] sm:$0xff] %vm808_vm2, %v4284_v61  ;;  %828 = vst.msk [vmem:[#allocation3 + $0x98] sm:$0xff] %vm808_vm2, %v4284_v61 }
 0x115   : > { %802 = vst.msk [vmem:[#allocation2 + $0x68] sm:$0xf] %vm775_vm1, %v3609_v28  ;;  %v3607_v32 = vpack.c.bf16 %v617_v29, %v617_v29  ;;  %v628_v33 = vadd.f32 %v3825_v31, %v4497_v10  ;;  %3660 = vmatprep.mubr.msk.bf16.mxu1 %vm437_vm0, %v3923_v30 }
 0x116   : > { %v619_v34 = vpop.f32.mrf.mxu0  ;;  %829 = vst.msk [vmem:[#allocation3 + $0xa0] sm:$0xff] %vm808_vm2, %v4284_v61  ;;  %830 = vst.msk [vmem:[#allocation3 + $0xa8] sm:$0xff] %vm808_vm2, %v4284_v61 }
 0x117   : > { %800 = vst.msk [vmem:[#allocation2 + $0x60] sm:$0xf] %vm775_vm1, %v3607_v32  ;;  %v3610_v35 = vpack.c.bf16 %v628_v33, %v628_v33  ;;  %v620_v36 = vadd.f32 %v4497_v10, %v619_v34 }
 0x118   : > { %v3828_v37 = vpop.f32.mrf.mxu0  ;;  %v3929_v54 = vld [vmem:[#allocation2 + $0x58] sm:$0xff]   ;;  %831 = vst.msk [vmem:[#allocation3 + $0xb0] sm:$0xff] %vm808_vm2, %v4284_v61  ;;  %832 = vst.msk [vmem:[#allocation3 + $0xb8] sm:$0xff] %vm808_vm2, %v4284_v61 }
 0x119   : > { %803 = vst.msk [vmem:[#allocation2 + $0x6c] sm:$0xf] %vm775_vm1, %v3610_v35  ;;  %v3608_v38 = vpack.c.bf16 %v620_v36, %v620_v36  ;;  %v641_v39 = vadd.f32 %v3828_v37, %v4497_v10 }
 0x11a   : > { %v632_v41 = vpop.f32.mrf.mxu0  ;;  %833 = vst.msk [vmem:[#allocation3 + $0xc0] sm:$0xff] %vm808_vm2, %v4284_v61  ;;  %834 = vst.msk [vmem:[#allocation3 + $0xc8] sm:$0xff] %vm808_vm2, %v4284_v61 }
 0x11b   : > { %801 = vst.msk [vmem:[#allocation2 + $0x64] sm:$0xf] %vm775_vm1, %v3608_v38  ;;  %v3613_v42 = vpack.c.bf16 %v641_v39, %v641_v39  ;;  %v633_v43 = vadd.f32 %v4497_v10, %v632_v41 }
 0x11c   : > { %v3829_v44 = vpop.f32.mrf.mxu0  ;;  %3661 = vmatmul.mubr.msk.bf16.gmra.mxu1 %vm437_vm0, %v3923_v30  ;;  %835 = vst.msk [vmem:[#allocation3 + $0xd0] sm:$0xff] %vm808_vm2, %v4284_v61  ;;  %836 = vst.msk [vmem:[#allocation3 + $0xd8] sm:$0xff] %vm808_vm2, %v4284_v61 }
 0x11d   : > { %806 = vst.msk [vmem:[#allocation2 + $0x78] sm:$0xf] %vm775_vm1, %v3613_v42  ;;  %v3611_v45 = vpack.c.bf16 %v633_v43, %v633_v43  ;;  %v644_v46 = vadd.f32 %v3829_v44, %v4497_v10  ;;  %3662 = vmatprep.mubr.msk.bf16.mxu1 %vm437_vm0, %v3924_v40 }
 0x11e   : > { %v635_v47 = vpop.f32.mrf.mxu0  ;;  %837 = vst.msk [vmem:[#allocation3 + $0xe0] sm:$0xff] %vm808_vm2, %v4284_v61  ;;  %838 = vst.msk [vmem:[#allocation3 + $0xe8] sm:$0xff] %vm808_vm2, %v4284_v61 }
 0x11f   : > { %804 = vst.msk [vmem:[#allocation2 + $0x70] sm:$0xf] %vm775_vm1, %v3611_v45  ;;  %v3614_v48 = vpack.c.bf16 %v644_v46, %v644_v46  ;;  %v636_v49 = vadd.f32 %v4497_v10, %v635_v47  ;;  %v3928_v10 = vld [vmem:[#allocation2 + $0x50] sm:$0xff]  }
 0x120   : > { %v3931_v56 = vld [vmem:[#allocation2 + $0x68] sm:$0xff]   ;;  %839 = vst.msk [vmem:[#allocation3 + $0xf0] sm:$0xff] %vm808_vm2, %v4284_v61  ;;  %840 = vst.msk [vmem:[#allocation3 + $0xf8] sm:$0xff] %vm808_vm2, %v4284_v61 }
 0x121   : > { %807 = vst.msk [vmem:[#allocation2 + $0x7c] sm:$0xf] %vm775_vm1, %v3614_v48  ;;  %v3612_v50 = vpack.c.bf16 %v636_v49, %v636_v49 }
 0x122   : > { %v3930_v55 = vld [vmem:[#allocation2 + $0x60] sm:$0xff]   ;;  %874 = vst.msk [vmem:[#allocation5 + $0x8] sm:$0xff] %vm437_vm0, %v4286_v20  ;;  %873 = vst.msk [vmem:[#allocation5] sm:$0xff] %vm437_vm0, %v4286_v20 }
 0x123   : > { %805 = vst.msk [vmem:[#allocation2 + $0x74] sm:$0xf] %vm775_vm1, %v3612_v50 }
 0x124   : > { %3663 = vmatmul.mubr.msk.bf16.gmra.mxu1 %vm437_vm0, %v3924_v40  ;;  %841 = vst.msk [vmem:[#allocation4] sm:$0xff] %vm808_vm2, %v4286_v20  ;;  %842 = vst.msk [vmem:[#allocation4 + $0x8] sm:$0xff] %vm808_vm2, %v4286_v20 }
 0x125   : > { %3664 = vmatprep.mubr.msk.bf16.mxu1 %vm437_vm0, %v3925_v51  ;;  %843 = vst.msk [vmem:[#allocation4 + $0x10] sm:$0xff] %vm808_vm2, %v4286_v20  ;;  %844 = vst.msk [vmem:[#allocation4 + $0x18] sm:$0xff] %vm808_vm2, %v4286_v20 }
 0x126   : > { %845 = vst.msk [vmem:[#allocation4 + $0x20] sm:$0xff] %vm808_vm2, %v4286_v20  ;;  %846 = vst.msk [vmem:[#allocation4 + $0x28] sm:$0xff] %vm808_vm2, %v4286_v20 }
 0x127   : > { %847 = vst.msk [vmem:[#allocation4 + $0x30] sm:$0xff] %vm808_vm2, %v4286_v20  ;;  %848 = vst.msk [vmem:[#allocation4 + $0x38] sm:$0xff] %vm808_vm2, %v4286_v20 }
 0x128   : > { %v3933_v58 = vld [vmem:[#allocation2 + $0x78] sm:$0xff]   ;;  %849 = vst.msk [vmem:[#allocation4 + $0x40] sm:$0xff] %vm808_vm2, %v4286_v20  ;;  %850 = vst.msk [vmem:[#allocation4 + $0x48] sm:$0xff] %vm808_vm2, %v4286_v20 }
 0x129   : > { %851 = vst.msk [vmem:[#allocation4 + $0x50] sm:$0xff] %vm808_vm2, %v4286_v20  ;;  %852 = vst.msk [vmem:[#allocation4 + $0x58] sm:$0xff] %vm808_vm2, %v4286_v20 }
 0x12a   : > { %v3932_v57 = vld [vmem:[#allocation2 + $0x70] sm:$0xff]   ;;  %853 = vst.msk [vmem:[#allocation4 + $0x60] sm:$0xff] %vm808_vm2, %v4286_v20  ;;  %854 = vst.msk [vmem:[#allocation4 + $0x68] sm:$0xff] %vm808_vm2, %v4286_v20 }
 0x12b   : > { %855 = vst.msk [vmem:[#allocation4 + $0x70] sm:$0xff] %vm808_vm2, %v4286_v20  ;;  %856 = vst.msk [vmem:[#allocation4 + $0x78] sm:$0xff] %vm808_vm2, %v4286_v20 }
 0x12c   : > { %3665 = vmatmul.mubr.msk.bf16.gmra.mxu1 %vm437_vm0, %v3925_v51  ;;  %857 = vst.msk [vmem:[#allocation4 + $0x80] sm:$0xff] %vm808_vm2, %v4286_v20  ;;  %858 = vst.msk [vmem:[#allocation4 + $0x88] sm:$0xff] %vm808_vm2, %v4286_v20 }
 0x12d   : > { %3666 = vmatprep.mubr.msk.bf16.mxu1 %vm437_vm0, %v3926_v52  ;;  %859 = vst.msk [vmem:[#allocation4 + $0x90] sm:$0xff] %vm808_vm2, %v4286_v20  ;;  %860 = vst.msk [vmem:[#allocation4 + $0x98] sm:$0xff] %vm808_vm2, %v4286_v20 }
 0x12e   : > { %861 = vst.msk [vmem:[#allocation4 + $0xa0] sm:$0xff] %vm808_vm2, %v4286_v20  ;;  %862 = vst.msk [vmem:[#allocation4 + $0xa8] sm:$0xff] %vm808_vm2, %v4286_v20 }
 0x12f   : > { %863 = vst.msk [vmem:[#allocation4 + $0xb0] sm:$0xff] %vm808_vm2, %v4286_v20  ;;  %864 = vst.msk [vmem:[#allocation4 + $0xb8] sm:$0xff] %vm808_vm2, %v4286_v20 }
 0x130   : > { %865 = vst.msk [vmem:[#allocation4 + $0xc0] sm:$0xff] %vm808_vm2, %v4286_v20  ;;  %866 = vst.msk [vmem:[#allocation4 + $0xc8] sm:$0xff] %vm808_vm2, %v4286_v20 }
 0x131   : > { %867 = vst.msk [vmem:[#allocation4 + $0xd0] sm:$0xff] %vm808_vm2, %v4286_v20  ;;  %868 = vst.msk [vmem:[#allocation4 + $0xd8] sm:$0xff] %vm808_vm2, %v4286_v20 }
 0x132   : > { %869 = vst.msk [vmem:[#allocation4 + $0xe0] sm:$0xff] %vm808_vm2, %v4286_v20  ;;  %870 = vst.msk [vmem:[#allocation4 + $0xe8] sm:$0xff] %vm808_vm2, %v4286_v20 }
 0x133   : > { %871 = vst.msk [vmem:[#allocation4 + $0xf0] sm:$0xff] %vm808_vm2, %v4286_v20  ;;  %872 = vst.msk [vmem:[#allocation4 + $0xf8] sm:$0xff] %vm808_vm2, %v4286_v20 }
 0x134   : > { %3667 = vmatmul.mubr.msk.bf16.gmra.mxu1 %vm437_vm0, %v3926_v52  ;;  %875 = vst.msk [vmem:[#allocation5 + $0x10] sm:$0xff] %vm437_vm0, %v4286_v20  ;;  %876 = vst.msk [vmem:[#allocation5 + $0x18] sm:$0xff] %vm437_vm0, %v4286_v20 }
 0x135   : > { %3668 = vmatprep.mubr.msk.bf16.mxu1 %vm437_vm0, %v3927_v53  ;;  %877 = vst.msk [vmem:[#allocation5 + $0x20] sm:$0xff] %vm437_vm0, %v4286_v20  ;;  %878 = vst.msk [vmem:[#allocation5 + $0x28] sm:$0xff] %vm437_vm0, %v4286_v20 }
 0x136   : > { %879 = vst.msk [vmem:[#allocation5 + $0x30] sm:$0xff] %vm437_vm0, %v4286_v20  ;;  %880 = vst.msk [vmem:[#allocation5 + $0x38] sm:$0xff] %vm437_vm0, %v4286_v20 }
 0x137   : > { %881 = vst.msk [vmem:[#allocation5 + $0x40] sm:$0xff] %vm437_vm0, %v4286_v20  ;;  %882 = vst.msk [vmem:[#allocation5 + $0x48] sm:$0xff] %vm437_vm0, %v4286_v20 }
 0x138   : > { %883 = vst.msk [vmem:[#allocation5 + $0x50] sm:$0xff] %vm437_vm0, %v4286_v20  ;;  %884 = vst.msk [vmem:[#allocation5 + $0x58] sm:$0xff] %vm437_vm0, %v4286_v20 }
 0x139   : > { %885 = vst.msk [vmem:[#allocation5 + $0x60] sm:$0xff] %vm437_vm0, %v4286_v20  ;;  %886 = vst.msk [vmem:[#allocation5 + $0x68] sm:$0xff] %vm437_vm0, %v4286_v20 }
 0x13a   : > { %887 = vst.msk [vmem:[#allocation5 + $0x70] sm:$0xff] %vm437_vm0, %v4286_v20  ;;  %888 = vst.msk [vmem:[#allocation5 + $0x78] sm:$0xff] %vm437_vm0, %v4286_v20 }
 0x13b   : > { %889 = vst.msk [vmem:[#allocation5 + $0x80] sm:$0xff] %vm437_vm0, %v4286_v20  ;;  %890 = vst.msk [vmem:[#allocation5 + $0x88] sm:$0xff] %vm437_vm0, %v4286_v20 }
 0x13c   : > { %3669 = vmatmul.mubr.msk.bf16.gmra.mxu1 %vm437_vm0, %v3927_v53  ;;  %891 = vst.msk [vmem:[#allocation5 + $0x90] sm:$0xff] %vm437_vm0, %v4286_v20  ;;  %892 = vst.msk [vmem:[#allocation5 + $0x98] sm:$0xff] %vm437_vm0, %v4286_v20 }
 0x13d   : > { %3670 = vmatprep.mubr.msk.bf16.mxu1 %vm437_vm0, %v3928_v10  ;;  %893 = vst.msk [vmem:[#allocation5 + $0xa0] sm:$0xff] %vm437_vm0, %v4286_v20  ;;  %894 = vst.msk [vmem:[#allocation5 + $0xa8] sm:$0xff] %vm437_vm0, %v4286_v20 }
 0x13e   : > { %895 = vst.msk [vmem:[#allocation5 + $0xb0] sm:$0xff] %vm437_vm0, %v4286_v20  ;;  %896 = vst.msk [vmem:[#allocation5 + $0xb8] sm:$0xff] %vm437_vm0, %v4286_v20 }
 0x13f   : > { %897 = vst.msk [vmem:[#allocation5 + $0xc0] sm:$0xff] %vm437_vm0, %v4286_v20  ;;  %898 = vst.msk [vmem:[#allocation5 + $0xc8] sm:$0xff] %vm437_vm0, %v4286_v20 }
 0x140   : > { %899 = vst.msk [vmem:[#allocation5 + $0xd0] sm:$0xff] %vm437_vm0, %v4286_v20  ;;  %900 = vst.msk [vmem:[#allocation5 + $0xd8] sm:$0xff] %vm437_vm0, %v4286_v20 }
 0x141   : > { %901 = vst.msk [vmem:[#allocation5 + $0xe0] sm:$0xff] %vm437_vm0, %v4286_v20  ;;  %902 = vst.msk [vmem:[#allocation5 + $0xe8] sm:$0xff] %vm437_vm0, %v4286_v20 }
 0x142   : > { %903 = vst.msk [vmem:[#allocation5 + $0xf0] sm:$0xff] %vm437_vm0, %v4286_v20  ;;  %904 = vst.msk [vmem:[#allocation5 + $0xf8] sm:$0xff] %vm437_vm0, %v4286_v20 }
 0x144   : > { %3671 = vmatmul.mubr.msk.bf16.gmra.mxu1 %vm437_vm0, %v3928_v10 }
 0x145   : > { %3672 = vmatprep.mubr.msk.bf16.mxu1 %vm437_vm0, %v3929_v54 }
 0x14c   : > { %3673 = vmatmul.mubr.msk.bf16.gmra.mxu1 %vm437_vm0, %v3929_v54 }
 0x14d   : > { %3674 = vmatprep.mubr.msk.bf16.mxu1 %vm437_vm0, %v3930_v55 }
 0x154   : > { %3675 = vmatmul.mubr.msk.bf16.gmra.mxu1 %vm437_vm0, %v3930_v55 }
 0x155   : > { %3676 = vmatprep.mubr.msk.bf16.mxu1 %vm437_vm0, %v3931_v56 }
 0x15c   : > { %3677 = vmatmul.mubr.msk.bf16.gmra.mxu1 %vm437_vm0, %v3931_v56 }
 0x15d   : > { %3678 = vmatprep.mubr.msk.bf16.mxu1 %vm437_vm0, %v3932_v57 }
 0x164   : > { %3679 = vmatmul.mubr.msk.bf16.gmra.mxu1 %vm437_vm0, %v3932_v57 }
 0x165   : > { %3680 = vmatprep.mubr.msk.bf16.mxu1 %vm437_vm0, %v3933_v58 }
 0x16c   : > { %3681 = vmatmul.mubr.msk.bf16.gmra.mxu1 %vm437_vm0, %v3933_v58 }
 0x1b4   : > { %v4595_v59 = vpop.f32.mrf.mxu1 }
 0x1b6   : > { %v4597_v60 = vpop.f32.mrf.mxu1 }
 0x1b7   : > { %v1451_v62 = vmax.f32 %v4595_v59, %v4597_v60 }
 0x1b8   : > { %v4633_v63 = vpop.f32.mrf.mxu1 }
 0x1b9   : > { %1452 = vmax.xlane.f32.xlu0 %v1451_v62 }
 0x1ba   : > { %v4635_v0 = vpop.f32.mrf.mxu1 }
 0x1bb   : > { %v1454_v1 = vmax.f32 %v4633_v63, %v4635_v0 }
 0x1bc   : > { %v4639_v2 = vpop.f32.mrf.mxu1 }
 0x1bd   : > { %1455 = vmax.xlane.f32.xlu0 %v1454_v1 }
 0x1be   : > { %v4641_v3 = vpop.f32.mrf.mxu1 }
 0x1bf   : > { %v1457_v4 = vmax.f32 %v4639_v2, %v4641_v3 }
 0x1c0   : > { %v4645_v5 = vpop.f32.mrf.mxu1 }
 0x1c1   : > { %1458 = vmax.xlane.f32.xlu1 %v1457_v4 }
 0x1c2   : > { %v4647_v6 = vpop.f32.mrf.mxu1 }
 0x1c3   : > { %v1460_v7 = vmax.f32 %v4645_v5, %v4647_v6 }
 0x1c4   : > { %v4651_v8 = vpop.f32.mrf.mxu1 }
 0x1c5   : > { %1461 = vmax.xlane.f32.xlu1 %v1460_v7 }
 0x1c6   : > { %v4653_v9 = vpop.f32.mrf.mxu1 }
 0x1c7   : > { %v1463_v12 = vmax.f32 %v4651_v8, %v4653_v9 }
 0x1c8   : > { %v4657_v13 = vpop.f32.mrf.mxu1 }
 0x1c9   : > { %6137 = vst [vmem:[#allocation10_spill] sm:$0xff] %v4657_v13  ;;  %1464 = vmax.xlane.f32.xlu0 %v1463_v12 }
 0x1ca   : > { %v4659_v14 = vpop.f32.mrf.mxu1 }
 0x1cb   : > { %6138 = vst [vmem:[#allocation11_spill] sm:$0xff] %v4659_v14  ;;  %v1466_v15 = vmax.f32 %v4657_v13, %v4659_v14  ;;  %v5203_v14 = vld [vmem:[#allocation3 + $0xc8] sm:$0xff] }
 0x1cc   : > { %v4663_v16 = vpop.f32.mrf.mxu1 }
 0x1cd   : > { %6139 = vst [vmem:[#allocation12_spill] sm:$0xff] %v4663_v16  ;;  %1467 = vmax.xlane.f32.xlu1 %v1466_v15 }
 0x1ce   : > { %v4665_v17 = vpop.f32.mrf.mxu1 }
 0x1cf   : > { %6140 = vst [vmem:[#allocation13_spill] sm:$0xff] %v4665_v17  ;;  %v1469_v18 = vmax.f32 %v4663_v16, %v4665_v17  ;;  %v5195_v17 = vld [vmem:[#allocation3 + $0xc0] sm:$0xff] }
 0x1d0   : > { %v4669_v19 = vpop.f32.mrf.mxu1  ;;  %6195 = vst [vmem:[#allocation68_spill] sm:$0xff] %v5195_v17 }
 0x1d1   : > { %6141 = vst [vmem:[#allocation14_spill] sm:$0xff] %v4669_v19  ;;  %1470 = vmax.xlane.f32.xlu0 %v1469_v18 }
 0x1d2   : > { %v4802_v21 = vpop.f32.mrf.mxu1 }
 0x1d3   : > { %6142 = vst [vmem:[#allocation15_spill] sm:$0xff] %v4802_v21  ;;  %v1472_v22 = vmax.f32 %v4669_v19, %v4802_v21  ;;  %v5187_v21 = vld [vmem:[#allocation3 + $0xb8] sm:$0xff] }
 0x1d4   : > { %v4806_v23 = vpop.f32.mrf.mxu1  ;;  %6193 = vst [vmem:[#allocation66_spill] sm:$0xff] %v5187_v21 }
 0x1d5   : > { %6143 = vst [vmem:[#allocation16_spill] sm:$0xff] %v4806_v23  ;;  %1473 = vmax.xlane.f32.xlu1 %v1472_v22 }
 0x1d6   : > { %v4808_v24 = vpop.f32.mrf.mxu1 }
 0x1d7   : > { %6144 = vst [vmem:[#allocation17_spill] sm:$0xff] %v4808_v24  ;;  %v1475_v25 = vmax.f32 %v4806_v23, %v4808_v24 }
 0x1d8   : > { %v4812_v26 = vpop.f32.mrf.mxu1 }
 0x1d9   : > { %6145 = vst [vmem:[#allocation18_spill] sm:$0xff] %v4812_v26  ;;  %1476 = vmax.xlane.f32.xlu0 %v1475_v25 }
 0x1da   : > { %v4814_v27 = vpop.f32.mrf.mxu1 }
 0x1db   : > { %6146 = vst [vmem:[#allocation19_spill] sm:$0xff] %v4814_v27  ;;  %v1478_v28 = vmax.f32 %v4812_v26, %v4814_v27  ;;  %v5171_v26 = vld [vmem:[#allocation3 + $0xa8] sm:$0xff] }
 0x1dc   : > { %v4818_v29 = vpop.f32.mrf.mxu1 }
 0x1dd   : > { %6147 = vst [vmem:[#allocation20_spill] sm:$0xff] %v4818_v29  ;;  %1479 = vmax.xlane.f32.xlu1 %v1478_v28 }
 0x1de   : > { %v4820_v30 = vpop.f32.mrf.mxu1 }
 0x1df   : > { %6148 = vst [vmem:[#allocation21_spill] sm:$0xff] %v4820_v30  ;;  %v1481_v31 = vmax.f32 %v4818_v29, %v4820_v30  ;;  %v5161_v29 = vld [vmem:[#allocation3 + $0xa0] sm:$0xff] }
 0x1e0   : > { %v4824_v32 = vpop.f32.mrf.mxu1 }
 0x1e1   : > { %6149 = vst [vmem:[#allocation22_spill] sm:$0xff] %v4824_v32  ;;  %1482 = vmax.xlane.f32.xlu0 %v1481_v31 }
 0x1e2   : > { %v4826_v33 = vpop.f32.mrf.mxu1 }
 0x1e3   : > { %6150 = vst [vmem:[#allocation23_spill] sm:$0xff] %v4826_v33  ;;  %v1484_v34 = vmax.f32 %v4824_v32, %v4826_v33  ;;  %v5151_v32 = vld [vmem:[#allocation3 + $0x98] sm:$0xff] }
 0x1e4   : > { %v4830_v35 = vpop.f32.mrf.mxu1 }
 0x1e5   : > { %6151 = vst [vmem:[#allocation24_spill] sm:$0xff] %v4830_v35  ;;  %1485 = vmax.xlane.f32.xlu1 %v1484_v34 }
 0x1e6   : > { %v4832_v36 = vpop.f32.mrf.mxu1 }
 0x1e7   : > { %6152 = vst [vmem:[#allocation25_spill] sm:$0xff] %v4832_v36  ;;  %v1487_v37 = vmax.f32 %v4830_v35, %v4832_v36  ;;  %v5141_v35 = vld [vmem:[#allocation3 + $0x90] sm:$0xff] }
 0x1e8   : > { %v4836_v38 = vpop.f32.mrf.mxu1 }
 0x1e9   : > { %6153 = vst [vmem:[#allocation26_spill] sm:$0xff] %v4836_v38  ;;  %1488 = vmax.xlane.f32.xlu0 %v1487_v37 }
 0x1ea   : > { %v4838_v39 = vpop.f32.mrf.mxu1 }
 0x1eb   : > { %6154 = vst [vmem:[#allocation27_spill] sm:$0xff] %v4838_v39  ;;  %v1490_v40 = vmax.f32 %v4836_v38, %v4838_v39  ;;  %v5131_v38 = vld [vmem:[#allocation3 + $0x88] sm:$0xff] }
 0x1ec   : > { %v4842_v41 = vpop.f32.mrf.mxu1 }
 0x1ed   : > { %6155 = vst [vmem:[#allocation28_spill] sm:$0xff] %v4842_v41  ;;  %1491 = vmax.xlane.f32.xlu1 %v1490_v40 }
 0x1ee   : > { %v4844_v42 = vpop.f32.mrf.mxu1 }
 0x1ef   : > { %6156 = vst [vmem:[#allocation29_spill] sm:$0xff] %v4844_v42  ;;  %v1493_v43 = vmax.f32 %v4842_v41, %v4844_v42  ;;  %v5121_v41 = vld [vmem:[#allocation3 + $0x80] sm:$0xff] }
 0x1f0   : > { %v4848_v44 = vpop.f32.mrf.mxu1 }
 0x1f1   : > { %6157 = vst [vmem:[#allocation30_spill] sm:$0xff] %v4848_v44  ;;  %1494 = vmax.xlane.f32.xlu0 %v1493_v43 }
 0x1f2   : > { %v4850_v45 = vpop.f32.mrf.mxu1 }
 0x1f3   : > { %6158 = vst [vmem:[#allocation31_spill] sm:$0xff] %v4850_v45  ;;  %v1496_v46 = vmax.f32 %v4848_v44, %v4850_v45  ;;  %v5111_v44 = vld [vmem:[#allocation3 + $0x78] sm:$0xff] }
 0x1f4   : > { %v4854_v47 = vpop.f32.mrf.mxu1 }
 0x1f5   : > { %6159 = vst [vmem:[#allocation32_spill] sm:$0xff] %v4854_v47  ;;  %1497 = vmax.xlane.f32.xlu1 %v1496_v46 }
 0x1f6   : > { %v4856_v48 = vpop.f32.mrf.mxu1 }
 0x1f7   : > { %6160 = vst [vmem:[#allocation33_spill] sm:$0xff] %v4856_v48  ;;  %v1499_v49 = vmax.f32 %v4854_v47, %v4856_v48  ;;  %v5101_v47 = vld [vmem:[#allocation3 + $0x70] sm:$0xff] }
 0x1f8   : > { %v4860_v50 = vpop.f32.mrf.mxu1 }
 0x1f9   : > { %6161 = vst [vmem:[#allocation34_spill] sm:$0xff] %v4860_v50  ;;  %1500 = vmax.xlane.f32.xlu0 %v1499_v49 }
 0x1fa   : > { %v4862_v51 = vpop.f32.mrf.mxu1 }
 0x1fb   : > { %6162 = vst [vmem:[#allocation35_spill] sm:$0xff] %v4862_v51  ;;  %v1502_v52 = vmax.f32 %v4860_v50, %v4862_v51  ;;  %v5091_v50 = vld [vmem:[#allocation3 + $0x68] sm:$0xff] }
 0x1fc   : > { %v4866_v53 = vpop.f32.mrf.mxu1 }
 0x1fd   : > { %6163 = vst [vmem:[#allocation36_spill] sm:$0xff] %v4866_v53  ;;  %1503 = vmax.xlane.f32.xlu1 %v1502_v52 }
 0x1fe   : > { %v4868_v10 = vpop.f32.mrf.mxu1 }
 0x1ff   : > { %6164 = vst [vmem:[#allocation37_spill] sm:$0xff] %v4868_v10  ;;  %v1505_v54 = vmax.f32 %v4866_v53, %v4868_v10  ;;  %v5081_v53 = vld [vmem:[#allocation3 + $0x60] sm:$0xff] }
 0x200   : > { %v4872_v55 = vpop.f32.mrf.mxu1 }
 0x201   : > { %6165 = vst [vmem:[#allocation38_spill] sm:$0xff] %v4872_v55  ;;  %1506 = vmax.xlane.f32.xlu0 %v1505_v54 }
 0x202   : > { %v4874_v56 = vpop.f32.mrf.mxu1 }
 0x203   : > { %6166 = vst [vmem:[#allocation39_spill] sm:$0xff] %v4874_v56  ;;  %v1508_v57 = vmax.f32 %v4872_v55, %v4874_v56  ;;  %v5071_v55 = vld [vmem:[#allocation3 + $0x58] sm:$0xff] }
 0x204   : > { %v4878_v58 = vpop.f32.mrf.mxu1 }
 0x205   : > { %6167 = vst [vmem:[#allocation40_spill] sm:$0xff] %v4878_v58  ;;  %1509 = vmax.xlane.f32.xlu1 %v1508_v57 }
 0x206   : > { %v4880_v61 = vpop.f32.mrf.mxu1 }
 0x207   : > { %6168 = vst [vmem:[#allocation41_spill] sm:$0xff] %v4880_v61  ;;  %v1511_v62 = vmax.f32 %v4878_v58, %v4880_v61  ;;  %v5061_v58 = vld [vmem:[#allocation3 + $0x50] sm:$0xff] }
 0x208   : > { %v4884_v1 = vpop.f32.mrf.mxu1 }
 0x209   : > { %6169 = vst [vmem:[#allocation42_spill] sm:$0xff] %v4884_v1  ;;  %1512 = vmax.xlane.f32.xlu0 %v1511_v62 }
 0x20a   : > { %v4886_v4 = vpop.f32.mrf.mxu1 }
 0x20b   : > { %6170 = vst [vmem:[#allocation43_spill] sm:$0xff] %v4886_v4  ;;  %v1514_v7 = vmax.f32 %v4884_v1, %v4886_v4  ;;  %v5051_v1 = vld [vmem:[#allocation3 + $0x48] sm:$0xff] }
 0x20c   : > { %v4890_v11 = vpop.f32.mrf.mxu1 }
 0x20d   : > { %6171 = vst [vmem:[#allocation44_spill] sm:$0xff] %v4890_v11  ;;  %1515 = vmax.xlane.f32.xlu1 %v1514_v7 }
 0x20e   : > { %v4892_v12 = vpop.f32.mrf.mxu1 }
 0x20f   : > { %6172 = vst [vmem:[#allocation45_spill] sm:$0xff] %v4892_v12  ;;  %v1517_v15 = vmax.f32 %v4890_v11, %v4892_v12  ;;  %v5031_v11 = vld [vmem:[#allocation3 + $0x38] sm:$0xff] }
 0x210   : > { %v4896_v18 = vpop.f32.mrf.mxu1 }
 0x211   : > { %6173 = vst [vmem:[#allocation46_spill] sm:$0xff] %v4896_v18  ;;  %1518 = vmax.xlane.f32.xlu0 %v1517_v15 }
 0x212   : > { %v4898_v20 = vpop.f32.mrf.mxu1 }
 0x213   : > { %6174 = vst [vmem:[#allocation47_spill] sm:$0xff] %v4898_v20  ;;  %v1520_v22 = vmax.f32 %v4896_v18, %v4898_v20  ;;  %v3949_v18 = vld [vmem:[%s4447_s12] sm:$0xff]  }
 0x214   : > { %v4902_v25 = vpop.f32.mrf.mxu1 }
 0x215   : > { %6175 = vst [vmem:[#allocation48_spill] sm:$0xff] %v4902_v25  ;;  %1521 = vmax.xlane.f32.xlu1 %v1520_v22 }
 0x216   : > { %v4904_v28 = vpop.f32.mrf.mxu1 }
 0x217   : > { %6176 = vst [vmem:[#allocation49_spill] sm:$0xff] %v4904_v28  ;;  %v1523_v31 = vmax.f32 %v4902_v25, %v4904_v28  ;;  %v3947_v25 = vld [vmem:[%s4447_s12 + $0x8] sm:$0xff]  }
 0x218   : > { %v4908_v34 = vpop.f32.mrf.mxu1 }
 0x219   : > { %6177 = vst [vmem:[#allocation50_spill] sm:$0xff] %v4908_v34  ;;  %1524 = vmax.xlane.f32.xlu0 %v1523_v31 }
 0x21a   : > { %v4910_v37 = vpop.f32.mrf.mxu1 }
 0x21b   : > { %6178 = vst [vmem:[#allocation51_spill] sm:$0xff] %v4910_v37  ;;  %v1526_v40 = vmax.f32 %v4908_v34, %v4910_v37  ;;  %v3945_v34 = vld [vmem:[%s4447_s12 + $0x10] sm:$0xff]  }
 0x21c   : > { %v4914_v43 = vpop.f32.mrf.mxu1 }
 0x21d   : > { %6179 = vst [vmem:[#allocation52_spill] sm:$0xff] %v4914_v43  ;;  %1527 = vmax.xlane.f32.xlu1 %v1526_v40 }
 0x21e   : > { %v4916_v46 = vpop.f32.mrf.mxu1 }
 0x21f   : > { %6180 = vst [vmem:[#allocation53_spill] sm:$0xff] %v4916_v46  ;;  %v1529_v49 = vmax.f32 %v4914_v43, %v4916_v46  ;;  %v3939_v46 = vld [vmem:[%s4447_s12 + $0x28] sm:$0xff]  }
 0x220   : > { %v4920_v52 = vpop.f32.mrf.mxu1 }
 0x221   : > { %6181 = vst [vmem:[#allocation54_spill] sm:$0xff] %v4920_v52  ;;  %1530 = vmax.xlane.f32.xlu0 %v1529_v49 }
 0x222   : > { %v4922_v54 = vpop.f32.mrf.mxu1 }
 0x223   : > { %6182 = vst [vmem:[#allocation55_spill] sm:$0xff] %v4922_v54  ;;  %v1532_v57 = vmax.f32 %v4920_v52, %v4922_v54  ;;  %v3937_v52 = vld [vmem:[%s4447_s12 + $0x30] sm:$0xff]  }
 0x224   : > { %v4926_v62 = vpop.f32.mrf.mxu1 }
 0x225   : > { %6183 = vst [vmem:[#allocation56_spill] sm:$0xff] %v4926_v62  ;;  %1533 = vmax.xlane.f32.xlu1 %v1532_v57 }
 0x226   : > { %v4928_v7 = vpop.f32.mrf.mxu1 }
 0x227   : > { %6184 = vst [vmem:[#allocation57_spill] sm:$0xff] %v4928_v7  ;;  %v1535_v15 = vmax.f32 %v4926_v62, %v4928_v7 }
 0x228   : > { %v4932_v22 = vpop.f32.mrf.mxu1 }
 0x229   : > { %6185 = vst [vmem:[#allocation58_spill] sm:$0xff] %v4932_v22  ;;  %1536 = vmax.xlane.f32.xlu0 %v1535_v15 }
 0x22a   : > { %v4934_v31 = vpop.f32.mrf.mxu1 }
 0x22b   : > { %6186 = vst [vmem:[#allocation59_spill] sm:$0xff] %v4934_v31  ;;  %v1538_v40 = vmax.f32 %v4932_v22, %v4934_v31  ;;  %v3934_v31 = vld [vmem:[%s4447_s12 + $0x78] sm:$0xff]  }
 0x22c   : > { %v4938_v49 = vpop.f32.mrf.mxu1  ;;  %v3935_v22 = vld [vmem:[%s4447_s12 + $0x38] sm:$0xff]   ;;  %3682 = vmatprep.subr.bf16.mxu0 %v3934_v31 }
 0x22d   : > { %6187 = vst [vmem:[#allocation60_spill] sm:$0xff] %v4938_v49  ;;  %1539 = vmax.xlane.f32.xlu1 %v1538_v40  ;;  %3683 = vmatpush3.bf16.msra.mxu0 %v3935_v22  ;;  %v3936_v40 = vld [vmem:[%s4447_s12 + $0x70] sm:$0xff]   ;;  %v3942_v22 = vld [vmem:[%s4447_s12 + $0x58] sm:$0xff]  }
 0x22e   : > { %v4940_v57 = vpop.f32.mrf.mxu1  ;;  %3684 = vmatprep.subr.bf16.mxu0 %v3936_v40  ;;  %v3941_v40 = vld [vmem:[%s4447_s12 + $0x20] sm:$0xff]  }
 0x22f   : > { %6188 = vst [vmem:[#allocation61_spill] sm:$0xff] %v4940_v57  ;;  %v1541_v54 = vmax.f32 %v4938_v49, %v4940_v57  ;;  %v4954_v57 = vld [vmem:[#allocation3] sm:$0xff] }
 0x230   : > { %v4944_v7 = vpop.f32.mrf.mxu1 }
 0x231   : > { %6189 = vst [vmem:[#allocation62_spill] sm:$0xff] %v4944_v7  ;;  %1542 = vmax.xlane.f32.xlu0 %v1541_v54  ;;  %3685 = vmatpush3.bf16.msra.mxu0 %v3937_v52  ;;  %v3938_v54 = vld [vmem:[%s4447_s12 + $0x68] sm:$0xff]   ;;  %v3940_v52 = vld [vmem:[%s4447_s12 + $0x60] sm:$0xff]  }
 0x232   : > { %v4946_v15 = vpop.f32.mrf.mxu1  ;;  %3686 = vmatprep.subr.bf16.mxu0 %v3938_v54 }
 0x233   : > { %6190 = vst [vmem:[#allocation63_spill] sm:$0xff] %v4946_v15  ;;  %v1544_v62 = vmax.f32 %v4944_v7, %v4946_v15 }
 0x235   : > { %1545 = vmax.xlane.f32.xlu1 %v1544_v62  ;;  %v4961_v62 = vld [vmem:[#allocation3 + $0x8] sm:$0xff]  ;;  %3687 = vmatpush3.bf16.msra.mxu0 %v3939_v46  ;;  %v3944_v46 = vld [vmem:[%s4447_s12 + $0x50] sm:$0xff]  }
 0x236   : > { %3688 = vmatprep.subr.bf16.mxu0 %v3940_v52  ;;  %v4985_v52 = vld [vmem:[#allocation3 + $0x18] sm:$0xff] }
 0x239   : > { %3689 = vmatpush3.bf16.msra.mxu0 %v3941_v40  ;;  %v3946_v40 = vld [vmem:[%s4447_s12 + $0x48] sm:$0xff]  }
 0x23a   : > { %3690 = vmatprep.subr.bf16.mxu0 %v3942_v22  ;;  %v4997_v22 = vld [vmem:[#allocation3 + $0x20] sm:$0xff] }
 0x242   : > { %v1453_v49 = vpop.xlane.xlu0 %1452 }
 0x243   : > { %v4959_v43 = vmax.f32 %v4954_v57, %v1453_v49  ;;  %v4973_v49 = vld [vmem:[#allocation3 + $0x10] sm:$0xff] }
 0x245   : > { %2861 = vst.msk [vmem:[#allocation3] sm:$0xff] %vm808_vm2, %v4959_v43 }
 0x246   : > { %v1456_v31 = vpop.xlane.xlu0 %1455 }
 0x247   : > { %v4970_v54 = vmax.f32 %v4961_v62, %v1456_v31  ;;  %1677 = vperm.xlu0 %3898, %v4959_v43   ;;  %v3943_v31 = vld [vmem:[%s4447_s12 + $0x18] sm:$0xff]  }
 0x248   : > { %3691 = vmatpush3.bf16.msra.mxu0 %v3943_v31  ;;  %v3948_v31 = vld [vmem:[%s4447_s12 + $0x40] sm:$0xff]   ;;  %s4212_s12 = scalar_lea.vmem %s4211_s9, 8192 }
 0x249   : > { %2862 = vst.msk [vmem:[#allocation3 + $0x8] sm:$0xff] %vm808_vm2, %v4970_v54  ;;  %1682 = vperm.xlu1 %3899, %v4970_v54   ;;  %3692 = vmatprep.subr.bf16.mxu0 %v3944_v46  ;;  %v5009_v46 = vld [vmem:[#allocation3 + $0x28] sm:$0xff]  ;;  %v6197_v13 = vsub.f32 %v4961_v62, %v4970_v54 }
 0x24a   : > { %v1459_v15 = vpop.xlane.xlu1 %1458 }
 0x24b   : > { %v4983_v7 = vmax.f32 %v4973_v49, %v1459_v15 }
 0x24c   : > { %3693 = vmatpush3.bf16.msra.mxu0 %v3945_v34 }
 0x24d   : > { %2863 = vst.msk [vmem:[#allocation3 + $0x10] sm:$0xff] %vm808_vm2, %v4983_v7  ;;  %1687 = vperm.xlu1 %3899, %v4983_v7   ;;  %3694 = vmatprep.subr.bf16.mxu0 %v3946_v40  ;;  %v6199_v54 = vsub.f32 %v4973_v49, %v4983_v7 }
 0x24e   : > { %v1462_v37 = vpop.xlane.xlu1 %1461 }
 0x24f   : > { %v4995_v15 = vmax.f32 %v4985_v52, %v1462_v37 }
 0x250   : > { %3695 = vmatpush3.bf16.msra.mxu0 %v3947_v25  ;;  %v5041_v25 = vld [vmem:[#allocation3 + $0x40] sm:$0xff] }
 0x251   : > { %2864 = vst.msk [vmem:[#allocation3 + $0x18] sm:$0xff] %vm808_vm2, %v4995_v15  ;;  %1692 = vperm.xlu1 %3899, %v4995_v15   ;;  %3696 = vmatprep.subr.bf16.mxu0 %v3948_v31 }
 0x252   : > { %v1465_v28 = vpop.xlane.xlu0 %1464 }
 0x253   : > { %v5007_v37 = vmax.f32 %v4997_v22, %v1465_v28  ;;  %v5021_v28 = vld [vmem:[#allocation3 + $0x30] sm:$0xff] }
 0x254   : > { %3697 = vmatpush3.bf16.msra.mxu0 %v3949_v18 }
 0x255   : > { %2865 = vst.msk [vmem:[#allocation3 + $0x20] sm:$0xff] %vm808_vm2, %v5007_v37  ;;  %1697 = vperm.xlu1 %3899, %v5007_v37  }
 0x256   : > { %v1468_v20 = vpop.xlane.xlu1 %1467 }
 0x257   : > { %v5019_v12 = vmax.f32 %v5009_v46, %v1468_v20 }
 0x259   : > { %2866 = vst.msk [vmem:[#allocation3 + $0x28] sm:$0xff] %vm808_vm2, %v5019_v12  ;;  %1702 = vperm.xlu1 %3899, %v5019_v12  }
 0x25a   : > { %v1471_v40 = vpop.xlane.xlu0 %1470 }
 0x25b   : > { %v5029_v34 = vmax.f32 %v5021_v28, %v1471_v40 }
 0x25d   : > { %2867 = vst.msk [vmem:[#allocation3 + $0x30] sm:$0xff] %vm808_vm2, %v5029_v34  ;;  %1707 = vperm.xlu1 %3899, %v5029_v34  }
 0x25e   : > { %v1474_v18 = vpop.xlane.xlu1 %1473 }
 0x25f   : > { %v5039_v31 = vmax.f32 %v5031_v11, %v1474_v18 }
 0x261   : > { %2868 = vst.msk [vmem:[#allocation3 + $0x38] sm:$0xff] %vm808_vm2, %v5039_v31  ;;  %1712 = vperm.xlu1 %3899, %v5039_v31  }
 0x262   : > { %v1477_v20 = vpop.xlane.xlu0 %1476 }
 0x263   : > { %v5049_v4 = vmax.f32 %v5041_v25, %v1477_v20 }
 0x265   : > { %2869 = vst.msk [vmem:[#allocation3 + $0x40] sm:$0xff] %vm808_vm2, %v5049_v4  ;;  %1717 = vperm.xlu1 %3899, %v5049_v4  }
 0x266   : > { %v1480_v40 = vpop.xlane.xlu1 %1479 }
 0x267   : > { %v5059_v61 = vmax.f32 %v5051_v1, %v1480_v40 }
 0x269   : > { %2870 = vst.msk [vmem:[#allocation3 + $0x48] sm:$0xff] %vm808_vm2, %v5059_v61  ;;  %1722 = vperm.xlu0 %3898, %v5059_v61  }
 0x26a   : > { %v1483_v18 = vpop.xlane.xlu0 %1482 }
 0x26b   : > { %v5069_v56 = vmax.f32 %v5061_v58, %v1483_v18 }
 0x26d   : > { %2871 = vst.msk [vmem:[#allocation3 + $0x50] sm:$0xff] %vm808_vm2, %v5069_v56  ;;  %1727 = vperm.xlu1 %3899, %v5069_v56  }
 0x26e   : > { %v1486_v20 = vpop.xlane.xlu1 %1485 }
 0x26f   : > { %v5079_v10 = vmax.f32 %v5071_v55, %v1486_v20 }
 0x271   : > { %2872 = vst.msk [vmem:[#allocation3 + $0x58] sm:$0xff] %vm808_vm2, %v5079_v10  ;;  %1732 = vperm.xlu0 %3898, %v5079_v10  }
 0x272   : > { %v1489_v40 = vpop.xlane.xlu0 %1488 }
 0x273   : > { %v5089_v51 = vmax.f32 %v5081_v53, %v1489_v40 }
 0x275   : > { %2873 = vst.msk [vmem:[#allocation3 + $0x60] sm:$0xff] %vm808_vm2, %v5089_v51  ;;  %1737 = vperm.xlu1 %3899, %v5089_v51  }
 0x276   : > { %v1492_v18 = vpop.xlane.xlu1 %1491 }
 0x277   : > { %v5099_v48 = vmax.f32 %v5091_v50, %v1492_v18 }
 0x279   : > { %2874 = vst.msk [vmem:[#allocation3 + $0x68] sm:$0xff] %vm808_vm2, %v5099_v48  ;;  %1742 = vperm.xlu0 %3898, %v5099_v48  }
 0x27a   : > { %v1495_v20 = vpop.xlane.xlu0 %1494 }
 0x27b   : > { %v5109_v45 = vmax.f32 %v5101_v47, %v1495_v20 }
 0x27d   : > { %2875 = vst.msk [vmem:[#allocation3 + $0x70] sm:$0xff] %vm808_vm2, %v5109_v45  ;;  %1747 = vperm.xlu1 %3899, %v5109_v45  }
 0x27e   : > { %v1498_v40 = vpop.xlane.xlu1 %1497 }
 0x27f   : > { %v5119_v42 = vmax.f32 %v5111_v44, %v1498_v40 }
 0x281   : > { %2876 = vst.msk [vmem:[#allocation3 + $0x78] sm:$0xff] %vm808_vm2, %v5119_v42  ;;  %1752 = vperm.xlu0 %3898, %v5119_v42  }
 0x282   : > { %v1501_v18 = vpop.xlane.xlu0 %1500 }
 0x283   : > { %v5129_v39 = vmax.f32 %v5121_v41, %v1501_v18 }
 0x285   : > { %2877 = vst.msk [vmem:[#allocation3 + $0x80] sm:$0xff] %vm808_vm2, %v5129_v39  ;;  %1757 = vperm.xlu1 %3899, %v5129_v39  }
 0x286   : > { %v1504_v20 = vpop.xlane.xlu1 %1503 }
 0x287   : > { %v5139_v36 = vmax.f32 %v5131_v38, %v1504_v20 }
 0x289   : > { %2878 = vst.msk [vmem:[#allocation3 + $0x88] sm:$0xff] %vm808_vm2, %v5139_v36  ;;  %1762 = vperm.xlu0 %3898, %v5139_v36  }
 0x28a   : > { %v1507_v40 = vpop.xlane.xlu0 %1506 }
 0x28b   : > { %v5149_v33 = vmax.f32 %v5141_v35, %v1507_v40  ;;  %v5179_v40 = vld [vmem:[#allocation3 + $0xb0] sm:$0xff] }
 0x28c   : > { %6191 = vst [vmem:[#allocation64_spill] sm:$0xff] %v5179_v40 }
 0x28d   : > { %2879 = vst.msk [vmem:[#allocation3 + $0x90] sm:$0xff] %vm808_vm2, %v5149_v33  ;;  %1767 = vperm.xlu1 %3899, %v5149_v33  }
 0x28e   : > { %v1510_v18 = vpop.xlane.xlu1 %1509 }
 0x28f   : > { %v5159_v30 = vmax.f32 %v5151_v32, %v1510_v18 }
 0x291   : > { %2880 = vst.msk [vmem:[#allocation3 + $0x98] sm:$0xff] %vm808_vm2, %v5159_v30  ;;  %1772 = vperm.xlu0 %3898, %v5159_v30  }
 0x292   : > { %v1513_v20 = vpop.xlane.xlu0 %1512 }
 0x293   : > { %v5169_v27 = vmax.f32 %v5161_v29, %v1513_v20 }
 0x295   : > { %2881 = vst.msk [vmem:[#allocation3 + $0xa0] sm:$0xff] %vm808_vm2, %v5169_v27  ;;  %1777 = vperm.xlu1 %3899, %v5169_v27  }
 0x296   : > { %v1516_v18 = vpop.xlane.xlu1 %1515 }
 0x297   : > { %v5177_v24 = vmax.f32 %v5171_v26, %v1516_v18 }
 0x299   : > { %2882 = vst.msk [vmem:[#allocation3 + $0xa8] sm:$0xff] %vm808_vm2, %v5177_v24  ;;  %1782 = vperm.xlu0 %3898, %v5177_v24  }
 0x29a   : > { %v1519_v20 = vpop.xlane.xlu0 %1518 }
 0x29b   : > { %v5185_v23 = vmax.f32 %v5179_v40, %v1519_v20 }
 0x29d   : > { %6192 = vst [vmem:[#allocation65_spill] sm:$0xff] %v5185_v23  ;;  %2883 = vst.msk [vmem:[#allocation3 + $0xb0] sm:$0xff] %vm808_vm2, %v5185_v23  ;;  %1787 = vperm.xlu1 %3899, %v5185_v23  }
 0x29e   : > { %v1522_v18 = vpop.xlane.xlu1 %1521 }
 0x29f   : > { %v5193_v19 = vmax.f32 %v5187_v21, %v1522_v18  ;;  %v1613_v21 = vmul.f32 1.442695, %v6197_v13  ;;  %v5225_v13 = vld [vmem:[#allocation3 + $0xd8] sm:$0xff] }
 0x2a1   : > { %6194 = vst [vmem:[#allocation67_spill] sm:$0xff] %v5193_v19  ;;  %2884 = vst.msk [vmem:[#allocation3 + $0xb8] sm:$0xff] %vm808_vm2, %v5193_v19  ;;  %1792 = vperm.xlu0 %3898, %v5193_v19   ;;  %v5214_v19 = vld [vmem:[#allocation3 + $0xd0] sm:$0xff]  ;;  %3950 = vpow2.f32 %v1613_v21  ;;  %v6200_v21 = vsub.f32 %v4985_v52, %v4995_v15  ;;  %v6202_v52 = vsub.f32 %v5009_v46, %v5019_v12 }
 0x2a2   : > { %v1525_v20 = vpop.xlane.xlu0 %1524  ;;  %v6204_v12 = vsub.f32 %v5031_v11, %v5039_v31  ;;  %v6208_v31 = vsub.f32 %v5071_v55, %v5079_v10 }
 0x2a3   : > { %v5201_v16 = vmax.f32 %v5195_v17, %v1525_v20  ;;  %v6198_v17 = vsub.f32 %v4954_v57, %v4959_v43  ;;  %v1617_v57 = vmul.f32 1.442695, %v6200_v21  ;;  %v1621_v15 = vmul.f32 1.442695, %v6202_v52  ;;  %v5283_v52 = vld [vmem:[#allocation3 + $0xf8] sm:$0xff] }
 0x2a4   : > { %v1625_v46 = vmul.f32 1.442695, %v6204_v12 }
 0x2a5   : > { %6196 = vst [vmem:[#allocation69_spill] sm:$0xff] %v5201_v16  ;;  %2885 = vst.msk [vmem:[#allocation3 + $0xc0] sm:$0xff] %vm808_vm2, %v5201_v16  ;;  %1797 = vperm.xlu1 %3899, %v5201_v16   ;;  %v1611_v16 = vmul.f32 1.442695, %v6198_v17  ;;  %v5236_v17 = vld [vmem:[#allocation3 + $0xe0] sm:$0xff] }
 0x2a6   : > { %v1528_v18 = vpop.xlane.xlu1 %1527 }
 0x2a7   : > { %v5212_v40 = vmax.f32 %v5203_v14, %v1528_v18  ;;  %3952 = vpow2.f32 %v1611_v16  ;;  %v1615_v18 = vmul.f32 1.442695, %v6199_v54  ;;  %v6201_v16 = vsub.f32 %v4997_v22, %v5007_v37 }
 0x2a8   : > { %v6203_v22 = vsub.f32 %v5021_v28, %v5029_v34  ;;  %v6205_v28 = vsub.f32 %v5041_v25, %v5049_v4  ;;  %v6207_v4 = vsub.f32 %v5061_v58, %v5069_v56  ;;  %v6210_v56 = vsub.f32 %v5091_v50, %v5099_v48 }
 0x2a9   : > { %2886 = vst.msk [vmem:[#allocation3 + $0xc8] sm:$0xff] %vm808_vm2, %v5212_v40  ;;  %1802 = vperm.xlu0 %3898, %v5212_v40   ;;  %3954 = vpow2.f32 %v1615_v18  ;;  %v1619_v7 = vmul.f32 1.442695, %v6201_v16 }
 0x2aa   : > { %v1531_v20 = vpop.xlane.xlu0 %1530  ;;  %3956 = vpow2.f32 %v1617_v57  ;;  %v1623_v37 = vmul.f32 1.442695, %v6203_v22  ;;  %v1627_v57 = vmul.f32 1.442695, %v6205_v28  ;;  %v1631_v11 = vmul.f32 1.442695, %v6207_v4 }
 0x2ab   : > { %v5223_v23 = vmax.f32 %v5214_v19, %v1531_v20  ;;  %3958 = vpow2.f32 %v1619_v7  ;;  %v1633_v22 = vmul.f32 1.442695, %v6208_v31  ;;  %v1637_v58 = vmul.f32 1.442695, %v6210_v56 }
 0x2ac   : > { %3960 = vpow2.f32 %v1621_v15  ;;  %v6206_v15 = vsub.f32 %v5051_v1, %v5059_v61 }
 0x2ad   : > { %2887 = vst.msk [vmem:[#allocation3 + $0xd0] sm:$0xff] %vm808_vm2, %v5223_v23  ;;  %1807 = vperm.xlu1 %3899, %v5223_v23   ;;  %3962 = vpow2.f32 %v1623_v37  ;;  %v6209_v37 = vsub.f32 %v5081_v53, %v5089_v51  ;;  %v6211_v51 = vsub.f32 %v5101_v47, %v5109_v45 }
 0x2ae   : > { %v1534_v62 = vpop.xlane.xlu1 %1533  ;;  %v5264_v21 = vpop.eup %3950  ;;  %3964 = vpow2.f32 %v1625_v46  ;;  %v6260_v46 = vld [vmem:[#allocation33_spill] sm:$0xff] }
 0x2af   : > { %v5234_v43 = vmax.f32 %v5225_v13, %v1534_v62  ;;  %v5250_v62 = vld [vmem:[#allocation3 + $0xe8] sm:$0xff]  ;;  %3966 = vpow2.f32 %v1627_v57  ;;  %v1635_v12 = vmul.f32 1.442695, %v6209_v37  ;;  %v1639_v53 = vmul.f32 1.442695, %v6211_v51 }
 0x2b1   : > { %2888 = vst.msk [vmem:[#allocation3 + $0xd8] sm:$0xff] %vm808_vm2, %v5234_v43  ;;  %1812 = vperm.xlu0 %3898, %v5234_v43  }
 0x2b2   : > { %v1537_v20 = vpop.xlane.xlu0 %1536 }
 0x2b3   : > { %v5248_v49 = vmax.f32 %v5236_v17, %v1537_v20  ;;  %v5266_v20 = vld [vmem:[#allocation3 + $0xf0] sm:$0xff] }
 0x2b4   : > { %v5281_v7 = vpop.eup %3952 }
 0x2b5   : > { %2889 = vst.msk [vmem:[#allocation3 + $0xe0] sm:$0xff] %vm808_vm2, %v5248_v49  ;;  %1817 = vperm.xlu1 %3899, %v5248_v49  }
 0x2b6   : > { %v1540_v54 = vpop.xlane.xlu1 %1539  ;;  %v5301_v1 = vpop.eup %3954 }
 0x2b7   : > { %v5262_v18 = vmax.f32 %v5250_v62, %v1540_v54  ;;  %v1629_v54 = vmul.f32 1.442695, %v6206_v15  ;;  %v5318_v55 = vpop.eup %3956 }
 0x2b9   : > { %2890 = vst.msk [vmem:[#allocation3 + $0xe8] sm:$0xff] %vm808_vm2, %v5262_v18  ;;  %1822 = vperm.xlu0 %3898, %v5262_v18   ;;  %2291 = vperm.xlu1 %3899, %v5264_v21   ;;  %3968 = vpow2.f32 %v1629_v54 }
 0x2ba   : > { %v1543_v34 = vpop.xlane.xlu0 %1542  ;;  %3970 = vpow2.f32 %v1631_v11 }
 0x2bb   : > { %v5279_v16 = vmax.f32 %v5266_v20, %v1543_v34  ;;  %3972 = vpow2.f32 %v1633_v22  ;;  %v5322_v34 = vpop.eup %3958 }
 0x2bc   : > { %3974 = vpow2.f32 %v1635_v12  ;;  %v5328_v47 = vpop.eup %3960 }
 0x2bd   : > { %2891 = vst.msk [vmem:[#allocation3 + $0xf0] sm:$0xff] %vm808_vm2, %v5279_v16  ;;  %2286 = vperm.xlu0 %3898, %v5281_v7   ;;  %1827 = vperm.xlu1 %3899, %v5279_v16   ;;  %3976 = vpow2.f32 %v1637_v58  ;;  %v5333_v11 = vpop.eup %3962  ;;  %v1599_v58 = vsub.f32 %v5161_v29, %v5169_v27 }
 0x2be   : > { %v1546_v25 = vpop.xlane.xlu1 %1545  ;;  %3978 = vpow2.f32 %v1639_v53 }
 0x2bf   : > { %v5299_v61 = vmax.f32 %v5283_v52, %v1546_v25 }
 0x2c1   : > { %2892 = vst.msk [vmem:[#allocation3 + $0xf8] sm:$0xff] %vm808_vm2, %v5299_v61  ;;  %2296 = vperm.xlu1 %3899, %v5301_v1   ;;  %1832 = vperm.xlu0 %3898, %v5299_v61  }
 0x2c2   : > { %v1678_v10 = vpop.permute.xlu0 %1677 }
 0x2c3   : > { %v1835_v48 = vsub.f32 %v4595_v59, %v1678_v10  ;;  %v1836_v50 = vsub.f32 %v4597_v60, %v1678_v10  ;;  %v6212_v59 = vsub.f32 %v5111_v44, %v5119_v42  ;;  %v5342_v42 = vpop.eup %3964 }
 0x2c4   : > { %v1683_v28 = vpop.permute.xlu1 %1682  ;;  %v5347_v56 = vpop.eup %3966 }
 0x2c5   : > { %v1899_v57 = vmul.f32 1.442695, %v1835_v48  ;;  %v1901_v15 = vmul.f32 1.442695, %v1836_v50  ;;  %v1837_v54 = vsub.f32 %v4633_v63, %v1683_v28  ;;  %2306 = vperm.xlu1 %3899, %v5322_v34   ;;  %2301 = vperm.xlu0 %3898, %v5318_v55   ;;  %v1838_v45 = vsub.f32 %v4635_v0, %v1683_v28 }
 0x2c6   : > { %v1641_v60 = vmul.f32 1.442695, %v6212_v59  ;;  %v6213_v63 = vsub.f32 %v5121_v41, %v5129_v39  ;;  %v6214_v39 = vsub.f32 %v5131_v38, %v5139_v36  ;;  %v5358_v36 = vpop.eup %3968 }
 0x2c7   : > { %3980 = vpow2.f32 %v1899_v57  ;;  %v1903_v4 = vmul.f32 1.442695, %v1837_v54  ;;  %v1905_v31 = vmul.f32 1.442695, %v1838_v45  ;;  %v5360_v38 = vpop.eup %3970  ;;  %v6217_v54 = vld [vmem:[#allocation65_spill] sm:$0xff] }
 0x2c8   : > { %v1643_v25 = vmul.f32 1.442695, %v6213_v63  ;;  %3982 = vpow2.f32 %v1901_v15  ;;  %v1688_v22 = vpop.permute.xlu1 %1687  ;;  %v1645_v41 = vmul.f32 1.442695, %v6214_v39  ;;  %v5365_v48 = vpop.eup %3972  ;;  %v6223_v39 = vld [vmem:[#allocation10_spill] sm:$0xff] }
 0x2c9   : > { %3984 = vpow2.f32 %v1903_v4  ;;  %v1839_v0 = vsub.f32 %v4639_v2, %v1688_v22  ;;  %v1840_v37 = vsub.f32 %v4641_v3, %v1688_v22  ;;  %2316 = vperm.xlu1 %3899, %v5333_v11   ;;  %2311 = vperm.xlu0 %3898, %v5328_v47   ;;  %v6215_v2 = vsub.f32 %v5141_v35, %v5149_v33  ;;  %v5369_v28 = vpop.eup %3974  ;;  %v6219_v4 = vld [vmem:[#allocation67_spill] sm:$0xff]  ;;  %v6221_v22 = vld [vmem:[#allocation69_spill] sm:$0xff] }
 0x2ca   : > { %3986 = vpow2.f32 %v1905_v31  ;;  %v6216_v33 = vsub.f32 %v5151_v32, %v5159_v30  ;;  %v5375_v30 = vpop.eup %3976 }
 0x2cb   : > { %3988 = vpow2.f32 %v1641_v60  ;;  %v1907_v44 = vmul.f32 1.442695, %v1839_v0  ;;  %v1909_v12 = vmul.f32 1.442695, %v1840_v37  ;;  %v1647_v3 = vmul.f32 1.442695, %v6215_v2  ;;  %v5377_v32 = vpop.eup %3978 }
 0x2cc   : > { %3990 = vpow2.f32 %v1643_v25  ;;  %v1693_v51 = vpop.permute.xlu1 %1692  ;;  %v1649_v27 = vmul.f32 1.442695, %v6216_v33  ;;  %v6222_v0 = vld [vmem:[#allocation68_spill] sm:$0xff] }
 0x2cd   : > { %3992 = vpow2.f32 %v1907_v44  ;;  %v1841_v53 = vsub.f32 %v4645_v5, %v1693_v51  ;;  %v1842_v10 = vsub.f32 %v4647_v6, %v1693_v51  ;;  %2326 = vperm.xlu1 %3899, %v5347_v56   ;;  %2321 = vperm.xlu0 %3898, %v5342_v42   ;;  %v1651_v5 = vmul.f32 1.442695, %v1599_v58  ;;  %v6224_v44 = vld [vmem:[#allocation11_spill] sm:$0xff] }
 0x2ce   : > { %3994 = vpow2.f32 %v1909_v12  ;;  %v1600_v6 = vsub.f32 %v5171_v26, %v5177_v24  ;;  %v6218_v24 = vld [vmem:[#allocation64_spill] sm:$0xff]  ;;  %v1603_v37 = vsub.f32 %v6222_v0, %v6221_v22 }
 0x2cf   : > { %3996 = vpow2.f32 %v1645_v41  ;;  %v1911_v29 = vmul.f32 1.442695, %v1841_v53  ;;  %v1913_v35 = vmul.f32 1.442695, %v1842_v10  ;;  %v1601_v26 = vsub.f32 %v6218_v24, %v6217_v54  ;;  %v6226_v54 = vld [vmem:[#allocation13_spill] sm:$0xff] }
 0x2d0   : > { %3998 = vpow2.f32 %v1647_v3  ;;  %v1698_v50 = vpop.permute.xlu1 %1697  ;;  %v1604_v3 = vsub.f32 %v5203_v14, %v5212_v40  ;;  %v6225_v14 = vld [vmem:[#allocation12_spill] sm:$0xff] }
 0x2d1   : > { %4000 = vpow2.f32 %v1911_v29  ;;  %v1843_v57 = vsub.f32 %v4651_v8, %v1698_v50  ;;  %v1844_v15 = vsub.f32 %v4653_v9, %v1698_v50  ;;  %2336 = vperm.xlu1 %3899, %v5360_v38   ;;  %2331 = vperm.xlu0 %3898, %v5358_v36   ;;  %v1653_v8 = vmul.f32 1.442695, %v1600_v6  ;;  %v6220_v9 = vld [vmem:[#allocation66_spill] sm:$0xff] }
 0x2d2   : > { %4002 = vpow2.f32 %v1913_v35  ;;  %v1602_v63 = vsub.f32 %v6220_v9, %v6219_v4  ;;  %v1655_v53 = vmul.f32 1.442695, %v1601_v26  ;;  %v1606_v9 = vsub.f32 %v5225_v13, %v5234_v43 }
 0x2d3   : > { %4004 = vpow2.f32 %v1649_v27  ;;  %v1915_v45 = vmul.f32 1.442695, %v1843_v57  ;;  %v1917_v59 = vmul.f32 1.442695, %v1844_v15  ;;  %v1659_v15 = vmul.f32 1.442695, %v1603_v37 }
 0x2d4   : > { %v3981_v60 = vpop.eup %3980  ;;  %4006 = vpow2.f32 %v1651_v5  ;;  %v1703_v25 = vpop.permute.xlu1 %1702  ;;  %v1657_v35 = vmul.f32 1.442695, %v1602_v63  ;;  %v6230_v37 = vld [vmem:[#allocation15_spill] sm:$0xff]  ;;  %v1608_v43 = vsub.f32 %v5250_v62, %v5262_v18  ;;  %v6234_v62 = vld [vmem:[#allocation17_spill] sm:$0xff] }
 0x2d5   : > { %v3983_v31 = vpop.eup %3982  ;;  %4008 = vpow2.f32 %v1915_v45  ;;  %v1845_v41 = vsub.f32 %v6223_v39, %v1703_v25  ;;  %v1846_v12 = vsub.f32 %v6224_v44, %v1703_v25  ;;  %2346 = vperm.xlu1 %3899, %v5369_v28   ;;  %2341 = vperm.xlu0 %3898, %v5365_v48   ;;  %v1661_v45 = vmul.f32 1.442695, %v1604_v3 }
 0x2d6   : > { %v3985_v2 = vpop.eup %3984  ;;  %4010 = vpow2.f32 %v1917_v59  ;;  %v5391_v58 = vadd.f32 %v3983_v31, %v3981_v60  ;;  %v1605_v59 = vsub.f32 %v5214_v19, %v5223_v23  ;;  %v1607_v19 = vsub.f32 %v5236_v17, %v5248_v49  ;;  %v6229_v23 = vld [vmem:[#allocation14_spill] sm:$0xff] }
 0x2d7   : > { %v3987_v51 = vpop.eup %3986  ;;  %v1919_v10 = vmul.f32 1.442695, %v1845_v41  ;;  %v1921_v33 = vmul.f32 1.442695, %v1846_v12  ;;  %v2476_v27 = vpack.c.bf16 %v3985_v2, %v3981_v60  ;;  %4012 = vpow2.f32 %v1653_v8 }
 0x2d8   : > { %v5393_v29 = vpop.eup %3988  ;;  %v1708_v5 = vpop.permute.xlu1 %1707  ;;  %v2477_v6 = vpack.c.bf16 %v3987_v51, %v3983_v31  ;;  %v5395_v50 = vadd.f32 %v3987_v51, %v3985_v2  ;;  %v1663_v13 = vmul.f32 1.442695, %v1605_v59  ;;  %v1665_v49 = vmul.f32 1.442695, %v1606_v9  ;;  %v6237_v9 = vld [vmem:[#allocation19_spill] sm:$0xff] }
 0x2d9   : > { %v5397_v57 = vpop.eup %3990  ;;  %4014 = vpow2.f32 %v1919_v10  ;;  %v1847_v40 = vsub.f32 %v6225_v14, %v1708_v5  ;;  %v1848_v24 = vsub.f32 %v6226_v54, %v1708_v5  ;;  %2356 = vperm.xlu1 %3899, %v5377_v32   ;;  %2351 = vperm.xlu0 %3898, %v5375_v30   ;;  %v1609_v14 = vsub.f32 %v5266_v20, %v5279_v16 }
 0x2da   : > { %v3993_v26 = vpop.eup %3992  ;;  %4016 = vpow2.f32 %v1921_v33  ;;  %2668 = vmatprep.mubr.bf16.mxu0 %v2477_v6 }
 0x2db   : > { %v3995_v60 = vpop.eup %3994  ;;  %4018 = vpow2.f32 %v1655_v53  ;;  %v1923_v8 = vmul.f32 1.442695, %v1847_v40  ;;  %2669 = vmatmul.mubr.bf16.vlgmr.msra.gmra.mxu0 %v2476_v27  ;;  %v1925_v63 = vmul.f32 1.442695, %v1848_v24  ;;  %v1667_v27 = vmul.f32 1.442695, %v1607_v19 }
 0x2dc   : > { %v5405_v4 = vpop.eup %3996  ;;  %4020 = vpow2.f32 %v1657_v35  ;;  %v1713_v25 = vpop.permute.xlu1 %1712  ;;  %v5409_v31 = vadd.f32 %v3995_v60, %v3993_v26  ;;  %v6233_v35 = vld [vmem:[#allocation16_spill] sm:$0xff]  ;;  %v1671_v16 = vmul.f32 1.442695, %v1609_v14 }
 0x2dd   : > { %6227 = vst [vmem:[#allocation65_spill] sm:$0xff] %v5405_v4  ;;  %v5411_v22 = vpop.eup %3998  ;;  %4022 = vpow2.f32 %v1659_v15  ;;  %v1849_v0 = vsub.f32 %v6229_v23, %v1713_v25  ;;  %v1850_v39 = vsub.f32 %v6230_v37, %v1713_v25  ;;  %2366 = vperm.xlu1 %3899, %v5397_v57   ;;  %2361 = vperm.xlu0 %3898, %v5393_v29   ;;  %v1669_v15 = vmul.f32 1.442695, %v1608_v43 }
 0x2de   : > { %6228 = vst [vmem:[#allocation64_spill] sm:$0xff] %v5411_v22  ;;  %v4001_v41 = vpop.eup %4000  ;;  %4024 = vpow2.f32 %v1661_v45 }
 0x2df   : > { %v4003_v44 = vpop.eup %4002  ;;  %4026 = vpow2.f32 %v1923_v8  ;;  %v1927_v12 = vmul.f32 1.442695, %v1849_v0  ;;  %v1929_v2 = vmul.f32 1.442695, %v1850_v39  ;;  %v2478_v3 = vpack.c.bf16 %v4001_v41, %v3993_v26 }
 0x2e0   : > { %v5421_v17 = vpop.eup %4004  ;;  %4028 = vpow2.f32 %v1925_v63  ;;  %v1718_v51 = vpop.permute.xlu1 %1717  ;;  %v2479_v53 = vpack.c.bf16 %v4003_v44, %v3995_v60  ;;  %v5423_v10 = vadd.f32 %v4003_v44, %v4001_v41  ;;  %v6236_v60 = vld [vmem:[#allocation18_spill] sm:$0xff]  ;;  %v6240_v44 = vld [vmem:[#allocation20_spill] sm:$0xff] }
 0x2e1   : > { %6231 = vst [vmem:[#allocation67_spill] sm:$0xff] %v5421_v17  ;;  %v5425_v33 = vpop.eup %4006  ;;  %4030 = vpow2.f32 %v1927_v12  ;;  %v1851_v5 = vsub.f32 %v6233_v35, %v1718_v51  ;;  %v1852_v18 = vsub.f32 %v6234_v62, %v1718_v51  ;;  %2376 = vperm.xlu1 %3899, %v5411_v22   ;;  %2371 = vperm.xlu0 %3898, %v5405_v4   ;;  %v6274_v22 = vld [vmem:[#allocation47_spill] sm:$0xff] }
 0x2e2   : > { %6232 = vst [vmem:[#allocation66_spill] sm:$0xff] %v5425_v33  ;;  %v4009_v6 = vpop.eup %4008  ;;  %4032 = vpow2.f32 %v1929_v2  ;;  %2676 = vmatprep.mubr.bf16.mxu0 %v2479_v53  ;;  %v6241_v2 = vld [vmem:[#allocation21_spill] sm:$0xff] }
 0x2e3   : > { %v4011_v40 = vpop.eup %4010  ;;  %4034 = vpow2.f32 %v1663_v13  ;;  %v1931_v54 = vmul.f32 1.442695, %v1851_v5  ;;  %2677 = vmatmul.mubr.bf16.gmra.mxu0 %v2478_v3  ;;  %v1933_v24 = vmul.f32 1.442695, %v1852_v18  ;;  %v6244_v18 = vld [vmem:[#allocation22_spill] sm:$0xff] }
 0x2e4   : > { %4036 = vpow2.f32 %v1665_v49  ;;  %v1723_v26 = vpop.permute.xlu0 %1722  ;;  %v5433_v45 = vadd.f32 %v4011_v40, %v4009_v6  ;;  %v5435_v59 = vpop.eup %4012 }
 0x2e5   : > { %6235 = vst [vmem:[#allocation69_spill] sm:$0xff] %v5435_v59  ;;  %4038 = vpow2.f32 %v1667_v27  ;;  %v1853_v8 = vsub.f32 %v6236_v60, %v1723_v26  ;;  %v1854_v63 = vsub.f32 %v6237_v9, %v1723_v26  ;;  %2386 = vperm.xlu1 %3899, %v5425_v33   ;;  %2381 = vperm.xlu0 %3898, %v5421_v17   ;;  %v6270_v17 = vld [vmem:[#allocation43_spill] sm:$0xff] }
 0x2e6   : > { %v4015_v20 = vpop.eup %4014  ;;  %4040 = vpow2.f32 %v1669_v15  ;;  %v6245_v15 = vld [vmem:[#allocation23_spill] sm:$0xff] }
 0x2e7   : > { %v4017_v25 = vpop.eup %4016  ;;  %4042 = vpow2.f32 %v1931_v54  ;;  %v1935_v19 = vmul.f32 1.442695, %v1853_v8  ;;  %v1937_v23 = vmul.f32 1.442695, %v1854_v63  ;;  %v2480_v0 = vpack.c.bf16 %v4015_v20, %v4009_v6 }
 0x2e8   : > { %v5441_v37 = vpop.eup %4018  ;;  %4044 = vpow2.f32 %v1933_v24  ;;  %v1728_v39 = vpop.permute.xlu1 %1727  ;;  %v2481_v41 = vpack.c.bf16 %v4017_v25, %v4011_v40  ;;  %v5443_v13 = vadd.f32 %v4017_v25, %v4015_v20  ;;  %v6248_v25 = vld [vmem:[#allocation24_spill] sm:$0xff] }
 0x2e9   : > { %6238 = vst [vmem:[#allocation68_spill] sm:$0xff] %v5441_v37  ;;  %v5445_v43 = vpop.eup %4020  ;;  %4046 = vpow2.f32 %v1935_v19  ;;  %v1855_v12 = vsub.f32 %v6240_v44, %v1728_v39  ;;  %v1856_v3 = vsub.f32 %v6241_v2, %v1728_v39  ;;  %2396 = vperm.xlu1 %3899, %v5441_v37   ;;  %2391 = vperm.xlu0 %3898, %v5435_v59  }
 0x2ea   : > { %6239 = vst [vmem:[#allocation10_spill] sm:$0xff] %v5445_v43  ;;  %v5451_v49 = vpop.eup %4022  ;;  %4048 = vpow2.f32 %v1937_v23  ;;  %2684 = vmatprep.mubr.bf16.mxu0 %v2481_v41  ;;  %v6249_v23 = vld [vmem:[#allocation25_spill] sm:$0xff] }
 0x2eb   : > { %6242 = vst [vmem:[#allocation11_spill] sm:$0xff] %v5451_v49  ;;  %v5453_v51 = vpop.eup %4024  ;;  %4050 = vpow2.f32 %v1671_v16  ;;  %v1939_v53 = vmul.f32 1.442695, %v1855_v12  ;;  %2685 = vmatmul.mubr.bf16.gmra.mxu0 %v2480_v0  ;;  %v1941_v35 = vmul.f32 1.442695, %v1856_v3 }
 0x2ec   : > { %6243 = vst [vmem:[#allocation12_spill] sm:$0xff] %v5453_v51  ;;  %v5455_v27 = vpop.eup %4026  ;;  %v1733_v5 = vpop.permute.xlu0 %1732 }
 0x2ed   : > { %v5457_v62 = vpop.eup %4028  ;;  %v1857_v6 = vsub.f32 %v6244_v18, %v1733_v5  ;;  %v1858_v14 = vsub.f32 %v6245_v15, %v1733_v5  ;;  %2406 = vperm.xlu1 %3899, %v5451_v49   ;;  %2401 = vperm.xlu0 %3898, %v5445_v43   ;;  %4052 = vpow2.f32 %v1939_v53  ;;  %v6253_v18 = vld [vmem:[#allocation27_spill] sm:$0xff] }
 0x2ee   : > { %v4031_v40 = vpop.eup %4030  ;;  %4054 = vpow2.f32 %v1941_v35  ;;  %v6252_v35 = vld [vmem:[#allocation26_spill] sm:$0xff]  ;;  %v6266_v43 = vld [vmem:[#allocation39_spill] sm:$0xff] }
 0x2ef   : > { %v4033_v54 = vpop.eup %4032  ;;  %v1943_v24 = vmul.f32 1.442695, %v1857_v6  ;;  %v1945_v26 = vmul.f32 1.442695, %v1858_v14  ;;  %v2482_v60 = vpack.c.bf16 %v4031_v40, %v5455_v27 }
 0x2f0   : > { %v5464_v8 = vpop.eup %4034  ;;  %v1738_v9 = vpop.permute.xlu1 %1737  ;;  %v2483_v63 = vpack.c.bf16 %v4033_v54, %v5457_v62  ;;  %v5467_v20 = vadd.f32 %v4033_v54, %v4031_v40 }
 0x2f1   : > { %6246 = vst [vmem:[#allocation13_spill] sm:$0xff] %v5464_v8  ;;  %v5469_v16 = vpop.eup %4036  ;;  %4056 = vpow2.f32 %v1943_v24  ;;  %v1859_v19 = vsub.f32 %v6248_v25, %v1738_v9  ;;  %v1860_v0 = vsub.f32 %v6249_v23, %v1738_v9  ;;  %2416 = vperm.xlu1 %3899, %v5464_v8   ;;  %2411 = vperm.xlu0 %3898, %v5453_v51  }
 0x2f2   : > { %6247 = vst [vmem:[#allocation14_spill] sm:$0xff] %v5469_v16  ;;  %v5475_v39 = vpop.eup %4038  ;;  %4058 = vpow2.f32 %v1945_v26  ;;  %2692 = vmatprep.mubr.bf16.mxu0 %v2483_v63  ;;  %v6255_v63 = vld [vmem:[#allocation28_spill] sm:$0xff] }
 0x2f3   : > { %6250 = vst [vmem:[#allocation15_spill] sm:$0xff] %v5475_v39  ;;  %v5477_v41 = vpop.eup %4040  ;;  %v1947_v44 = vmul.f32 1.442695, %v1859_v19  ;;  %2693 = vmatmul.mubr.bf16.gmra.mxu0 %v2482_v60  ;;  %v1949_v2 = vmul.f32 1.442695, %v1860_v0  ;;  %v6256_v19 = vld [vmem:[#allocation29_spill] sm:$0xff] }
 0x2f4   : > { %6251 = vst [vmem:[#allocation16_spill] sm:$0xff] %v5477_v41  ;;  %v5479_v12 = vpop.eup %4042  ;;  %v1743_v3 = vpop.permute.xlu0 %1742 }
 0x2f5   : > { %v5481_v53 = vpop.eup %4044  ;;  %v1861_v5 = vsub.f32 %v6252_v35, %v1743_v3  ;;  %v1862_v6 = vsub.f32 %v6253_v18, %v1743_v3  ;;  %2426 = vperm.xlu1 %3899, %v5475_v39   ;;  %2421 = vperm.xlu0 %3898, %v5469_v16   ;;  %4060 = vpow2.f32 %v1947_v44  ;;  %v6262_v16 = vld [vmem:[#allocation35_spill] sm:$0xff] }
 0x2f6   : > { %v5487_v15 = vpop.eup %4046  ;;  %4062 = vpow2.f32 %v1949_v2 }
 0x2f7   : > { %v5489_v14 = vpop.eup %4048  ;;  %v1951_v40 = vmul.f32 1.442695, %v1861_v5  ;;  %v1953_v54 = vmul.f32 1.442695, %v1862_v6  ;;  %v2484_v24 = vpack.c.bf16 %v5487_v15, %v5479_v12  ;;  %v6257_v5 = vld [vmem:[#allocation30_spill] sm:$0xff]  ;;  %v6258_v6 = vld [vmem:[#allocation31_spill] sm:$0xff] }
 0x2f8   : > { %v5493_v26 = vpop.eup %4050  ;;  %v1748_v60 = vpop.permute.xlu1 %1747  ;;  %v2485_v9 = vpack.c.bf16 %v5489_v14, %v5481_v53 }
 0x2f9   : > { %6254 = vst [vmem:[#allocation17_spill] sm:$0xff] %v5493_v26  ;;  %4064 = vpow2.f32 %v1951_v40  ;;  %v1863_v25 = vsub.f32 %v6255_v63, %v1748_v60  ;;  %v1864_v23 = vsub.f32 %v6256_v19, %v1748_v60  ;;  %2436 = vperm.xlu1 %3899, %v5493_v26   ;;  %2431 = vperm.xlu0 %3898, %v5477_v41  }
 0x2fa   : > { %4066 = vpow2.f32 %v1953_v54  ;;  %2700 = vmatprep.mubr.bf16.mxu0 %v2485_v9  ;;  %v5501_v44 = vpop.eup %4052 }
 0x2fb   : > { %v1955_v0 = vmul.f32 1.442695, %v1863_v25  ;;  %2701 = vmatmul.mubr.bf16.gmra.mxu0 %v2484_v24  ;;  %v1957_v2 = vmul.f32 1.442695, %v1864_v23  ;;  %v5503_v35 = vpop.eup %4054  ;;  %v6259_v23 = vld [vmem:[#allocation32_spill] sm:$0xff] }
 0x2fc   : > { %v1753_v3 = vpop.permute.xlu0 %1752 }
 0x2fd   : > { %v1865_v18 = vsub.f32 %v6257_v5, %v1753_v3  ;;  %v1866_v40 = vsub.f32 %v6258_v6, %v1753_v3  ;;  %4068 = vpow2.f32 %v1955_v0 }
 0x2fe   : > { %v5507_v63 = vpop.eup %4056  ;;  %4070 = vpow2.f32 %v1957_v2  ;;  %v6261_v2 = vld [vmem:[#allocation34_spill] sm:$0xff] }
 0x2ff   : > { %v5509_v60 = vpop.eup %4058  ;;  %v1959_v19 = vmul.f32 1.442695, %v1865_v18  ;;  %v1961_v54 = vmul.f32 1.442695, %v1866_v40  ;;  %v2486_v24 = vpack.c.bf16 %v5507_v63, %v5501_v44 }
 0x300   : > { %v1758_v9 = vpop.permute.xlu1 %1757  ;;  %v2487_v25 = vpack.c.bf16 %v5509_v60, %v5503_v35 }
 0x301   : > { %4072 = vpow2.f32 %v1959_v19  ;;  %v1867_v5 = vsub.f32 %v6259_v23, %v1758_v9  ;;  %v1868_v3 = vsub.f32 %v6260_v46, %v1758_v9  ;;  %v6263_v23 = vld [vmem:[#allocation36_spill] sm:$0xff] }
 0x302   : > { %4074 = vpow2.f32 %v1961_v54  ;;  %2708 = vmatprep.mubr.bf16.mxu0 %v2487_v25  ;;  %v5517_v0 = vpop.eup %4060 }
 0x303   : > { %v1963_v6 = vmul.f32 1.442695, %v1867_v5  ;;  %2709 = vmatmul.mubr.bf16.gmra.mxu0 %v2486_v24  ;;  %v1965_v18 = vmul.f32 1.442695, %v1868_v3  ;;  %v5519_v41 = vpop.eup %4062  ;;  %v6264_v3 = vld [vmem:[#allocation37_spill] sm:$0xff] }
 0x304   : > { %v1763_v40 = vpop.permute.xlu0 %1762 }
 0x305   : > { %v1869_v26 = vsub.f32 %v6261_v2, %v1763_v40  ;;  %v1870_v39 = vsub.f32 %v6262_v16, %v1763_v40  ;;  %4076 = vpow2.f32 %v1963_v6 }
 0x306   : > { %v5523_v51 = vpop.eup %4064  ;;  %4078 = vpow2.f32 %v1965_v18  ;;  %v6265_v18 = vld [vmem:[#allocation38_spill] sm:$0xff] }
 0x307   : > { %v5525_v19 = vpop.eup %4066  ;;  %v1967_v46 = vmul.f32 1.442695, %v1869_v26  ;;  %v1969_v54 = vmul.f32 1.442695, %v1870_v39  ;;  %v2488_v24 = vpack.c.bf16 %v5523_v51, %v5517_v0 }
 0x308   : > { %v1768_v9 = vpop.permute.xlu1 %1767  ;;  %v2489_v25 = vpack.c.bf16 %v5525_v19, %v5519_v41 }
 0x309   : > { %4080 = vpow2.f32 %v1967_v46  ;;  %v1871_v5 = vsub.f32 %v6263_v23, %v1768_v9  ;;  %v1872_v16 = vsub.f32 %v6264_v3, %v1768_v9 }
 0x30a   : > { %4082 = vpow2.f32 %v1969_v54  ;;  %2716 = vmatprep.mubr.bf16.mxu0 %v2489_v25  ;;  %v5533_v6 = vpop.eup %4068 }
 0x30b   : > { %v1971_v40 = vmul.f32 1.442695, %v1871_v5  ;;  %2717 = vmatmul.mubr.bf16.gmra.mxu0 %v2488_v24  ;;  %v1973_v39 = vmul.f32 1.442695, %v1872_v16  ;;  %v5535_v2 = vpop.eup %4070  ;;  %v6267_v5 = vld [vmem:[#allocation40_spill] sm:$0xff]  ;;  %v6268_v16 = vld [vmem:[#allocation41_spill] sm:$0xff] }
 0x30c   : > { %v1773_v26 = vpop.permute.xlu0 %1772 }
 0x30d   : > { %v1873_v8 = vsub.f32 %v6265_v18, %v1773_v26  ;;  %v1874_v49 = vsub.f32 %v6266_v43, %v1773_v26  ;;  %4084 = vpow2.f32 %v1971_v40 }
 0x30e   : > { %v5539_v59 = vpop.eup %4072  ;;  %4086 = vpow2.f32 %v1973_v39  ;;  %v6269_v39 = vld [vmem:[#allocation42_spill] sm:$0xff] }
 0x30f   : > { %v5541_v46 = vpop.eup %4074  ;;  %v1975_v9 = vmul.f32 1.442695, %v1873_v8  ;;  %v1977_v54 = vmul.f32 1.442695, %v1874_v49  ;;  %v2490_v24 = vpack.c.bf16 %v5539_v59, %v5533_v6 }
 0x310   : > { %v1778_v25 = vpop.permute.xlu1 %1777  ;;  %v2491_v23 = vpack.c.bf16 %v5541_v46, %v5535_v2 }
 0x311   : > { %4088 = vpow2.f32 %v1975_v9  ;;  %v1875_v3 = vsub.f32 %v6267_v5, %v1778_v25  ;;  %v1876_v43 = vsub.f32 %v6268_v16, %v1778_v25  ;;  %v6272_v16 = vld [vmem:[#allocation45_spill] sm:$0xff] }
 0x312   : > { %4090 = vpow2.f32 %v1977_v54  ;;  %2724 = vmatprep.mubr.bf16.mxu0 %v2491_v23  ;;  %v5549_v40 = vpop.eup %4076 }
 0x313   : > { %v1979_v26 = vmul.f32 1.442695, %v1875_v3  ;;  %2725 = vmatmul.mubr.bf16.gmra.mxu0 %v2490_v24  ;;  %v1981_v49 = vmul.f32 1.442695, %v1876_v43  ;;  %v5551_v18 = vpop.eup %4078  ;;  %v6271_v3 = vld [vmem:[#allocation44_spill] sm:$0xff] }
 0x314   : > { %v1783_v8 = vpop.permute.xlu0 %1782 }
 0x315   : > { %v1877_v37 = vsub.f32 %v6269_v39, %v1783_v8  ;;  %v1878_v33 = vsub.f32 %v6270_v17, %v1783_v8  ;;  %4092 = vpow2.f32 %v1979_v26 }
 0x316   : > { %v5555_v4 = vpop.eup %4080  ;;  %4094 = vpow2.f32 %v1981_v49  ;;  %v6273_v49 = vld [vmem:[#allocation46_spill] sm:$0xff] }
 0x317   : > { %v5557_v9 = vpop.eup %4082  ;;  %v1983_v25 = vmul.f32 1.442695, %v1877_v37  ;;  %v1985_v54 = vmul.f32 1.442695, %v1878_v33  ;;  %v2492_v24 = vpack.c.bf16 %v5555_v4, %v5549_v40 }
 0x318   : > { %2095 = vadd.xlane.f32.xlu0 %v5395_v50  ;;  %v1788_v23 = vpop.permute.xlu1 %1787  ;;  %v2493_v5 = vpack.c.bf16 %v5557_v9, %v5551_v18 }
 0x319   : > { %4096 = vpow2.f32 %v1983_v25  ;;  %v1879_v17 = vsub.f32 %v6271_v3, %v1788_v23  ;;  %v1880_v43 = vsub.f32 %v6272_v16, %v1788_v23  ;;  %v6276_v16 = vld [vmem:[#allocation49_spill] sm:$0xff] }
 0x31a   : > { %4098 = vpow2.f32 %v1985_v54  ;;  %2732 = vmatprep.mubr.bf16.mxu0 %v2493_v5  ;;  %v5566_v33 = vpop.eup %4084 }
 0x31b   : > { %v1987_v26 = vmul.f32 1.442695, %v1879_v17  ;;  %2733 = vmatmul.mubr.bf16.gmra.mxu0 %v2492_v24  ;;  %v1989_v37 = vmul.f32 1.442695, %v1880_v43  ;;  %v5569_v50 = vpop.eup %4086 }
 0x31c   : > { %v1793_v8 = vpop.permute.xlu0 %1792  ;;  %2098 = vadd.xlane.f32.xlu0 %v5409_v31 }
 0x31d   : > { %v1881_v39 = vsub.f32 %v6273_v49, %v1793_v8  ;;  %v1882_v25 = vsub.f32 %v6274_v22, %v1793_v8  ;;  %2092 = vadd.xlane.f32.xlu1 %v5391_v58  ;;  %4100 = vpow2.f32 %v1987_v26  ;;  %v6275_v22 = vld [vmem:[#allocation48_spill] sm:$0xff]  ;;  %v2109_v26 = vadd.f32 %v5457_v62, %v5455_v27 }
 0x31e   : > { %v5574_v3 = vpop.eup %4088  ;;  %4102 = vpow2.f32 %v1989_v37  ;;  %v2115_v27 = vadd.f32 %v5481_v53, %v5479_v12  ;;  %v2121_v12 = vadd.f32 %v5503_v35, %v5501_v44  ;;  %v2127_v44 = vadd.f32 %v5519_v41, %v5517_v0  ;;  %v6284_v0 = vld [vmem:[#allocation57_spill] sm:$0xff] }
 0x31f   : > { %v5576_v54 = vpop.eup %4090  ;;  %v1991_v24 = vmul.f32 1.442695, %v1881_v39  ;;  %v1993_v23 = vmul.f32 1.442695, %v1882_v25  ;;  %v2494_v5 = vpack.c.bf16 %v5574_v3, %v5566_v33  ;;  %v6277_v25 = vld [vmem:[#allocation50_spill] sm:$0xff] }
 0x320   : > { %2104 = vadd.xlane.f32.xlu0 %v5433_v45  ;;  %v1798_v31 = vpop.permute.xlu1 %1797  ;;  %v2495_v17 = vpack.c.bf16 %v5576_v54, %v5569_v50 }
 0x321   : > { %4104 = vpow2.f32 %v1991_v24  ;;  %v1883_v58 = vsub.f32 %v6275_v22, %v1798_v31  ;;  %v1884_v43 = vsub.f32 %v6276_v16, %v1798_v31  ;;  %2101 = vadd.xlane.f32.xlu1 %v5423_v10  ;;  %v6278_v22 = vld [vmem:[#allocation51_spill] sm:$0xff] }
 0x322   : > { %4106 = vpow2.f32 %v1993_v23  ;;  %2740 = vmatprep.mubr.bf16.mxu0 %v2495_v17  ;;  %v5588_v37 = vpop.eup %4092 }
 0x323   : > { %v1995_v8 = vmul.f32 1.442695, %v1883_v58  ;;  %2741 = vmatmul.mubr.bf16.gmra.mxu0 %v2494_v5  ;;  %v1997_v45 = vmul.f32 1.442695, %v1884_v43  ;;  %v5590_v39 = vpop.eup %4094 }
 0x324   : > { %v1803_v49 = vpop.permute.xlu0 %1802  ;;  %2110 = vadd.xlane.f32.xlu0 %v2109_v26  ;;  %v6280_v26 = vld [vmem:[#allocation53_spill] sm:$0xff] }
 0x325   : > { %v1885_v24 = vsub.f32 %v6277_v25, %v1803_v49  ;;  %v1886_v31 = vsub.f32 %v6278_v22, %v1803_v49  ;;  %2107 = vadd.xlane.f32.xlu1 %v5443_v13  ;;  %4108 = vpow2.f32 %v1995_v8  ;;  %v6279_v13 = vld [vmem:[#allocation52_spill] sm:$0xff]  ;;  %v2118_v8 = vadd.f32 %v5489_v14, %v5487_v15 }
 0x326   : > { %v5595_v10 = vpop.eup %4096  ;;  %4110 = vpow2.f32 %v1997_v45  ;;  %v2124_v15 = vadd.f32 %v5509_v60, %v5507_v63  ;;  %v2133_v63 = vadd.f32 %v5535_v2, %v5533_v6  ;;  %v2139_v6 = vadd.f32 %v5551_v18, %v5549_v40  ;;  %v6288_v40 = vld [vmem:[#allocation61_spill] sm:$0xff] }
 0x327   : > { %v5599_v62 = vpop.eup %4098  ;;  %v1999_v23 = vmul.f32 1.442695, %v1885_v24  ;;  %v2001_v5 = vmul.f32 1.442695, %v1886_v31  ;;  %v2496_v17 = vpack.c.bf16 %v5595_v10, %v5588_v37  ;;  %v6281_v31 = vld [vmem:[#allocation54_spill] sm:$0xff] }
 0x328   : > { %2116 = vadd.xlane.f32.xlu0 %v2115_v27  ;;  %v1808_v58 = vpop.permute.xlu1 %1807  ;;  %v2497_v16 = vpack.c.bf16 %v5599_v62, %v5590_v39 }
 0x329   : > { %4112 = vpow2.f32 %v1999_v23  ;;  %v1887_v43 = vsub.f32 %v6279_v13, %v1808_v58  ;;  %v1888_v49 = vsub.f32 %v6280_v26, %v1808_v58  ;;  %2113 = vadd.xlane.f32.xlu1 %v5467_v20  ;;  %v6282_v20 = vld [vmem:[#allocation55_spill] sm:$0xff] }
 0x32a   : > { %4114 = vpow2.f32 %v2001_v5  ;;  %2748 = vmatprep.mubr.bf16.mxu0 %v2497_v16  ;;  %v5612_v45 = vpop.eup %4100 }
 0x32b   : > { %v2003_v53 = vmul.f32 1.442695, %v1887_v43  ;;  %2749 = vmatmul.mubr.bf16.gmra.mxu0 %v2496_v17  ;;  %v2005_v25 = vmul.f32 1.442695, %v1888_v49  ;;  %v5614_v22 = vpop.eup %4102  ;;  %v6283_v43 = vld [vmem:[#allocation56_spill] sm:$0xff]  ;;  %v2130_v49 = vadd.f32 %v5525_v19, %v5523_v51  ;;  %v2136_v51 = vadd.f32 %v5541_v46, %v5539_v59 }
 0x32c   : > { %v1813_v24 = vpop.permute.xlu0 %1812  ;;  %2122 = vadd.xlane.f32.xlu0 %v2121_v12  ;;  %v2145_v59 = vadd.f32 %v5569_v50, %v5566_v33  ;;  %v2148_v33 = vadd.f32 %v5576_v54, %v5574_v3 }
 0x32d   : > { %v1889_v27 = vsub.f32 %v6281_v31, %v1813_v24  ;;  %v1890_v23 = vsub.f32 %v6282_v20, %v1813_v24  ;;  %2119 = vadd.xlane.f32.xlu1 %v2118_v8  ;;  %4116 = vpow2.f32 %v2003_v53  ;;  %v6285_v31 = vld [vmem:[#allocation58_spill] sm:$0xff]  ;;  %v6286_v20 = vld [vmem:[#allocation59_spill] sm:$0xff] }
 0x32e   : > { %v5618_v5 = vpop.eup %4104  ;;  %4118 = vpow2.f32 %v2005_v25 }
 0x32f   : > { %v5624_v14 = vpop.eup %4106  ;;  %v2007_v35 = vmul.f32 1.442695, %v1889_v27  ;;  %v2009_v17 = vmul.f32 1.442695, %v1890_v23  ;;  %v2498_v58 = vpack.c.bf16 %v5618_v5, %v5612_v45 }
 0x330   : > { %2128 = vadd.xlane.f32.xlu0 %v2127_v44  ;;  %v1818_v16 = vpop.permute.xlu1 %1817  ;;  %v2499_v13 = vpack.c.bf16 %v5624_v14, %v5614_v22 }
 0x331   : > { %4120 = vpow2.f32 %v2007_v35  ;;  %v1891_v41 = vsub.f32 %v6283_v43, %v1818_v16  ;;  %v1892_v26 = vsub.f32 %v6284_v0, %v1818_v16  ;;  %2125 = vadd.xlane.f32.xlu1 %v2124_v15 }
 0x332   : > { %4122 = vpow2.f32 %v2009_v17  ;;  %2756 = vmatprep.mubr.bf16.mxu0 %v2499_v13  ;;  %v5636_v12 = vpop.eup %4108  ;;  %v6287_v13 = vld [vmem:[#allocation60_spill] sm:$0xff] }
 0x333   : > { %v2011_v60 = vmul.f32 1.442695, %v1891_v41  ;;  %2757 = vmatmul.mubr.bf16.gmra.mxu0 %v2498_v58  ;;  %v2013_v53 = vmul.f32 1.442695, %v1892_v26  ;;  %v4111_v24 = vpop.eup %4110  ;;  %v2142_v41 = vadd.f32 %v5557_v9, %v5555_v4 }
 0x334   : > { %v1823_v8 = vpop.permute.xlu0 %1822  ;;  %2134 = vadd.xlane.f32.xlu0 %v2133_v63  ;;  %v5638_v25 = vpop.permute.xlu1 %2291 }
 0x335   : > { %v1893_v27 = vsub.f32 %v6285_v31, %v1823_v8  ;;  %v1894_v23 = vsub.f32 %v6286_v20, %v1823_v8  ;;  %2131 = vadd.xlane.f32.xlu1 %v2130_v49  ;;  %4124 = vpow2.f32 %v2011_v60  ;;  %v6289_v49 = vld [vmem:[#allocation62_spill] sm:$0xff]  ;;  %v6290_v8 = vld [vmem:[#allocation63_spill] sm:$0xff]  ;;  %v2151_v20 = vadd.f32 %v5590_v39, %v5588_v37 }
 0x336   : > { %v5642_v44 = vpop.eup %4112  ;;  %4126 = vpow2.f32 %v2013_v53  ;;  %v2154_v37 = vadd.f32 %v5599_v62, %v5595_v10 }
 0x337   : > { %v4115_v19 = vpop.eup %4114  ;;  %v2015_v2 = vmul.f32 1.442695, %v1893_v27  ;;  %v2017_v15 = vmul.f32 1.442695, %v1894_v23  ;;  %v2500_v35 = vpack.c.bf16 %v5642_v44, %v5636_v12 }
 0x338   : > { %v5650_v17 = vpop.permute.xlu0 %2286  ;;  %2140 = vadd.xlane.f32.xlu0 %v2139_v6  ;;  %v1828_v58 = vpop.permute.xlu1 %1827  ;;  %v2501_v16 = vpack.c.bf16 %v4115_v19, %v4111_v24  ;;  %v2166_v10 = vadd.f32 %v4115_v19, %v5642_v44 }
 0x339   : > { %4128 = vpow2.f32 %v2015_v2  ;;  %v1895_v43 = vsub.f32 %v6287_v13, %v1828_v58  ;;  %v1896_v18 = vsub.f32 %v6288_v40, %v1828_v58  ;;  %2137 = vadd.xlane.f32.xlu1 %v2136_v51  ;;  %v2157_v51 = vadd.f32 %v5614_v22, %v5612_v45 }
 0x33a   : > { %4130 = vpow2.f32 %v2017_v15  ;;  %2764 = vmatprep.mubr.bf16.mxu0 %v2501_v16  ;;  %v4117_v0 = vpop.eup %4116  ;;  %v2163_v2 = vadd.f32 %v4111_v24, %v5636_v12 }
 0x33b   : > { %v2019_v46 = vmul.f32 1.442695, %v1895_v43  ;;  %2765 = vmatmul.mubr.bf16.gmra.mxu0 %v2500_v35  ;;  %v2021_v26 = vmul.f32 1.442695, %v1896_v18  ;;  %v4119_v60 = vpop.eup %4118  ;;  %v2160_v35 = vadd.f32 %v5624_v14, %v5618_v5 }
 0x33c   : > { %v1833_v63 = vpop.permute.xlu0 %1832  ;;  %2146 = vadd.xlane.f32.xlu0 %v2145_v59  ;;  %v2169_v45 = vadd.f32 %v4119_v60, %v4117_v0  ;;  %v5672_v43 = vpop.permute.xlu1 %2296 }
 0x33d   : > { %v1897_v53 = vsub.f32 %v6289_v49, %v1833_v63  ;;  %v1898_v31 = vsub.f32 %v6290_v8, %v1833_v63  ;;  %2143 = vadd.xlane.f32.xlu1 %v2142_v41  ;;  %4132 = vpow2.f32 %v2019_v46 }
 0x33e   : > { %v4121_v27 = vpop.eup %4120  ;;  %4134 = vpow2.f32 %v2021_v26 }
 0x33f   : > { %v4123_v50 = vpop.eup %4122  ;;  %v2023_v4 = vmul.f32 1.442695, %v1897_v53  ;;  %v2025_v9 = vmul.f32 1.442695, %v1898_v31  ;;  %v2502_v23 = vpack.c.bf16 %v4121_v27, %v4117_v0  ;;  %v6291_v0 = vsub.f32 %v5283_v52, %v5299_v61 }
 0x340   : > { %2152 = vadd.xlane.f32.xlu0 %v2151_v20  ;;  %v2503_v6 = vpack.c.bf16 %v4123_v50, %v4119_v60  ;;  %v5674_v40 = vpop.permute.xlu0 %2301  ;;  %v2172_v5 = vadd.f32 %v4123_v50, %v4121_v27  ;;  %v5676_v19 = vpop.permute.xlu1 %2306 }
 0x341   : > { %4136 = vpow2.f32 %v2023_v4  ;;  %2149 = vadd.xlane.f32.xlu1 %v2148_v33  ;;  %v1673_v26 = vmul.f32 1.442695, %v6291_v0 }
 0x342   : > { %4138 = vpow2.f32 %v2025_v9  ;;  %2772 = vmatprep.mubr.bf16.mxu0 %v2503_v6  ;;  %v4125_v3 = vpop.eup %4124 }
 0x343   : > { %2773 = vmatmul.mubr.bf16.gmra.mxu0 %v2502_v23  ;;  %v4127_v54 = vpop.eup %4126  ;;  %4140 = vpow2.f32 %v1673_v26 }
 0x344   : > { %2158 = vadd.xlane.f32.xlu0 %v2157_v51  ;;  %v2175_v12 = vadd.f32 %v4127_v54, %v4125_v3  ;;  %v5678_v46 = vpop.permute.xlu0 %2311  ;;  %v5683_v63 = vpop.permute.xlu1 %2316 }
 0x345   : > { %2155 = vadd.xlane.f32.xlu1 %v2154_v37 }
 0x346   : > { %v4129_v39 = vpop.eup %4128 }
 0x347   : > { %v4131_v15 = vpop.eup %4130  ;;  %v2504_v58 = vpack.c.bf16 %v4129_v39, %v4125_v3 }
 0x348   : > { %2164 = vadd.xlane.f32.xlu0 %v2163_v2  ;;  %v2505_v16 = vpack.c.bf16 %v4131_v15, %v4127_v54  ;;  %v2178_v44 = vadd.f32 %v4131_v15, %v4129_v39  ;;  %v5685_v60 = vpop.permute.xlu0 %2321  ;;  %v5687_v49 = vpop.permute.xlu1 %2326 }
 0x349   : > { %2161 = vadd.xlane.f32.xlu1 %v2160_v35  ;;  %v2252_v35 = vld [vmem:[#allocation5] sm:$0xff] }
 0x34a   : > { %2780 = vmatprep.mubr.bf16.mxu0 %v2505_v16  ;;  %v4133_v62 = vpop.eup %4132 }
 0x34b   : > { %2781 = vmatmul.mubr.bf16.gmra.mxu0 %v2504_v58  ;;  %v4135_v22 = vpop.eup %4134 }
 0x34c   : > { %2170 = vadd.xlane.f32.xlu0 %v2169_v45  ;;  %v2181_v59 = vadd.f32 %v4135_v22, %v4133_v62  ;;  %v5689_v53 = vpop.permute.xlu0 %2331  ;;  %v5691_v8 = vpop.permute.xlu1 %2336 }
 0x34d   : > { %2167 = vadd.xlane.f32.xlu1 %v2166_v10 }
 0x34e   : > { %v4137_v13 = vpop.eup %4136 }
 0x34f   : > { %v4139_v24 = vpop.eup %4138  ;;  %v2506_v14 = vpack.c.bf16 %v4137_v13, %v4133_v62  ;;  %v2028_v62 = vld [vmem:[#allocation4 + $0x8] sm:$0xff] }
 0x350   : > { %2176 = vadd.xlane.f32.xlu0 %v2175_v12  ;;  %v2507_v18 = vpack.c.bf16 %v4139_v24, %v4135_v22  ;;  %v2184_v41 = vadd.f32 %v4139_v24, %v4137_v13  ;;  %v5693_v31 = vpop.permute.xlu0 %2341  ;;  %v5695_v27 = vpop.eup %4140  ;;  %v2444_v22 = vmul.f32 %v5650_v17, %v2252_v35  ;;  %v2253_v12 = vld [vmem:[#allocation5 + $0x8] sm:$0xff] }
 0x351   : > { %2173 = vadd.xlane.f32.xlu1 %v2172_v5  ;;  %v5698_v52 = vpop.permute.xlu1 %2346 }
 0x352   : > { %2788 = vmatprep.mubr.bf16.mxu0 %v2507_v18 }
 0x353   : > { %2789 = vmatmul.mubr.bf16.gmra.mxu0 %v2506_v14  ;;  %v2060_v14 = vmul.f32 %v5264_v21, %v2028_v62 }
 0x354   : > { %2182 = vadd.xlane.f32.xlu0 %v2181_v59  ;;  %v5700_v61 = vpop.permute.xlu0 %2351 }
 0x355   : > { %2179 = vadd.xlane.f32.xlu1 %v2178_v44  ;;  %v5702_v20 = vpop.permute.xlu1 %2356  ;;  %v2029_v44 = vld [vmem:[#allocation4 + $0x10] sm:$0xff] }
 0x358   : > { %v5704_v33 = vpop.permute.xlu0 %2361 }
 0x359   : > { %2185 = vadd.xlane.f32.xlu1 %v2184_v41  ;;  %v5706_v50 = vpop.permute.xlu1 %2366  ;;  %v2445_v41 = vmul.f32 %v5638_v25, %v2253_v12 }
 0x35c   : > { %v5708_v4 = vpop.permute.xlu0 %2371 }
 0x35d   : > { %v5710_v9 = vpop.permute.xlu1 %2376 }
 0x360   : > { %v5712_v23 = vpop.permute.xlu0 %2381 }
 0x361   : > { %v5714_v6 = vpop.permute.xlu1 %2386 }
 0x364   : > { %v5716_v51 = vpop.permute.xlu0 %2391 }
 0x365   : > { %v5718_v37 = vpop.permute.xlu1 %2396 }
 0x368   : > { %v5720_v3 = vpop.permute.xlu0 %2401 }
 0x369   : > { %v5722_v54 = vpop.permute.xlu1 %2406 }
 0x36a   : > { %2441 = vperm.xlu0 %3898, %v5695_v27  }
 0x36c   : > { %v5724_v39 = vpop.permute.xlu0 %2411 }
 0x36d   : > { %v5726_v2 = vpop.permute.xlu1 %2416 }
 0x370   : > { %v5728_v15 = vpop.permute.xlu0 %2421 }
 0x371   : > { %6292 = vst [vmem:[#allocation18_spill] sm:$0xff] %v5728_v15  ;;  %v5730_v16 = vpop.permute.xlu1 %2426  ;;  %v2254_v15 = vld [vmem:[#allocation5 + $0x10] sm:$0xff] }
 0x372   : > { %6293 = vst [vmem:[#allocation19_spill] sm:$0xff] %v5730_v16  ;;  %v2027_v16 = vld [vmem:[#allocation4] sm:$0xff]  ;;  %v2446_v25 = vmul.f32 %v5672_v43, %v2254_v15  ;;  %v2033_v15 = vld [vmem:[#allocation4 + $0x30] sm:$0xff] }
 0x373   : > { %v2059_v62 = vmul.f32 %v5281_v7, %v2027_v16 }
 0x374   : > { %v5732_v45 = vpop.permute.xlu0 %2431 }
 0x375   : > { %6294 = vst [vmem:[#allocation20_spill] sm:$0xff] %v5732_v45  ;;  %v5737_v0 = vpop.permute.xlu1 %2436 }
 0x39b   : > { %v3698_v58 = vpop.f32.mrf.mxu0 }
 0x39d   : > { %v3699_v10 = vpop.f32.mrf.mxu0 }
 0x39e   : > { %v3700_v13 = vadd.f32 %v3699_v10, %v3698_v58  ;;  %v2061_v58 = vmul.f32 %v5301_v1, %v2029_v44 }
 0x39f   : > { %v3701_v24 = vpop.f32.mrf.mxu0 }
 0x3a0   : > { %v2797_v5 = vadd.f32 %v3700_v13, %v2444_v22  ;;  %v2031_v22 = vld [vmem:[#allocation4 + $0x20] sm:$0xff] }
 0x3a1   : > { %v3702_v18 = vpop.f32.mrf.mxu0  ;;  %v2096_v59 = vpop.xlane.xlu0 %2095  ;;  %v2063_v1 = vmul.f32 %v5322_v34, %v2031_v22  ;;  %v2065_v22 = vmul.f32 %v5333_v11, %v2033_v15 }
 0x3a2   : > { %2829 = vst.msk [vmem:[#allocation5] sm:$0xff] %vm437_vm0, %v2797_v5  ;;  %v3703_v26 = vadd.f32 %v3702_v18, %v3701_v24  ;;  %v2188_v45 = vadd.f32 %v2096_v59, %v2060_v14  ;;  %v2030_v5 = vld [vmem:[#allocation4 + $0x18] sm:$0xff] }
 0x3a3   : > { %v3704_v17 = vpop.f32.mrf.mxu0  ;;  %v2255_v14 = vld [vmem:[#allocation5 + $0x18] sm:$0xff]  ;;  %v2062_v43 = vmul.f32 %v5318_v55, %v2030_v5 }
 0x3a4   : > { %v2798_v35 = vadd.f32 %v3703_v26, %v2445_v41  ;;  %2221 = vst.msk [vmem:[#allocation4 + $0x8] sm:$0xff] %vm808_vm2, %v2188_v45  ;;  %v2447_v45 = vmul.f32 %v5674_v40, %v2255_v14 }
 0x3a5   : > { %v3705_v21 = vpop.f32.mrf.mxu0  ;;  %v2099_v10 = vpop.xlane.xlu0 %2098 }
 0x3a6   : > { %2830 = vst.msk [vmem:[#allocation5 + $0x8] sm:$0xff] %vm437_vm0, %v2798_v35  ;;  %v3706_v13 = vadd.f32 %v3705_v21, %v3704_v17  ;;  %v2189_v12 = vadd.f32 %v2099_v10, %v2061_v58  ;;  %v2093_v24 = vpop.xlane.xlu1 %2092  ;;  %v2032_v35 = vld [vmem:[#allocation4 + $0x28] sm:$0xff]  ;;  %v2256_v58 = vld [vmem:[#allocation5 + $0x20] sm:$0xff] }
 0x3a7   : > { %v3707_v18 = vpop.f32.mrf.mxu0  ;;  %v2187_v59 = vadd.f32 %v2093_v24, %v2059_v62 }
 0x3a8   : > { %v2799_v41 = vadd.f32 %v3706_v13, %v2446_v25  ;;  %2222 = vst.msk [vmem:[#allocation4 + $0x10] sm:$0xff] %vm808_vm2, %v2189_v12  ;;  %v2064_v25 = vmul.f32 %v5328_v47, %v2032_v35  ;;  %v2035_v13 = vld [vmem:[#allocation4 + $0x40] sm:$0xff]  ;;  %v2448_v12 = vmul.f32 %v5676_v19, %v2256_v58  ;;  %v2036_v58 = vld [vmem:[#allocation4 + $0x48] sm:$0xff] }
 0x3a9   : > { %2220 = vst.msk [vmem:[#allocation4] sm:$0xff] %vm808_vm2, %v2187_v59  ;;  %v3708_v7 = vpop.f32.mrf.mxu0  ;;  %v2105_v16 = vpop.xlane.xlu0 %2104  ;;  %v2257_v59 = vld [vmem:[#allocation5 + $0x28] sm:$0xff] }
 0x3aa   : > { %2831 = vst.msk [vmem:[#allocation5 + $0x10] sm:$0xff] %vm437_vm0, %v2799_v41  ;;  %v3709_v44 = vadd.f32 %v3708_v7, %v3707_v18  ;;  %v2191_v26 = vadd.f32 %v2105_v16, %v2063_v1  ;;  %v2102_v17 = vpop.xlane.xlu1 %2101  ;;  %v2034_v18 = vld [vmem:[#allocation4 + $0x38] sm:$0xff]  ;;  %v2067_v16 = vmul.f32 %v5347_v56, %v2035_v13 }
 0x3ab   : > { %v2929_v21 = vld [vmem:[#allocation4 + $0x8] sm:$0xff]  ;;  %v3710_v10 = vpop.f32.mrf.mxu0  ;;  %v2190_v62 = vadd.f32 %v2102_v17, %v2062_v43  ;;  %v2066_v15 = vmul.f32 %v5342_v42, %v2034_v18  ;;  %v2259_v18 = vld [vmem:[#allocation5 + $0x38] sm:$0xff] }
 0x3ac   : > { %4142 = vrcp.f32 %v2929_v21  ;;  %v2800_v34 = vadd.f32 %v3709_v44, %v2447_v45  ;;  %2224 = vst.msk [vmem:[#allocation4 + $0x20] sm:$0xff] %vm808_vm2, %v2191_v26  ;;  %v2037_v45 = vld [vmem:[#allocation4 + $0x50] sm:$0xff]  ;;  %v2449_v44 = vmul.f32 %v5678_v46, %v2257_v59 }
 0x3ad   : > { %2223 = vst.msk [vmem:[#allocation4 + $0x18] sm:$0xff] %vm808_vm2, %v2190_v62  ;;  %v3711_v55 = vpop.f32.mrf.mxu0  ;;  %v2111_v40 = vpop.xlane.xlu0 %2110  ;;  %v2258_v21 = vld [vmem:[#allocation5 + $0x30] sm:$0xff] }
 0x3ae   : > { %2832 = vst.msk [vmem:[#allocation5 + $0x18] sm:$0xff] %vm437_vm0, %v2800_v34  ;;  %v3712_v24 = vadd.f32 %v3711_v55, %v3710_v10  ;;  %v2193_v5 = vadd.f32 %v2111_v40, %v2065_v22  ;;  %v2108_v14 = vpop.xlane.xlu1 %2107  ;;  %v2069_v22 = vmul.f32 %v5360_v38, %v2037_v45  ;;  %v2068_v40 = vmul.f32 %v5358_v36, %v2036_v58 }
 0x3af   : > { %v3713_v41 = vpop.f32.mrf.mxu0  ;;  %v2192_v1 = vadd.f32 %v2108_v14, %v2064_v25  ;;  %v2930_v43 = vld [vmem:[#allocation4 + $0x10] sm:$0xff]  ;;  %v2039_v25 = vld [vmem:[#allocation4 + $0x60] sm:$0xff]  ;;  %v2450_v13 = vmul.f32 %v5683_v63, %v2258_v21  ;;  %v2038_v14 = vld [vmem:[#allocation4 + $0x58] sm:$0xff] }
 0x3b0   : > { %v2928_v7 = vld [vmem:[#allocation4] sm:$0xff]  ;;  %v2801_v11 = vadd.f32 %v3712_v24, %v2448_v12  ;;  %2226 = vst.msk [vmem:[#allocation4 + $0x30] sm:$0xff] %vm808_vm2, %v2193_v5 }
 0x3b1   : > { %4144 = vrcp.f32 %v2928_v7  ;;  %2225 = vst.msk [vmem:[#allocation4 + $0x28] sm:$0xff] %vm808_vm2, %v2192_v1  ;;  %v3714_v47 = vpop.f32.mrf.mxu0  ;;  %v2117_v19 = vpop.xlane.xlu0 %2116  ;;  %v2071_v7 = vmul.f32 %v5369_v28, %v2039_v25  ;;  %v2260_v28 = vld [vmem:[#allocation5 + $0x40] sm:$0xff]  ;;  %v2042_v25 = vld [vmem:[#allocation4 + $0x78] sm:$0xff] }
 0x3b2   : > { %2833 = vst.msk [vmem:[#allocation5 + $0x20] sm:$0xff] %vm437_vm0, %v2801_v11  ;;  %v3715_v26 = vadd.f32 %v3714_v47, %v3713_v41  ;;  %v2195_v17 = vadd.f32 %v2117_v19, %v2067_v16  ;;  %v2114_v35 = vpop.xlane.xlu1 %2113  ;;  %4146 = vrcp.f32 %v2930_v43  ;;  %v2070_v43 = vmul.f32 %v5365_v48, %v2038_v14  ;;  %v2041_v47 = vld [vmem:[#allocation4 + $0x70] sm:$0xff] }
 0x3b3   : > { %v3716_v10 = vpop.f32.mrf.mxu0  ;;  %v2194_v56 = vadd.f32 %v2114_v35, %v2066_v15  ;;  %v2932_v42 = vld [vmem:[#allocation4 + $0x20] sm:$0xff]  ;;  %v2451_v19 = vmul.f32 %v5685_v60, %v2259_v18  ;;  %v2073_v48 = vmul.f32 %v5377_v32, %v2041_v47 }
 0x3b4   : > { %v2931_v62 = vld [vmem:[#allocation4 + $0x18] sm:$0xff]  ;;  %v2802_v34 = vadd.f32 %v3715_v26, %v2449_v44  ;;  %2228 = vst.msk [vmem:[#allocation4 + $0x40] sm:$0xff] %vm808_vm2, %v2195_v17  ;;  %v2040_v26 = vld [vmem:[#allocation4 + $0x68] sm:$0xff] }
 0x3b5   : > { %4148 = vrcp.f32 %v2931_v62  ;;  %2227 = vst.msk [vmem:[#allocation4 + $0x38] sm:$0xff] %vm808_vm2, %v2194_v56  ;;  %v3717_v46 = vpop.f32.mrf.mxu0  ;;  %v2123_v55 = vpop.xlane.xlu0 %2122  ;;  %v2072_v62 = vmul.f32 %v5375_v30, %v2040_v26 }
 0x3b6   : > { %2834 = vst.msk [vmem:[#allocation5 + $0x28] sm:$0xff] %vm437_vm0, %v2802_v34  ;;  %v3718_v12 = vadd.f32 %v3717_v46, %v3716_v10  ;;  %v2197_v24 = vadd.f32 %v2123_v55, %v2069_v22  ;;  %v2120_v5 = vpop.xlane.xlu1 %2119  ;;  %4150 = vrcp.f32 %v2932_v42  ;;  %v2043_v34 = vld [vmem:[#allocation4 + $0x80] sm:$0xff]  ;;  %v2452_v42 = vmul.f32 %v5687_v49, %v2260_v28 }
 0x3b7   : > { %v3719_v59 = vpop.f32.mrf.mxu0  ;;  %v2196_v38 = vadd.f32 %v2120_v5, %v2068_v40  ;;  %v2934_v11 = vld [vmem:[#allocation4 + $0x30] sm:$0xff]  ;;  %v2075_v30 = vmul.f32 %v5397_v57, %v2043_v34  ;;  %v2263_v34 = vld [vmem:[#allocation5 + $0x58] sm:$0xff] }
 0x3b8   : > { %v2933_v41 = vld [vmem:[#allocation4 + $0x28] sm:$0xff]  ;;  %v2803_v1 = vadd.f32 %v3718_v12, %v2450_v13  ;;  %2230 = vst.msk [vmem:[#allocation4 + $0x50] sm:$0xff] %vm808_vm2, %v2197_v24  ;;  %v2262_v57 = vld [vmem:[#allocation5 + $0x50] sm:$0xff] }
 0x3b9   : > { %v4143_v36 = vpop.eup %4142  ;;  %4152 = vrcp.f32 %v2933_v41  ;;  %2229 = vst.msk [vmem:[#allocation4 + $0x48] sm:$0xff] %vm808_vm2, %v2196_v38  ;;  %v3720_v63 = vpop.f32.mrf.mxu0  ;;  %v2261_v13 = vld [vmem:[#allocation5 + $0x48] sm:$0xff]  ;;  %v2074_v38 = vmul.f32 %v5393_v29, %v2042_v25  ;;  %v2045_v41 = vld [vmem:[#allocation4 + $0x90] sm:$0xff] }
 0x3ba   : > { %v2129_v16 = vpop.xlane.xlu0 %2128  ;;  %2835 = vst.msk [vmem:[#allocation5 + $0x30] sm:$0xff] %vm437_vm0, %v2803_v1  ;;  %v3721_v15 = vadd.f32 %v3720_v63, %v3719_v59  ;;  %2999 = vperm.xlu0 %3898, %v4143_v36   ;;  %v2126_v44 = vpop.xlane.xlu1 %2125  ;;  %4154 = vrcp.f32 %v2934_v11  ;;  %v6295_v29 = vld [vmem:[#allocation64_spill] sm:$0xff] }
 0x3bb   : > { %v2199_v45 = vadd.f32 %v2129_v16, %v2071_v7  ;;  %v3722_v17 = vpop.f32.mrf.mxu0  ;;  %v2198_v35 = vadd.f32 %v2126_v44, %v2070_v43  ;;  %v2936_v10 = vld [vmem:[#allocation4 + $0x40] sm:$0xff]  ;;  %v2453_v7 = vmul.f32 %v5689_v53, %v2261_v13  ;;  %v2044_v16 = vld [vmem:[#allocation4 + $0x88] sm:$0xff] }
 0x3bc   : > { %v2935_v58 = vld [vmem:[#allocation4 + $0x38] sm:$0xff]  ;;  %v2804_v21 = vadd.f32 %v3721_v15, %v2451_v19 }
 0x3bd   : > { %2232 = vst.msk [vmem:[#allocation4 + $0x60] sm:$0xff] %vm808_vm2, %v2199_v45  ;;  %4156 = vrcp.f32 %v2935_v58  ;;  %2231 = vst.msk [vmem:[#allocation4 + $0x58] sm:$0xff] %vm808_vm2, %v2198_v35  ;;  %v3723_v60 = vpop.f32.mrf.mxu0  ;;  %v2077_v45 = vmul.f32 %v6295_v29, %v2045_v41  ;;  %v2047_v58 = vld [vmem:[#allocation4 + $0xa0] sm:$0xff]  ;;  %v2048_v41 = vld [vmem:[#allocation4 + $0xa8] sm:$0xff] }
 0x3be   : > { %v2135_v56 = vpop.xlane.xlu0 %2134  ;;  %v4145_v22 = vpop.eup %4144  ;;  %2836 = vst.msk [vmem:[#allocation5 + $0x38] sm:$0xff] %vm437_vm0, %v2804_v21  ;;  %v3724_v46 = vadd.f32 %v3723_v60, %v3722_v17  ;;  %4158 = vrcp.f32 %v2936_v10  ;;  %v6296_v17 = vld [vmem:[#allocation65_spill] sm:$0xff] }
 0x3bf   : > { %v2201_v55 = vadd.f32 %v2135_v56, %v2073_v48  ;;  %v2132_v40 = vpop.xlane.xlu1 %2131  ;;  %v3725_v32 = vpop.f32.mrf.mxu0  ;;  %2994 = vperm.xlu1 %3899, %v4145_v22   ;;  %v2938_v18 = vld [vmem:[#allocation4 + $0x50] sm:$0xff]  ;;  %v2076_v35 = vmul.f32 %v6296_v17, %v2044_v16  ;;  %v2454_v48 = vmul.f32 %v5691_v8, %v2262_v57 }
 0x3c0   : > { %v2200_v12 = vadd.f32 %v2132_v40, %v2072_v62  ;;  %v2937_v24 = vld [vmem:[#allocation4 + $0x48] sm:$0xff]  ;;  %v2805_v5 = vadd.f32 %v3724_v46, %v2452_v42  ;;  %v4147_v14 = vpop.eup %4146  ;;  %v2046_v62 = vld [vmem:[#allocation4 + $0x98] sm:$0xff]  ;;  %v6297_v40 = vld [vmem:[#allocation66_spill] sm:$0xff] }
 0x3c1   : > { %2234 = vst.msk [vmem:[#allocation4 + $0x70] sm:$0xff] %vm808_vm2, %v2201_v55  ;;  %4160 = vrcp.f32 %v2937_v24  ;;  %v3726_v49 = vpop.f32.mrf.mxu0  ;;  %v2079_v25 = vmul.f32 %v6297_v40, %v2047_v58  ;;  %v6298_v24 = vld [vmem:[#allocation67_spill] sm:$0xff]  ;;  %v6299_v16 = vld [vmem:[#allocation68_spill] sm:$0xff] }
 0x3c2   : > { %2233 = vst.msk [vmem:[#allocation4 + $0x68] sm:$0xff] %vm808_vm2, %v2200_v12  ;;  %v2141_v59 = vpop.xlane.xlu0 %2140  ;;  %v4149_v1 = vpop.eup %4148  ;;  %v3727_v36 = vadd.f32 %v3726_v49, %v3725_v32  ;;  %4162 = vrcp.f32 %v2938_v18  ;;  %v2455_v18 = vmul.f32 %v5693_v31, %v2263_v34  ;;  %v2265_v58 = vld [vmem:[#allocation5 + $0x68] sm:$0xff]  ;;  %v2053_v40 = vld [vmem:[#allocation4 + $0xd0] sm:$0xff] }
 0x3c3   : > { %2837 = vst.msk [vmem:[#allocation5 + $0x40] sm:$0xff] %vm437_vm0, %v2805_v5  ;;  %v2203_v11 = vadd.f32 %v2141_v59, %v2075_v30  ;;  %v2138_v63 = vpop.xlane.xlu1 %2137  ;;  %v3728_v43 = vpop.f32.mrf.mxu0  ;;  %3004 = vperm.xlu1 %3899, %v4147_v14   ;;  %3009 = vperm.xlu0 %3898, %v4149_v1   ;;  %v2078_v5 = vmul.f32 %v6298_v24, %v2046_v62  ;;  %v2049_v30 = vld [vmem:[#allocation4 + $0xb0] sm:$0xff]  ;;  %v2264_v1 = vld [vmem:[#allocation5 + $0x60] sm:$0xff]  ;;  %v2052_v24 = vld [vmem:[#allocation4 + $0xc8] sm:$0xff] }
 0x3c4   : > { %v2202_v47 = vadd.f32 %v2138_v63, %v2074_v38  ;;  %v2939_v19 = vld [vmem:[#allocation4 + $0x58] sm:$0xff]  ;;  %v2806_v15 = vadd.f32 %v3727_v36, %v2453_v7  ;;  %v4151_v44 = vpop.eup %4150  ;;  %v2940_v53 = vld [vmem:[#allocation4 + $0x60] sm:$0xff]  ;;  %v2081_v57 = vmul.f32 %v6299_v16, %v2049_v30 }
 0x3c5   : > { %2236 = vst.msk [vmem:[#allocation4 + $0x80] sm:$0xff] %vm808_vm2, %v2203_v11  ;;  %4164 = vrcp.f32 %v2939_v19  ;;  %v3729_v26 = vpop.f32.mrf.mxu0 }
 0x3c6   : > { %2235 = vst.msk [vmem:[#allocation4 + $0x78] sm:$0xff] %vm808_vm2, %v2202_v47  ;;  %v2147_v28 = vpop.xlane.xlu0 %2146  ;;  %v4153_v21 = vpop.eup %4152  ;;  %v3730_v10 = vadd.f32 %v3729_v26, %v3728_v43  ;;  %4166 = vrcp.f32 %v2940_v53  ;;  %v2456_v53 = vmul.f32 %v5698_v52, %v2264_v1 }
 0x3c7   : > { %2838 = vst.msk [vmem:[#allocation5 + $0x48] sm:$0xff] %vm437_vm0, %v2806_v15  ;;  %v2205_v60 = vadd.f32 %v2147_v28, %v2077_v45  ;;  %v2144_v56 = vpop.xlane.xlu1 %2143  ;;  %v3731_v22 = vpop.f32.mrf.mxu0  ;;  %3014 = vperm.xlu1 %3899, %v4151_v44   ;;  %3019 = vperm.xlu0 %3898, %v4153_v21   ;;  %v6300_v15 = vld [vmem:[#allocation69_spill] sm:$0xff]  ;;  %v2051_v45 = vld [vmem:[#allocation4 + $0xc0] sm:$0xff] }
 0x3c8   : > { %v2204_v42 = vadd.f32 %v2144_v56, %v2076_v35  ;;  %v2807_v55 = vadd.f32 %v3730_v10, %v2454_v48  ;;  %v4155_v13 = vpop.eup %4154  ;;  %v2942_v8 = vld [vmem:[#allocation4 + $0x70] sm:$0xff]  ;;  %v2080_v29 = vmul.f32 %v6300_v15, %v2048_v41  ;;  %v2050_v35 = vld [vmem:[#allocation4 + $0xb8] sm:$0xff]  ;;  %v6301_v56 = vld [vmem:[#allocation11_spill] sm:$0xff] }
 0x3c9   : > { %v2941_v46 = vld [vmem:[#allocation4 + $0x68] sm:$0xff]  ;;  %2238 = vst.msk [vmem:[#allocation4 + $0x90] sm:$0xff] %vm808_vm2, %v2205_v60  ;;  %v3732_v32 = vpop.f32.mrf.mxu0  ;;  %v2083_v62 = vmul.f32 %v6301_v56, %v2051_v45  ;;  %v2267_v15 = vld [vmem:[#allocation5 + $0x78] sm:$0xff] }
 0x3ca   : > { %4168 = vrcp.f32 %v2941_v46  ;;  %2237 = vst.msk [vmem:[#allocation4 + $0x88] sm:$0xff] %vm808_vm2, %v2204_v42  ;;  %v2153_v12 = vpop.xlane.xlu0 %2152  ;;  %v4157_v14 = vpop.eup %4156  ;;  %v3733_v49 = vadd.f32 %v3732_v32, %v3731_v22  ;;  %v6302_v46 = vld [vmem:[#allocation10_spill] sm:$0xff]  ;;  %v2459_v56 = vmul.f32 %v5704_v33, %v2267_v15  ;;  %v2270_v15 = vld [vmem:[#allocation5 + $0x90] sm:$0xff] }
 0x3cb   : > { %2839 = vst.msk [vmem:[#allocation5 + $0x50] sm:$0xff] %vm437_vm0, %v2807_v55  ;;  %v2207_v59 = vadd.f32 %v2153_v12, %v2079_v25  ;;  %v2150_v38 = vpop.xlane.xlu1 %2149  ;;  %v3734_v7 = vpop.f32.mrf.mxu0  ;;  %3024 = vperm.xlu1 %3899, %v4155_v13   ;;  %3029 = vperm.xlu0 %3898, %v4157_v14   ;;  %4170 = vrcp.f32 %v2942_v8  ;;  %v2082_v55 = vmul.f32 %v6302_v46, %v2050_v35 }
 0x3cc   : > { %v2206_v36 = vadd.f32 %v2150_v38, %v2078_v5  ;;  %v2808_v63 = vadd.f32 %v3733_v49, %v2455_v18  ;;  %v4159_v43 = vpop.eup %4158  ;;  %v2944_v31 = vld [vmem:[#allocation4 + $0x80] sm:$0xff]  ;;  %v2457_v13 = vmul.f32 %v5700_v61, %v2265_v58  ;;  %v2266_v5 = vld [vmem:[#allocation5 + $0x70] sm:$0xff] }
 0x3cd   : > { %v2943_v11 = vld [vmem:[#allocation4 + $0x78] sm:$0xff]  ;;  %2240 = vst.msk [vmem:[#allocation4 + $0xa0] sm:$0xff] %vm808_vm2, %v2207_v59  ;;  %v3735_v47 = vpop.f32.mrf.mxu0 }
 0x3ce   : > { %4172 = vrcp.f32 %v2943_v11  ;;  %2239 = vst.msk [vmem:[#allocation4 + $0x98] sm:$0xff] %vm808_vm2, %v2206_v36  ;;  %v2159_v19 = vpop.xlane.xlu0 %2158  ;;  %v4161_v44 = vpop.eup %4160  ;;  %v3736_v26 = vadd.f32 %v3735_v47, %v3734_v7  ;;  %v6303_v59 = vld [vmem:[#allocation13_spill] sm:$0xff]  ;;  %v6304_v36 = vld [vmem:[#allocation12_spill] sm:$0xff] }
 0x3cf   : > { %2840 = vst.msk [vmem:[#allocation5 + $0x58] sm:$0xff] %vm437_vm0, %v2808_v63  ;;  %v2209_v28 = vadd.f32 %v2159_v19, %v2081_v57  ;;  %v2156_v17 = vpop.xlane.xlu1 %2155  ;;  %v3737_v21 = vpop.f32.mrf.mxu0  ;;  %3034 = vperm.xlu1 %3899, %v4159_v43   ;;  %3039 = vperm.xlu0 %3898, %v4161_v44   ;;  %4174 = vrcp.f32 %v2944_v31  ;;  %v2085_v38 = vmul.f32 %v6303_v59, %v2053_v40  ;;  %v2055_v63 = vld [vmem:[#allocation4 + $0xe0] sm:$0xff]  ;;  %v2054_v19 = vld [vmem:[#allocation4 + $0xd8] sm:$0xff] }
 0x3d0   : > { %v2208_v48 = vadd.f32 %v2156_v17, %v2080_v29  ;;  %v2809_v60 = vadd.f32 %v3736_v26, %v2456_v53  ;;  %v4163_v34 = vpop.eup %4162  ;;  %v2946_v52 = vld [vmem:[#allocation4 + $0x90] sm:$0xff]  ;;  %v2084_v11 = vmul.f32 %v6304_v36, %v2052_v24  ;;  %v2458_v57 = vmul.f32 %v5702_v20, %v2266_v5  ;;  %v6305_v26 = vld [vmem:[#allocation15_spill] sm:$0xff] }
 0x3d1   : > { %v2945_v10 = vld [vmem:[#allocation4 + $0x88] sm:$0xff]  ;;  %2242 = vst.msk [vmem:[#allocation4 + $0xb0] sm:$0xff] %vm808_vm2, %v2209_v28  ;;  %v3738_v22 = vpop.f32.mrf.mxu0  ;;  %v2087_v28 = vmul.f32 %v6305_v26, %v2055_v63  ;;  %v6308_v5 = vld [vmem:[#allocation16_spill] sm:$0xff] }
 0x3d2   : > { %4176 = vrcp.f32 %v2945_v10  ;;  %2241 = vst.msk [vmem:[#allocation4 + $0xa8] sm:$0xff] %vm808_vm2, %v2208_v48  ;;  %v2165_v42 = vpop.xlane.xlu0 %2164  ;;  %v4165_v25 = vpop.eup %4164  ;;  %v3739_v8 = vadd.f32 %v3738_v22, %v3737_v21  ;;  %v6306_v21 = vld [vmem:[#allocation14_spill] sm:$0xff]  ;;  %v2057_v10 = vld [vmem:[#allocation4 + $0xf0] sm:$0xff]  ;;  %v2056_v22 = vld [vmem:[#allocation4 + $0xe8] sm:$0xff] }
 0x3d3   : > { %2841 = vst.msk [vmem:[#allocation5 + $0x60] sm:$0xff] %vm437_vm0, %v2809_v60  ;;  %v2211_v32 = vadd.f32 %v2165_v42, %v2083_v62  ;;  %v2162_v12 = vpop.xlane.xlu1 %2161  ;;  %v3740_v30 = vpop.f32.mrf.mxu0  ;;  %3044 = vperm.xlu1 %3899, %v4163_v34   ;;  %3049 = vperm.xlu0 %3898, %v4165_v25   ;;  %4178 = vrcp.f32 %v2946_v52  ;;  %v2086_v48 = vmul.f32 %v6306_v21, %v2054_v19  ;;  %v2268_v42 = vld [vmem:[#allocation5 + $0x80] sm:$0xff] }
 0x3d4   : > { %v2210_v14 = vadd.f32 %v2162_v12, %v2082_v55  ;;  %v2810_v49 = vadd.f32 %v3739_v8, %v2457_v13  ;;  %v4167_v41 = vpop.eup %4166  ;;  %v2948_v61 = vld [vmem:[#allocation4 + $0xa0] sm:$0xff]  ;;  %v6307_v13 = vld [vmem:[#allocation17_spill] sm:$0xff] }
 0x3d5   : > { %v2947_v18 = vld [vmem:[#allocation4 + $0x98] sm:$0xff]  ;;  %2244 = vst.msk [vmem:[#allocation4 + $0xc0] sm:$0xff] %vm808_vm2, %v2211_v32  ;;  %v3741_v1 = vpop.f32.mrf.mxu0  ;;  %v2089_v8 = vmul.f32 %v6307_v13, %v2057_v10 }
 0x3d6   : > { %4180 = vrcp.f32 %v2947_v18  ;;  %2243 = vst.msk [vmem:[#allocation4 + $0xb8] sm:$0xff] %vm808_vm2, %v2210_v14  ;;  %v2171_v7 = vpop.xlane.xlu0 %2170  ;;  %v3742_v43 = vadd.f32 %v3741_v1, %v3740_v30  ;;  %v2088_v30 = vmul.f32 %v6308_v5, %v2056_v22  ;;  %v2460_v18 = vmul.f32 %v5706_v50, %v2268_v42 }
 0x3d7   : > { %v4169_v16 = vpop.eup %4168  ;;  %2842 = vst.msk [vmem:[#allocation5 + $0x68] sm:$0xff] %vm437_vm0, %v2810_v49  ;;  %v2213_v31 = vadd.f32 %v2171_v7, %v2085_v38  ;;  %v2168_v47 = vpop.xlane.xlu1 %2167  ;;  %3054 = vperm.xlu1 %3899, %v4167_v41   ;;  %4182 = vrcp.f32 %v2948_v61  ;;  %v2058_v41 = vld [vmem:[#allocation4 + $0xf8] sm:$0xff]  ;;  %v2269_v61 = vld [vmem:[#allocation5 + $0x88] sm:$0xff] }
 0x3d8   : > { %v3743_v29 = vpop.f32.mrf.mxu0  ;;  %v2212_v45 = vadd.f32 %v2168_v47, %v2084_v11  ;;  %3059 = vperm.xlu0 %3898, %v4169_v16   ;;  %v2811_v53 = vadd.f32 %v3742_v43, %v2458_v57  ;;  %v4171_v17 = vpop.eup %4170  ;;  %v2950_v20 = vld [vmem:[#allocation4 + $0xb0] sm:$0xff]  ;;  %v2090_v57 = vmul.f32 %v5695_v27, %v2058_v41 }
 0x3d9   : > { %v2949_v44 = vld [vmem:[#allocation4 + $0xa8] sm:$0xff]  ;;  %2246 = vst.msk [vmem:[#allocation4 + $0xd0] sm:$0xff] %vm808_vm2, %v2213_v31  ;;  %v2461_v31 = vmul.f32 %v5708_v4, %v2269_v61  ;;  %v2462_v4 = vmul.f32 %v5710_v9, %v2270_v15 }
 0x3da   : > { %4184 = vrcp.f32 %v2949_v44  ;;  %2245 = vst.msk [vmem:[#allocation4 + $0xc8] sm:$0xff] %vm808_vm2, %v2212_v45  ;;  %v3744_v35 = vpop.f32.mrf.mxu0  ;;  %v2177_v58 = vpop.xlane.xlu0 %2176 }
 0x3db   : > { %v4173_v60 = vpop.eup %4172  ;;  %2843 = vst.msk [vmem:[#allocation5 + $0x70] sm:$0xff] %vm437_vm0, %v2811_v53  ;;  %v3745_v62 = vadd.f32 %v3744_v35, %v3743_v29  ;;  %v2215_v34 = vadd.f32 %v2177_v58, %v2087_v28  ;;  %v2174_v52 = vpop.xlane.xlu1 %2173  ;;  %3064 = vperm.xlu1 %3899, %v4171_v17   ;;  %4186 = vrcp.f32 %v2950_v20  ;;  %v2271_v35 = vld [vmem:[#allocation5 + $0x98] sm:$0xff] }
 0x3dc   : > { %v3746_v46 = vpop.f32.mrf.mxu0  ;;  %v2214_v55 = vadd.f32 %v2174_v52, %v2086_v48  ;;  %3069 = vperm.xlu0 %3898, %v4173_v60   ;;  %v4175_v32 = vpop.eup %4174  ;;  %v2952_v33 = vld [vmem:[#allocation4 + $0xc0] sm:$0xff] }
 0x3dd   : > { %v2951_v40 = vld [vmem:[#allocation4 + $0xb8] sm:$0xff]  ;;  %v2812_v25 = vadd.f32 %v3745_v62, %v2459_v56  ;;  %2248 = vst.msk [vmem:[#allocation4 + $0xe0] sm:$0xff] %vm808_vm2, %v2215_v34  ;;  %v2463_v34 = vmul.f32 %v5712_v23, %v2271_v35  ;;  %v2272_v52 = vld [vmem:[#allocation5 + $0xa0] sm:$0xff]  ;;  %v2273_v23 = vld [vmem:[#allocation5 + $0xa8] sm:$0xff] }
 0x3de   : > { %4188 = vrcp.f32 %v2951_v40  ;;  %2247 = vst.msk [vmem:[#allocation4 + $0xd8] sm:$0xff] %vm808_vm2, %v2214_v55  ;;  %v3747_v12 = vpop.f32.mrf.mxu0  ;;  %v2183_v24 = vpop.xlane.xlu0 %2182  ;;  %v2464_v13 = vmul.f32 %v5714_v6, %v2272_v52  ;;  %v2279_v35 = vld [vmem:[#allocation5 + $0xd8] sm:$0xff]  ;;  %v6310_v52 = vld [vmem:[#allocation19_spill] sm:$0xff] }
 0x3df   : > { %v4177_v14 = vpop.eup %4176  ;;  %2844 = vst.msk [vmem:[#allocation5 + $0x78] sm:$0xff] %vm437_vm0, %v2812_v25  ;;  %v3748_v49 = vadd.f32 %v3747_v12, %v3746_v46  ;;  %v2217_v59 = vadd.f32 %v2183_v24, %v2089_v8  ;;  %v2180_v38 = vpop.xlane.xlu1 %2179  ;;  %3074 = vperm.xlu1 %3899, %v4175_v32   ;;  %4190 = vrcp.f32 %v2952_v33 }
 0x3e0   : > { %v3749_v1 = vpop.f32.mrf.mxu0  ;;  %v2216_v7 = vadd.f32 %v2180_v38, %v2088_v30  ;;  %3079 = vperm.xlu0 %3898, %v4177_v14   ;;  %v4179_v63 = vpop.eup %4178  ;;  %v2954_v16 = vld [vmem:[#allocation4 + $0xd0] sm:$0xff]  ;;  %v2465_v30 = vmul.f32 %v5716_v51, %v2273_v23 }
 0x3e1   : > { %v2953_v36 = vld [vmem:[#allocation4 + $0xc8] sm:$0xff]  ;;  %v2813_v11 = vadd.f32 %v3748_v49, %v2460_v18  ;;  %2250 = vst.msk [vmem:[#allocation4 + $0xf0] sm:$0xff] %vm808_vm2, %v2217_v59  ;;  %v2274_v18 = vld [vmem:[#allocation5 + $0xb0] sm:$0xff] }
 0x3e2   : > { %4192 = vrcp.f32 %v2953_v36  ;;  %2249 = vst.msk [vmem:[#allocation4 + $0xe8] sm:$0xff] %vm808_vm2, %v2216_v7  ;;  %v3750_v50 = vpop.f32.mrf.mxu0  ;;  %v2466_v61 = vmul.f32 %v5718_v37, %v2274_v18  ;;  %v2275_v7 = vld [vmem:[#allocation5 + $0xb8] sm:$0xff]  ;;  %v2282_v23 = vld [vmem:[#allocation5 + $0xf0] sm:$0xff] }
 0x3e3   : > { %v4181_v43 = vpop.eup %4180  ;;  %2845 = vst.msk [vmem:[#allocation5 + $0x80] sm:$0xff] %vm437_vm0, %v2813_v11  ;;  %v3751_v47 = vadd.f32 %v3750_v50, %v3749_v1  ;;  %v2186_v19 = vpop.xlane.xlu1 %2185  ;;  %3084 = vperm.xlu1 %3899, %v4179_v63   ;;  %4194 = vrcp.f32 %v2954_v16  ;;  %v2467_v50 = vmul.f32 %v5720_v3, %v2275_v7 }
 0x3e4   : > { %v3752_v29 = vpop.f32.mrf.mxu0  ;;  %v2218_v45 = vadd.f32 %v2186_v19, %v2090_v57  ;;  %3089 = vperm.xlu0 %3898, %v4181_v43   ;;  %v4183_v26 = vpop.eup %4182  ;;  %v2956_v28 = vld [vmem:[#allocation4 + $0xe0] sm:$0xff] }
 0x3e5   : > { %v2955_v44 = vld [vmem:[#allocation4 + $0xd8] sm:$0xff]  ;;  %v2814_v53 = vadd.f32 %v3751_v47, %v2461_v31  ;;  %v2276_v43 = vld [vmem:[#allocation5 + $0xc0] sm:$0xff] }
 0x3e6   : > { %4196 = vrcp.f32 %v2955_v44  ;;  %2251 = vst.msk [vmem:[#allocation4 + $0xf8] sm:$0xff] %vm808_vm2, %v2218_v45  ;;  %v3753_v27 = vpop.f32.mrf.mxu0  ;;  %v2468_v19 = vmul.f32 %v5722_v54, %v2276_v43 }
 0x3e7   : > { %v4185_v17 = vpop.eup %4184  ;;  %2846 = vst.msk [vmem:[#allocation5 + $0x88] sm:$0xff] %vm437_vm0, %v2814_v53  ;;  %v3754_v20 = vadd.f32 %v3753_v27, %v3752_v29  ;;  %3094 = vperm.xlu1 %3899, %v4183_v26   ;;  %4198 = vrcp.f32 %v2956_v28  ;;  %v2277_v29 = vld [vmem:[#allocation5 + $0xc8] sm:$0xff]  ;;  %v2278_v28 = vld [vmem:[#allocation5 + $0xd0] sm:$0xff] }
 0x3e8   : > { %v3755_v58 = vpop.f32.mrf.mxu0  ;;  %3099 = vperm.xlu0 %3898, %v4185_v17   ;;  %v4187_v10 = vpop.eup %4186  ;;  %v2958_v60 = vld [vmem:[#allocation4 + $0xf0] sm:$0xff]  ;;  %v2469_v3 = vmul.f32 %v5724_v39, %v2277_v29 }
 0x3e9   : > { %v2957_v21 = vld [vmem:[#allocation4 + $0xe8] sm:$0xff]  ;;  %v2815_v48 = vadd.f32 %v3754_v20, %v2462_v4  ;;  %v2470_v20 = vmul.f32 %v5726_v2, %v2278_v28 }
 0x3ea   : > { %4200 = vrcp.f32 %v2957_v21  ;;  %v3756_v56 = vpop.f32.mrf.mxu0  ;;  %v2901_v28 = vld [vmem:[#allocation5 + $0x28] sm:$0xff] }
 0x3eb   : > { %v4189_v62 = vpop.eup %4188  ;;  %2847 = vst.msk [vmem:[#allocation5 + $0x90] sm:$0xff] %vm437_vm0, %v2815_v48  ;;  %v3757_v9 = vadd.f32 %v3756_v56, %v3755_v58  ;;  %3104 = vperm.xlu1 %3899, %v4187_v10   ;;  %4202 = vrcp.f32 %v2958_v60  ;;  %v6309_v10 = vld [vmem:[#allocation18_spill] sm:$0xff] }
 0x3ec   : > { %v3758_v22 = vpop.f32.mrf.mxu0  ;;  %3109 = vperm.xlu0 %3898, %v4189_v62   ;;  %v4191_v55 = vpop.eup %4190  ;;  %v2471_v60 = vmul.f32 %v6309_v10, %v2279_v35  ;;  %v2280_v56 = vld [vmem:[#allocation5 + $0xe0] sm:$0xff] }
 0x3ed   : > { %v2959_v42 = vld [vmem:[#allocation4 + $0xf8] sm:$0xff]  ;;  %v2816_v46 = vadd.f32 %v3757_v9, %v2463_v34 }
 0x3ee   : > { %4204 = vrcp.f32 %v2959_v42  ;;  %v3759_v40 = vpop.f32.mrf.mxu0  ;;  %v2281_v42 = vld [vmem:[#allocation5 + $0xe8] sm:$0xff] }
 0x3ef   : > { %v4193_v25 = vpop.eup %4192  ;;  %2848 = vst.msk [vmem:[#allocation5 + $0x98] sm:$0xff] %vm437_vm0, %v2816_v46  ;;  %v3760_v8 = vadd.f32 %v3759_v40, %v3758_v22  ;;  %3114 = vperm.xlu1 %3899, %v4191_v55   ;;  %v2472_v22 = vmul.f32 %v6310_v52, %v2280_v56 }
 0x3f0   : > { %v3761_v32 = vpop.f32.mrf.mxu0  ;;  %3119 = vperm.xlu0 %3898, %v4193_v25   ;;  %v4195_v12 = vpop.eup %4194  ;;  %v6311_v25 = vld [vmem:[#allocation20_spill] sm:$0xff] }
 0x3f1   : > { %v2817_v33 = vadd.f32 %v3760_v8, %v2464_v13  ;;  %v2473_v13 = vmul.f32 %v6311_v25, %v2281_v42  ;;  %v3225_v42 = vld [vmem:[%s4397_s20 + $0x38] sm:$0xff]  ;;  %v2905_v25 = vld [vmem:[#allocation5 + $0x48] sm:$0xff] }
 0x3f2   : > { %v3762_v24 = vpop.f32.mrf.mxu0 }
 0x3f3   : > { %v4197_v5 = vpop.eup %4196  ;;  %2849 = vst.msk [vmem:[#allocation5 + $0xa0] sm:$0xff] %vm437_vm0, %v2817_v33  ;;  %v3763_v14 = vadd.f32 %v3762_v24, %v3761_v32  ;;  %3124 = vperm.xlu1 %3899, %v4195_v12   ;;  %v2474_v24 = vmul.f32 %v5737_v0, %v2282_v23  ;;  %v2897_v0 = vld [vmem:[#allocation5 + $0x8] sm:$0xff] }
 0x3f4   : > { %v3764_v49 = vpop.f32.mrf.mxu0  ;;  %3129 = vperm.xlu0 %3898, %v4197_v5   ;;  %v4199_v59 = vpop.eup %4198 }
 0x3f5   : > { %v2818_v6 = vadd.f32 %v3763_v14, %v2465_v30  ;;  %v2283_v30 = vld [vmem:[#allocation5 + $0xf8] sm:$0xff]  ;;  %v2442_v14 = vpop.permute.xlu0 %2441 }
 0x3f6   : > { %v3765_v38 = vpop.f32.mrf.mxu0 }
 0x3f7   : > { %v4201_v41 = vpop.eup %4200  ;;  %2850 = vst.msk [vmem:[#allocation5 + $0xa8] sm:$0xff] %vm437_vm0, %v2818_v6  ;;  %v3766_v1 = vadd.f32 %v3765_v38, %v3764_v49  ;;  %3134 = vperm.xlu1 %3899, %v4199_v59   ;;  %v2475_v59 = vmul.f32 %v2442_v14, %v2283_v30  ;;  %v3226_v30 = vld [vmem:[%s4397_s20 + $0x40] sm:$0xff] }
 0x3f8   : > { %v3767_v36 = vpop.f32.mrf.mxu0  ;;  %3139 = vperm.xlu0 %3898, %v4201_v41   ;;  %v4203_v11 = vpop.eup %4202 }
 0x3f9   : > { %v2819_v51 = vadd.f32 %v3766_v1, %v2466_v61  ;;  %v5864_v61 = vstv %s3184_s15 }
 0x3fa   : > { %v3768_v63 = vpop.f32.mrf.mxu0 }
 0x3fb   : > { %v4205_v16 = vpop.eup %4204  ;;  %2851 = vst.msk [vmem:[#allocation5 + $0xb0] sm:$0xff] %vm437_vm0, %v2819_v51  ;;  %v3769_v57 = vadd.f32 %v3768_v63, %v3767_v36  ;;  %3144 = vperm.xlu1 %3899, %v4203_v11   ;;  %v3219_v36 = vld [vmem:[%s4397_s20 + $0x8] sm:$0xff]  ;;  %v2896_v63 = vld [vmem:[#allocation5] sm:$0xff] }
 0x3fc   : > { %v3770_v31 = vpop.f32.mrf.mxu0  ;;  %3149 = vperm.xlu0 %3898, %v4205_v16  }
 0x3fd   : > { %v2820_v37 = vadd.f32 %v3769_v57, %v2467_v50  ;;  %v3218_v57 = vld [vmem:[%s4397_s20] sm:$0xff] }
 0x3fe   : > { %v3771_v47 = vpop.f32.mrf.mxu0 }
 0x3ff   : > { %2852 = vst.msk [vmem:[#allocation5 + $0xb8] sm:$0xff] %vm437_vm0, %v2820_v37  ;;  %v3772_v15 = vadd.f32 %v3771_v47, %v3770_v31  ;;  %v2899_v31 = vld [vmem:[#allocation5 + $0x18] sm:$0xff]  ;;  %v2898_v47 = vld [vmem:[#allocation5 + $0x10] sm:$0xff] }
 0x400   : > { %v3773_v45 = vpop.f32.mrf.mxu0 }
 0x401   : > { %v2821_v44 = vadd.f32 %v3772_v15, %v2468_v19 }
 0x402   : > { %v3774_v53 = vpop.f32.mrf.mxu0 }
 0x403   : > { %2853 = vst.msk [vmem:[#allocation5 + $0xc0] sm:$0xff] %vm437_vm0, %v2821_v44  ;;  %v3775_v26 = vadd.f32 %v3774_v53, %v3773_v45  ;;  %v3221_v44 = vld [vmem:[%s4397_s20 + $0x18] sm:$0xff]  ;;  %v3220_v53 = vld [vmem:[%s4397_s20 + $0x10] sm:$0xff] }
 0x404   : > { %v3776_v27 = vpop.f32.mrf.mxu0 }
 0x405   : > { %v2822_v17 = vadd.f32 %v3775_v26, %v2469_v3 }
 0x406   : > { %v3777_v4 = vpop.f32.mrf.mxu0 }
 0x407   : > { %2854 = vst.msk [vmem:[#allocation5 + $0xc8] sm:$0xff] %vm437_vm0, %v2822_v17  ;;  %v3778_v54 = vadd.f32 %v3777_v4, %v3776_v27  ;;  %v2900_v17 = vld [vmem:[#allocation5 + $0x20] sm:$0xff] }
 0x408   : > { %v3779_v58 = vpop.f32.mrf.mxu0 }
 0x409   : > { %v2823_v21 = vadd.f32 %v3778_v54, %v2470_v20 }
 0x40a   : > { %v3780_v48 = vpop.f32.mrf.mxu0 }
 0x40b   : > { %2855 = vst.msk [vmem:[#allocation5 + $0xd0] sm:$0xff] %vm437_vm0, %v2823_v21  ;;  %v3781_v39 = vadd.f32 %v3780_v48, %v3779_v58  ;;  %v3223_v21 = vld [vmem:[%s4397_s20 + $0x28] sm:$0xff]  ;;  %v3222_v48 = vld [vmem:[%s4397_s20 + $0x20] sm:$0xff] }
 0x40c   : > { %v3782_v62 = vpop.f32.mrf.mxu0 }
 0x40d   : > { %v2824_v34 = vadd.f32 %v3781_v39, %v2471_v60  ;;  %v2903_v39 = vld [vmem:[#allocation5 + $0x38] sm:$0xff] }
 0x40e   : > { %v3783_v9 = vpop.f32.mrf.mxu0 }
 0x40f   : > { %2856 = vst.msk [vmem:[#allocation5 + $0xd8] sm:$0xff] %vm437_vm0, %v2824_v34  ;;  %v3784_v2 = vadd.f32 %v3783_v9, %v3782_v62  ;;  %v2902_v62 = vld [vmem:[#allocation5 + $0x30] sm:$0xff] }
 0x410   : > { %v3785_v46 = vpop.f32.mrf.mxu0 }
 0x411   : > { %v2825_v55 = vadd.f32 %v3784_v2, %v2472_v22 }
 0x412   : > { %v3786_v40 = vpop.f32.mrf.mxu0 }
 0x413   : > { %2857 = vst.msk [vmem:[#allocation5 + $0xe0] sm:$0xff] %vm437_vm0, %v2825_v55  ;;  %v3787_v8 = vadd.f32 %v3786_v40, %v3785_v46  ;;  %v3224_v46 = vld [vmem:[%s4397_s20 + $0x30] sm:$0xff] }
 0x414   : > { %v3788_v32 = vpop.f32.mrf.mxu0 }
 0x415   : > { %v2826_v33 = vadd.f32 %v3787_v8, %v2473_v13  ;;  %v2904_v8 = vld [vmem:[#allocation5 + $0x40] sm:$0xff] }
 0x416   : > { %v3789_v12 = vpop.f32.mrf.mxu0 }
 0x417   : > { %2858 = vst.msk [vmem:[#allocation5 + $0xe8] sm:$0xff] %vm437_vm0, %v2826_v33  ;;  %v3790_v5 = vadd.f32 %v3789_v12, %v3788_v32 }
 0x418   : > { %v3791_v18 = vpop.f32.mrf.mxu0 }
 0x419   : > { %v2827_v49 = vadd.f32 %v3790_v5, %v2474_v24  ;;  %v3227_v5 = vld [vmem:[%s4397_s20 + $0x48] sm:$0xff] }
 0x41a   : > { %v3792_v6 = vpop.f32.mrf.mxu0 }
 0x41b   : > { %2859 = vst.msk [vmem:[#allocation5 + $0xf0] sm:$0xff] %vm437_vm0, %v2827_v49  ;;  %v3793_v38 = vadd.f32 %v3792_v6, %v3791_v18  ;;  %v2907_v49 = vld [vmem:[#allocation5 + $0x58] sm:$0xff] }
 0x41d   : > { %v2828_v41 = vadd.f32 %v3793_v38, %v2475_v59  ;;  %v2906_v59 = vld [vmem:[#allocation5 + $0x50] sm:$0xff] }
 0x41f   : > { %2860 = vst.msk [vmem:[#allocation5 + $0xf8] sm:$0xff] %vm437_vm0, %v2828_v41 }
 0x435   : > { %v3000_v1 = vpop.permute.xlu0 %2999 }
 0x436   : > { %v3153_v7 = vmul.f32 %v3000_v1, %v2897_v0 }
 0x438   : > { %v3187_v51 = vmul.f32 %v5864_v61, %v3153_v7 }
 0x43a   : > { %v3251_v11 = vadd.f32 %v3219_v36, %v3187_v51  ;;  %v2995_v16 = vpop.permute.xlu1 %2994  ;;  %v3229_v36 = vld [vmem:[%s4397_s20 + $0x58] sm:$0xff]  ;;  %v3228_v51 = vld [vmem:[%s4397_s20 + $0x50] sm:$0xff] }
 0x43b   : > { %v3152_v50 = vmul.f32 %v2995_v16, %v2896_v63  ;;  %v2909_v16 = vld [vmem:[#allocation5 + $0x68] sm:$0xff] }
 0x43c   : > { %3283 = vst.msk [vmem:[%s5870_s18 + $0x8] sm:$0xff] %vm437_vm0, %v3251_v11 }
 0x43d   : > { %v3186_v43 = vmul.f32 %v5864_v61, %v3152_v50 }
 0x43e   : > { %v3010_v37 = vpop.permute.xlu0 %3009  ;;  %v3005_v19 = vpop.permute.xlu1 %3004 }
 0x43f   : > { %v3250_v15 = vadd.f32 %v3218_v57, %v3186_v43  ;;  %v3155_v29 = vmul.f32 %v3010_v37, %v2899_v31  ;;  %v3154_v45 = vmul.f32 %v3005_v19, %v2898_v47  ;;  %v2908_v57 = vld [vmem:[#allocation5 + $0x60] sm:$0xff] }
 0x441   : > { %3282 = vst.msk [vmem:[%s5870_s18] sm:$0xff] %vm437_vm0, %v3250_v15  ;;  %v3189_v3 = vmul.f32 %v5864_v61, %v3155_v29  ;;  %v3188_v26 = vmul.f32 %v5864_v61, %v3154_v45  ;;  %v3231_v15 = vld [vmem:[%s4397_s20 + $0x68] sm:$0xff]  ;;  %v3230_v29 = vld [vmem:[%s4397_s20 + $0x60] sm:$0xff] }
 0x442   : > { %v3020_v27 = vpop.permute.xlu0 %3019  ;;  %v3015_v4 = vpop.permute.xlu1 %3014 }
 0x443   : > { %v3253_v20 = vadd.f32 %v3221_v44, %v3189_v3  ;;  %v3252_v54 = vadd.f32 %v3220_v53, %v3188_v26  ;;  %v3157_v35 = vmul.f32 %v3020_v27, %v2901_v28  ;;  %v3156_v58 = vmul.f32 %v3015_v4, %v2900_v17  ;;  %v2911_v53 = vld [vmem:[#allocation5 + $0x78] sm:$0xff]  ;;  %v2910_v26 = vld [vmem:[#allocation5 + $0x70] sm:$0xff] }
 0x445   : > { %3285 = vst.msk [vmem:[%s5870_s18 + $0x18] sm:$0xff] %vm437_vm0, %v3253_v20  ;;  %3284 = vst.msk [vmem:[%s5870_s18 + $0x10] sm:$0xff] %vm437_vm0, %v3252_v54  ;;  %v3191_v10 = vmul.f32 %v5864_v61, %v3157_v35  ;;  %v3190_v60 = vmul.f32 %v5864_v61, %v3156_v58  ;;  %v3233_v54 = vld [vmem:[%s4397_s20 + $0x78] sm:$0xff]  ;;  %v3232_v35 = vld [vmem:[%s4397_s20 + $0x70] sm:$0xff] }
 0x446   : > { %v3030_v56 = vpop.permute.xlu0 %3029  ;;  %v3025_v34 = vpop.permute.xlu1 %3024 }
 0x447   : > { %v3255_v9 = vadd.f32 %v3223_v21, %v3191_v10  ;;  %v3254_v52 = vadd.f32 %v3222_v48, %v3190_v60  ;;  %v3159_v22 = vmul.f32 %v3030_v56, %v2903_v39  ;;  %v3158_v2 = vmul.f32 %v3025_v34, %v2902_v62  ;;  %v2913_v48 = vld [vmem:[#allocation5 + $0x88] sm:$0xff]  ;;  %v2912_v60 = vld [vmem:[#allocation5 + $0x80] sm:$0xff] }
 0x449   : > { %3287 = vst.msk [vmem:[%s5870_s18 + $0x28] sm:$0xff] %vm437_vm0, %v3255_v9  ;;  %3286 = vst.msk [vmem:[%s5870_s18 + $0x20] sm:$0xff] %vm437_vm0, %v3254_v52  ;;  %v3193_v55 = vmul.f32 %v5864_v61, %v3159_v22  ;;  %v3192_v40 = vmul.f32 %v5864_v61, %v3158_v2  ;;  %v3235_v52 = vld [vmem:[%s4397_s20 + $0x88] sm:$0xff]  ;;  %v3234_v22 = vld [vmem:[%s4397_s20 + $0x80] sm:$0xff] }
 0x44a   : > { %v3040_v13 = vpop.permute.xlu0 %3039  ;;  %v3035_v23 = vpop.permute.xlu1 %3034 }
 0x44b   : > { %v3257_v32 = vadd.f32 %v3225_v42, %v3193_v55  ;;  %v3256_v33 = vadd.f32 %v3224_v46, %v3192_v40  ;;  %v3161_v12 = vmul.f32 %v3040_v13, %v2905_v25  ;;  %v3160_v24 = vmul.f32 %v3035_v23, %v2904_v8  ;;  %v2915_v46 = vld [vmem:[#allocation5 + $0x98] sm:$0xff]  ;;  %v2914_v40 = vld [vmem:[#allocation5 + $0x90] sm:$0xff] }
 0x44d   : > { %3289 = vst.msk [vmem:[%s5870_s18 + $0x38] sm:$0xff] %vm437_vm0, %v3257_v32  ;;  %3288 = vst.msk [vmem:[%s5870_s18 + $0x30] sm:$0xff] %vm437_vm0, %v3256_v33  ;;  %v3195_v14 = vmul.f32 %v5864_v61, %v3161_v12  ;;  %v3194_v18 = vmul.f32 %v5864_v61, %v3160_v24  ;;  %v3237_v33 = vld [vmem:[%s4397_s20 + $0x98] sm:$0xff]  ;;  %v3236_v12 = vld [vmem:[%s4397_s20 + $0x90] sm:$0xff] }
 0x44e   : > { %v3050_v6 = vpop.permute.xlu0 %3049  ;;  %v3045_v38 = vpop.permute.xlu1 %3044 }
 0x44f   : > { %v3259_v41 = vadd.f32 %v3227_v5, %v3195_v14  ;;  %v3258_v0 = vadd.f32 %v3226_v30, %v3194_v18  ;;  %v3163_v1 = vmul.f32 %v3050_v6, %v2907_v49  ;;  %v3162_v7 = vmul.f32 %v3045_v38, %v2906_v59  ;;  %v2917_v30 = vld [vmem:[#allocation5 + $0xa8] sm:$0xff]  ;;  %v2916_v18 = vld [vmem:[#allocation5 + $0xa0] sm:$0xff] }
 0x451   : > { %3291 = vst.msk [vmem:[%s5870_s18 + $0x48] sm:$0xff] %vm437_vm0, %v3259_v41  ;;  %3290 = vst.msk [vmem:[%s5870_s18 + $0x40] sm:$0xff] %vm437_vm0, %v3258_v0  ;;  %v3197_v11 = vmul.f32 %v5864_v61, %v3163_v1  ;;  %v3196_v63 = vmul.f32 %v5864_v61, %v3162_v7  ;;  %v3239_v0 = vld [vmem:[%s4397_s20 + $0xa8] sm:$0xff]  ;;  %v3238_v1 = vld [vmem:[%s4397_s20 + $0xa0] sm:$0xff] }
 0x452   : > { %v3055_v43 = vpop.permute.xlu1 %3054 }
 0x453   : > { %v3060_v50 = vpop.permute.xlu0 %3059  ;;  %v3261_v31 = vadd.f32 %v3229_v36, %v3197_v11  ;;  %v3260_v37 = vadd.f32 %v3228_v51, %v3196_v63  ;;  %v3164_v19 = vmul.f32 %v3055_v43, %v2908_v57  ;;  %v2919_v51 = vld [vmem:[#allocation5 + $0xb8] sm:$0xff]  ;;  %v2918_v63 = vld [vmem:[#allocation5 + $0xb0] sm:$0xff] }
 0x454   : > { %v3165_v47 = vmul.f32 %v3060_v50, %v2909_v16 }
 0x455   : > { %3293 = vst.msk [vmem:[%s5870_s18 + $0x58] sm:$0xff] %vm437_vm0, %v3261_v31  ;;  %3292 = vst.msk [vmem:[%s5870_s18 + $0x50] sm:$0xff] %vm437_vm0, %v3260_v37  ;;  %v3198_v44 = vmul.f32 %v5864_v61, %v3164_v19  ;;  %v3241_v37 = vld [vmem:[%s4397_s20 + $0xb8] sm:$0xff] }
 0x456   : > { %v3199_v45 = vmul.f32 %v5864_v61, %v3165_v47  ;;  %v3065_v28 = vpop.permute.xlu1 %3064  ;;  %v3240_v47 = vld [vmem:[%s4397_s20 + $0xb0] sm:$0xff] }
 0x457   : > { %v3070_v3 = vpop.permute.xlu0 %3069  ;;  %v3262_v17 = vadd.f32 %v3230_v29, %v3198_v44  ;;  %v3166_v20 = vmul.f32 %v3065_v28, %v2910_v26  ;;  %v2921_v29 = vld [vmem:[#allocation5 + $0xc8] sm:$0xff]  ;;  %v2920_v44 = vld [vmem:[#allocation5 + $0xc0] sm:$0xff] }
 0x458   : > { %v3263_v27 = vadd.f32 %v3231_v15, %v3199_v45  ;;  %v3167_v4 = vmul.f32 %v3070_v3, %v2911_v53 }
 0x459   : > { %3294 = vst.msk [vmem:[%s5870_s18 + $0x60] sm:$0xff] %vm437_vm0, %v3262_v17  ;;  %v3200_v21 = vmul.f32 %v5864_v61, %v3166_v20  ;;  %v3243_v17 = vld [vmem:[%s4397_s20 + $0xc8] sm:$0xff] }
 0x45a   : > { %3295 = vst.msk [vmem:[%s5870_s18 + $0x68] sm:$0xff] %vm437_vm0, %v3263_v27  ;;  %v3201_v58 = vmul.f32 %v5864_v61, %v3167_v4  ;;  %v3075_v39 = vpop.permute.xlu1 %3074  ;;  %v3242_v4 = vld [vmem:[%s4397_s20 + $0xc0] sm:$0xff] }
 0x45b   : > { %v3080_v10 = vpop.permute.xlu0 %3079  ;;  %v3264_v62 = vadd.f32 %v3232_v35, %v3200_v21  ;;  %v3168_v9 = vmul.f32 %v3075_v39, %v2912_v60  ;;  %v2923_v35 = vld [vmem:[#allocation5 + $0xd8] sm:$0xff]  ;;  %v2922_v21 = vld [vmem:[#allocation5 + $0xd0] sm:$0xff] }
 0x45c   : > { %v3265_v56 = vadd.f32 %v3233_v54, %v3201_v58  ;;  %v3169_v34 = vmul.f32 %v3080_v10, %v2913_v48 }
 0x45d   : > { %3296 = vst.msk [vmem:[%s5870_s18 + $0x70] sm:$0xff] %vm437_vm0, %v3264_v62  ;;  %v3202_v42 = vmul.f32 %v5864_v61, %v3168_v9  ;;  %v3245_v62 = vld [vmem:[%s4397_s20 + $0xd8] sm:$0xff] }
 0x45e   : > { %3297 = vst.msk [vmem:[%s5870_s18 + $0x78] sm:$0xff] %vm437_vm0, %v3265_v56  ;;  %v3203_v2 = vmul.f32 %v5864_v61, %v3169_v34  ;;  %v3085_v25 = vpop.permute.xlu1 %3084  ;;  %v3244_v34 = vld [vmem:[%s4397_s20 + $0xd0] sm:$0xff] }
 0x45f   : > { %v3090_v55 = vpop.permute.xlu0 %3089  ;;  %v3266_v8 = vadd.f32 %v3234_v22, %v3202_v42  ;;  %v3170_v32 = vmul.f32 %v3085_v25, %v2914_v40  ;;  %v2925_v22 = vld [vmem:[#allocation5 + $0xe8] sm:$0xff]  ;;  %v2924_v42 = vld [vmem:[#allocation5 + $0xe0] sm:$0xff] }
 0x460   : > { %v3267_v13 = vadd.f32 %v3235_v52, %v3203_v2  ;;  %v3171_v23 = vmul.f32 %v3090_v55, %v2915_v46 }
 0x461   : > { %3298 = vst.msk [vmem:[%s5870_s18 + $0x80] sm:$0xff] %vm437_vm0, %v3266_v8  ;;  %v3204_v5 = vmul.f32 %v5864_v61, %v3170_v32  ;;  %v3247_v8 = vld [vmem:[%s4397_s20 + $0xe8] sm:$0xff] }
 0x462   : > { %3299 = vst.msk [vmem:[%s5870_s18 + $0x88] sm:$0xff] %vm437_vm0, %v3267_v13  ;;  %v3205_v24 = vmul.f32 %v5864_v61, %v3171_v23  ;;  %v3095_v49 = vpop.permute.xlu1 %3094  ;;  %v3246_v23 = vld [vmem:[%s4397_s20 + $0xe0] sm:$0xff] }
 0x463   : > { %v3100_v14 = vpop.permute.xlu0 %3099  ;;  %v3268_v59 = vadd.f32 %v3236_v12, %v3204_v5  ;;  %v3172_v41 = vmul.f32 %v3095_v49, %v2916_v18  ;;  %v2927_v12 = vld [vmem:[#allocation5 + $0xf8] sm:$0xff]  ;;  %v2926_v5 = vld [vmem:[#allocation5 + $0xf0] sm:$0xff] }
 0x464   : > { %v3269_v6 = vadd.f32 %v3237_v33, %v3205_v24  ;;  %v3173_v38 = vmul.f32 %v3100_v14, %v2917_v30 }
 0x465   : > { %3300 = vst.msk [vmem:[%s5870_s18 + $0x90] sm:$0xff] %vm437_vm0, %v3268_v59  ;;  %v3206_v36 = vmul.f32 %v5864_v61, %v3172_v41  ;;  %v3249_v59 = vld [vmem:[%s4397_s20 + $0xf8] sm:$0xff] }
 0x466   : > { %3301 = vst.msk [vmem:[%s5870_s18 + $0x98] sm:$0xff] %vm437_vm0, %v3269_v6  ;;  %v3207_v7 = vmul.f32 %v5864_v61, %v3173_v38  ;;  %v3105_v16 = vpop.permute.xlu1 %3104  ;;  %v3248_v38 = vld [vmem:[%s4397_s20 + $0xf0] sm:$0xff]  ;;  %s4206_s20 = scalar_lea.vmem %s6001_s21, 4096 }
 0x467   : > { %v3110_v11 = vpop.permute.xlu0 %3109  ;;  %v3270_v57 = vadd.f32 %v3238_v1, %v3206_v36  ;;  %v3174_v31 = vmul.f32 %v3105_v16, %v2918_v63  ;;  %p4207_p12 = scmp.ne.s32.totalorder %s6001_s21, %s4206_s20  ;;  %p4214_p2 = scmp.lt.s32.totalorder %s4212_s12, %s4206_s20 }
 0x468   : > { %v3271_v50 = vadd.f32 %v3239_v0, %v3207_v7  ;;  %v3175_v43 = vmul.f32 %v3110_v11, %v2919_v51 }
 0x469   : > { %3302 = vst.msk [vmem:[%s5870_s18 + $0xa0] sm:$0xff] %vm437_vm0, %v3270_v57  ;;  %v3208_v15 = vmul.f32 %v5864_v61, %v3174_v31  ;;  %p4208_p13 = pnand %p4207_p12, %p4368_p4  ;;  %p4215_p3 = por %p4214_p2, %p4213_p1 }
 0x46a   : > { %3303 = vst.msk [vmem:[%s5870_s18 + $0xa8] sm:$0xff] %vm437_vm0, %v3271_v50  ;;  %v3209_v19 = vmul.f32 %v5864_v61, %v3175_v43  ;;  %v3115_v53 = vpop.permute.xlu1 %3114 }
 0x46b   : > { %v3120_v45 = vpop.permute.xlu0 %3119  ;;  %v3272_v26 = vadd.f32 %v3240_v47, %v3208_v15  ;;  %v3176_v27 = vmul.f32 %v3115_v53, %v2920_v44  ;;  %p4209_p0 = pneg %p4208_p13 }
 0x46c   : > { %v3273_v3 = vadd.f32 %v3241_v37, %v3209_v19  ;;  %v3177_v28 = vmul.f32 %v3120_v45, %v2921_v29 }
 0x46d   : > { %3304 = vst.msk [vmem:[%s5870_s18 + $0xb0] sm:$0xff] %vm437_vm0, %v3272_v26  ;;  %v3210_v54 = vmul.f32 %v5864_v61, %v3176_v27  ;;  %p4216_p5 = pnand %p4215_p3, %p4209_p0 }
 0x46e   : > { %3305 = vst.msk [vmem:[%s5870_s18 + $0xb8] sm:$0xff] %vm437_vm0, %v3273_v3  ;;  %v3211_v20 = vmul.f32 %v5864_v61, %v3177_v28  ;;  %v3125_v48 = vpop.permute.xlu1 %3124 }
 0x46f   : > { %v3130_v58 = vpop.permute.xlu0 %3129  ;;  %v3274_v60 = vadd.f32 %v3242_v4, %v3210_v54  ;;  %v3178_v56 = vmul.f32 %v3125_v48, %v2922_v21 }
 0x470   : > { %v3275_v10 = vadd.f32 %v3243_v17, %v3211_v20  ;;  %v3179_v39 = vmul.f32 %v3130_v58, %v2923_v35 }
 0x471   : > { %3306 = vst.msk [vmem:[%s5870_s18 + $0xc0] sm:$0xff] %vm437_vm0, %v3274_v60  ;;  %v3212_v52 = vmul.f32 %v5864_v61, %v3178_v56 }
 0x472   : > { %3307 = vst.msk [vmem:[%s5870_s18 + $0xc8] sm:$0xff] %vm437_vm0, %v3275_v10  ;;  %v3213_v9 = vmul.f32 %v5864_v61, %v3179_v39  ;;  %v3135_v46 = vpop.permute.xlu1 %3134 }
 0x473   : > { %v3140_v2 = vpop.permute.xlu0 %3139  ;;  %v3276_v40 = vadd.f32 %v3244_v34, %v3212_v52  ;;  %v3180_v13 = vmul.f32 %v3135_v46, %v2924_v42 }
 0x474   : > { %v3277_v55 = vadd.f32 %v3245_v62, %v3213_v9  ;;  %v3181_v25 = vmul.f32 %v3140_v2, %v2925_v22 }
 0x475   : > { %3308 = vst.msk [vmem:[%s5870_s18 + $0xd0] sm:$0xff] %vm437_vm0, %v3276_v40  ;;  %v3214_v33 = vmul.f32 %v5864_v61, %v3180_v13 }
 0x476   : > { %3309 = vst.msk [vmem:[%s5870_s18 + $0xd8] sm:$0xff] %vm437_vm0, %v3277_v55  ;;  %v3215_v32 = vmul.f32 %v5864_v61, %v3181_v25  ;;  %v3145_v30 = vpop.permute.xlu1 %3144 }
 0x477   : > { %v3150_v24 = vpop.permute.xlu0 %3149  ;;  %v3278_v18 = vadd.f32 %v3246_v23, %v3214_v33  ;;  %v3182_v6 = vmul.f32 %v3145_v30, %v2926_v5 }
 0x478   : > { %v3279_v14 = vadd.f32 %v3247_v8, %v3215_v32  ;;  %v3183_v49 = vmul.f32 %v3150_v24, %v2927_v12 }
 0x479   : > { %3310 = vst.msk [vmem:[%s5870_s18 + $0xe0] sm:$0xff] %vm437_vm0, %v3278_v18  ;;  %v3216_v0 = vmul.f32 %v5864_v61, %v3182_v6 }
 0x47a   : > { %3311 = vst.msk [vmem:[%s5870_s18 + $0xe8] sm:$0xff] %vm437_vm0, %v3279_v14  ;;  %v3217_v41 = vmul.f32 %v5864_v61, %v3183_v49 }
 0x47b   : > { %v3280_v7 = vadd.f32 %v3248_v38, %v3216_v0 }
 0x47c   : > { %v3281_v1 = vadd.f32 %v3249_v59, %v3217_v41 }
 0x47d   : > { %3312 = vst.msk [vmem:[%s5870_s18 + $0xf0] sm:$0xff] %vm437_vm0, %v3280_v7 }
 0x47e   : > { %3313 = vst.msk [vmem:[%s5870_s18 + $0xf8] sm:$0xff] %vm437_vm0, %v3281_v1 }
 0x47f   : > { %4219 = shalt.err (!%p4216_p5)
}
 0x480   : > { %s4220_s13 = scalar_lea.hbm %s5999_s29, 4096  ;;  %s4224_s16 = scalar_lea.hbm %s6060_s6, 8192 }
 0x481   : > { %p4221_p6 = scmp.ne.s32.totalorder %s5999_s29, %s4220_s13  ;;  %p4225_p10 = scmp.lt.s32.totalorder %s5999_s29, %s6060_s6 }
 0x482   : > { %p4226_p11 = scmp.lt.s32.totalorder %s4224_s16, %s4220_s13 }
 0x483   : > { %p4222_p7 = pnand %p4221_p6, %p4368_p4 }
 0x484   : > { %p4227_p12 = por %p4226_p11, %p4225_p10 }
 0x485   : > { %p4223_p9 = pneg %p4222_p7 }
 0x487   : > { %p4228_p13 = pnand %p4227_p12, %p4223_p9 }
 0x489   : > { %4231 = shalt.err (!%p4228_p13)
}
 0x48a   : > { %s4288_s19 = smov 128   ;;  %s4289_s22 = smov 8  }
 0x48b   : > { %3838 = dma.vmem_to_hbm [thread:$0]  (%p4368_p4), %s6001_s21, 4096, %s5999_s29, %s6009_s26, %s4288_s19, %s4288_s19, %s4289_s22  }
 0x48c PF: > { %p3844_p0 = scmp.ge.s32.totalorder %s4282_s28, 2  ;;  %s3345_s5 = sand.u32 1, %s4262_s23  }
 0x48d   : > { %s3346_s20 = scalar_lea.sflag [#allocation8], %s3345_s5 }
 0x48e   : > { %p3841_p1 = pnand %p3844_p0, %p4375_p8 }
 0x490   : > { %p3842_p2 = pneg %p3841_p1 }
 0x492   : > { %4257 = dma.done.wait (%p3842_p2), %s3346_s20, 4096  }
 0x493   : > { %4259 = vsyncadd (%p3842_p2), %s3346_s20, 4294963200  ;;  %s20_s28 = sadd.s32 1, %s4282_s28   ;;  %s6312_s23 = smov %s4266_s24 }
 0x494   : > { %p17_p3 = scmp.ge.s32.totalorder %s20_s28, 4   ;;  %s6313_s24 = smov %s4270_s25 }
 0x495   : > { %s6314_s25 = smov %s4381_s11  ;;  %s6315_s26 = smov %s4278_s27 }
 0x496   : > { %s6316_s27 = smov %s6318_s30  ;;  %19 = sbr.rel (!%p17_p3) target bundleno = 6 (0x6), region = 93 }
 0x49b   :  { %3351 = vsyncpa [#allocation8], 1 }
 0x49c   :  { %3353 = vsyncpa [#allocation8 + $0x1], 1 }

</bundles_post_ra>
